<compile_context>
chip_gen: v7x
topology: tpu7x:2x2x1
jax: 0.10.0
libtpu: 0.0.40
codegen_flags: <defaults>
</compile_context>

<pallas_src>
import functools
import math

import jax
import jax.numpy as jnp
from jax.experimental import pallas as pl
from jax.experimental.pallas import tpu as pltpu

LANE = 128


def _round_up(x, m):
    return (x + m - 1) // m * m


def _leaky_relu(x, slope=0.2):
    # For slope in (0, 1): leaky_relu(x) == max(x, slope * x)  (one mul + one max)
    return jnp.maximum(x, slope * x)


def default_act_dtype():
    """bf16 element-wise epilogue on chips with a bf16 VPU (v6e / v7x);
    f32 on v5e and anything unrecognized (no native bf16 VPU/EUP path)."""
    try:
        kind = jax.devices()[0].device_kind.lower()
    except Exception:
        return jnp.float32
    if "v6" in kind or "v7" in kind or "tpu7" in kind:
        return jnp.bfloat16
    return jnp.float32


# ----------------------------- kernel body ----------------------------------


def generator_kernel(x_ref,
                     w1_ref, b1_ref,
                     w2_ref, b2_ref,
                     w3_ref, b3_ref,
                     w4_ref, b4_ref,
                     o_ref, *, act_dtype):
    # 4 fused MXU matmuls: bf16 operands, f32 accumulation.
    # x arrives as f32 and is cast to bf16 here (hides under the MXU).
    x = x_ref[...].astype(jnp.bfloat16)
    h = jnp.dot(x, w1_ref[...], preferred_element_type=jnp.float32)
    h = _leaky_relu(h.astype(act_dtype) + b1_ref[...])

    h = jnp.dot(h.astype(jnp.bfloat16), w2_ref[...],
                preferred_element_type=jnp.float32)
    h = _leaky_relu(h.astype(act_dtype) + b2_ref[...])

    h = jnp.dot(h.astype(jnp.bfloat16), w3_ref[...],
                preferred_element_type=jnp.float32)
    h = _leaky_relu(h.astype(act_dtype) + b3_ref[...])

    h = jnp.dot(h.astype(jnp.bfloat16), w4_ref[...],
                preferred_element_type=jnp.float32)
    o_ref[...] = jnp.tanh(h + b4_ref[...]).astype(o_ref.dtype)


# ----------------------------- wrapper ---------------------------------------


def _choose_batch_tile(batch, max_tile):
    """Padding-aware batch tile.  Tiny batches: exact-fit multiple of 8 (no
    padded MXU work).  Otherwise prefer >=2 grid steps (v7x dual TensorCore),
    then minimal zero-padding waste, then the largest tile (per-step overhead)."""
    b8 = _round_up(batch, 8)
    if b8 <= LANE:
        return b8
    best_key, best_tile = None, LANE
    for t in (128, 256, 512):
        if t > max(max_tile, LANE):
            continue
        steps = -(-b8 // t)
        waste = steps * t - b8
        key = (steps < 2, waste, -t)
        if best_key is None or key < best_key:
            best_key, best_tile = key, t
    return best_tile


def prepare_params(params, *, act_dtype=None):
    """One-time conversion of f32 params to the kernel layout/dtypes.

    Call ONCE outside the training/inference step: the per-call forward then
    contains no cast/pad XLA ops, only the fused Pallas kernel.
    Returns (prepped_dict, out_dim)."""
    if act_dtype is None:
        act_dtype = default_act_dtype()
    out_dim = params["w4"].shape[1]
    dout_p = _round_up(out_dim, LANE)
    prepped = {
        "w1": params["w1"].astype(jnp.bfloat16),            # (100, 256)
        "b1": params["b1"].astype(act_dtype),                # (1, 256)
        "w2": params["w2"].astype(jnp.bfloat16),             # (256, 512)
        "b2": params["b2"].astype(act_dtype),
        "w3": params["w3"].astype(jnp.bfloat16),             # (512, 1024)
        "b3": params["b3"].astype(act_dtype),
        "w4": jnp.zeros((params["w4"].shape[0], dout_p), jnp.bfloat16)
                 .at[:, :out_dim].set(params["w4"].astype(jnp.bfloat16)),
        "b4": jnp.zeros((1, dout_p), jnp.float32)
                 .at[:, :out_dim].set(params["b4"].astype(jnp.float32)),
    }
    return prepped, out_dim


@functools.partial(
    jax.jit,
    static_argnames=("out_dim", "max_batch_tile", "single_buffer_weights"))
def _generator_forward_impl(x, prepped, *, out_dim, max_batch_tile,
                            single_buffer_weights):
    B, Din = x.shape
    act_dtype = prepped["b1"].dtype
    dout_p = prepped["w4"].shape[1]

    tile = _choose_batch_tile(B, max_batch_tile)
    grid = (pl.cdiv(B, tile),)

    def resident(a):
        # Whole array resident in VMEM (constant index_map) -> DMA'd once.
        if single_buffer_weights:
            return pl.BlockSpec(a.shape, lambda i: (0, 0),
                                pipeline_mode=pl.Buffered(1))
        return pl.BlockSpec(a.shape, lambda i: (0, 0))

    kernel = functools.partial(generator_kernel, act_dtype=act_dtype)

    padded_batch = grid[0] * tile
    flops = 2 * padded_batch * (Din * 256 + 256 * 512 + 512 * 1024
                                + 1024 * dout_p)
    weight_bytes = sum(int(prepped[k].size) * prepped[k].dtype.itemsize
                       for k in ("w1", "b1", "w2", "b2", "w3", "b3", "w4", "b4"))
    bytes_accessed = (int(x.size) * x.dtype.itemsize + weight_bytes
                      + B * dout_p * 4)

    out = pl.pallas_call(
        kernel,
        out_shape=jax.ShapeDtypeStruct((B, dout_p), jnp.float32),
        grid_spec=pltpu.PrefetchScalarGridSpec(
            num_scalar_prefetch=0,
            grid=grid,
            in_specs=[
                # x tile: full-width last dim (== 100), f32, cast in-kernel.
                pl.BlockSpec((tile, Din), lambda i: (i, 0)),
                resident(prepped["w1"]), resident(prepped["b1"]),
                resident(prepped["w2"]), resident(prepped["b2"]),
                resident(prepped["w3"]), resident(prepped["b3"]),
                resident(prepped["w4"]), resident(prepped["b4"]),
            ],
            out_specs=pl.BlockSpec((tile, dout_p), lambda i: (i, 0)),
        ),
        compiler_params=pltpu.CompilerParams(
            dimension_semantics=("parallel",),
        ),
        cost_estimate=pl.CostEstimate(
            flops=flops,
            transcendentals=padded_batch * dout_p,
            bytes_accessed=bytes_accessed,
        ),
    )(x, prepped["w1"], prepped["b1"], prepped["w2"], prepped["b2"],
      prepped["w3"], prepped["b3"], prepped["w4"], prepped["b4"])

    if out_dim != dout_p:
        out = out[:, :out_dim]   # strip output-feature padding only when needed
    return out


_SINGLE_BUFFER_OK = True


def generator_forward(x, prepped_params, *, out_dim, max_batch_tile=512):
    """x: (B, 100) float32.  prepped_params: output of prepare_params()."""
    global _SINGLE_BUFFER_OK
    if _SINGLE_BUFFER_OK:
        try:
            return _generator_forward_impl(
                x, prepped_params, out_dim=out_dim,
                max_batch_tile=max_batch_tile, single_buffer_weights=True)
        except Exception:
            # pl.Buffered(1) not supported by this jax/Mosaic build; fall back
            # to default double-buffered resident weights (still correct).
            _SINGLE_BUFFER_OK = False
    return _generator_forward_impl(
        x, prepped_params, out_dim=out_dim,
        max_batch_tile=max_batch_tile, single_buffer_weights=False)


# --------------------------- init + reference --------------------------------


def init_params(key, g_output_dim):
    """Xavier-uniform init matching the module's _initialize_weights shapes.

    fc1..fc3: gain = calculate_gain('leaky_relu', 0.2) = sqrt(2/(1+0.2^2));
    fc4: gain = calculate_gain('tanh') = 5/3.  Biases zero.
    Weights stored (in_features, out_features) so the kernel does x @ W + b.
    """
    dims = [(100, 256), (256, 512), (512, 1024), (1024, g_output_dim)]
    gain_lrelu = math.sqrt(2.0 / (1.0 + 0.2 ** 2))
    gain_tanh = 5.0 / 3.0
    gains = [gain_lrelu, gain_lrelu, gain_lrelu, gain_tanh]

    params = {}
    keys = jax.random.split(key, len(dims))
    for n, ((fan_in, fan_out), g, k) in enumerate(zip(dims, gains, keys), start=1):
        bound = g * math.sqrt(6.0 / (fan_in + fan_out))
        w = jax.random.uniform(k, (fan_in, fan_out), jnp.float32, -bound, bound)
        b = jnp.zeros((1, fan_out), jnp.float32)
        params[f"w{n}"] = w
        params[f"b{n}"] = b
    return params


def reference_forward(x, params, *, dot_dtype=jnp.float32, act_dtype=jnp.float32):
    """Pure-JAX reference mirroring the kernel's dtype choices.

    dot_dtype=bfloat16 + act_dtype matching the kernel reproduces the Pallas
    numerics; dot_dtype=float32 is the full-precision baseline."""
    h = x.astype(dot_dtype)
    for n in (1, 2, 3):
        w = params[f"w{n}"].astype(dot_dtype)
        b = params[f"b{n}"].astype(act_dtype)
        a = jnp.dot(h, w, preferred_element_type=jnp.float32)
        h = _leaky_relu(a.astype(act_dtype) + b).astype(dot_dtype)
    w = params["w4"].astype(dot_dtype)
    a = jnp.dot(h, w, preferred_element_type=jnp.float32)
    return jnp.tanh(a + params["b4"].astype(jnp.float32))


if __name__ == "__main__":
    key = jax.random.PRNGKey(0)
    k_param, k_x = jax.random.split(key)

    g_output_dim = 64          # small synthetic output dim
    batch = 16                 # latent batch (make_hidden-style input)
    x = jax.random.normal(k_x, (batch, 100), jnp.float32)

    params = init_params(k_param, g_output_dim)

    # One-time param preparation (cast/pad hoisted out of the forward pass).
    act_dtype = default_act_dtype()
    prepped, out_dim = prepare_params(params, act_dtype=act_dtype)

    out = generator_forward(x, prepped, out_dim=out_dim)
    out = jax.block_until_ready(out)
    assert out.shape == (batch, g_output_dim)

    # Tight check vs. a reference using the same bf16 operand / epilogue dtypes.
    ref_matched = reference_forward(x, params, dot_dtype=jnp.bfloat16,
                                    act_dtype=act_dtype)
    assert jnp.allclose(out, ref_matched, atol=1e-2, rtol=1e-2), \
        "mismatch vs dtype-matched reference"

    # Loose sanity check vs. the full-f32 reference (bf16 rounding only).
    ref_f32 = reference_forward(x, params, dot_dtype=jnp.float32,
                                act_dtype=jnp.float32)
    assert jnp.allclose(out, ref_f32, atol=1e-1), "mismatch vs f32 reference"

    print("KERNEL_OK")
</pallas_src>

<mosaic_0001>
module attributes {stable_mosaic.version = 11 : i64} {
  func.func @generator_kernel(%arg0: i32, %arg1: memref<16x100xf32, #tpu.memory_space<vmem>>, %arg2: memref<100x256xbf16, #tpu.memory_space<vmem>>, %arg3: memref<1x256xf32, #tpu.memory_space<vmem>>, %arg4: memref<256x512xbf16, #tpu.memory_space<vmem>>, %arg5: memref<1x512xf32, #tpu.memory_space<vmem>>, %arg6: memref<512x1024xbf16, #tpu.memory_space<vmem>>, %arg7: memref<1x1024xf32, #tpu.memory_space<vmem>>, %arg8: memref<1024x128xbf16, #tpu.memory_space<vmem>>, %arg9: memref<1x128xf32, #tpu.memory_space<vmem>>, %arg10: memref<16x128xf32, #tpu.memory_space<vmem>>) attributes {dimension_semantics = [#tpu.dimension_semantics<parallel>], iteration_bounds = array<i64: 1>, scalar_prefetch = 0 : i64, scratch_operands = 0 : i64, tpu.core_type = #tpu.core_type<tc>, window_params = [{transform_indices = @transform_0, window_bounds = array<i64: 16, 100>}, {pipeline_mode = #tpu.pipeline_mode<synchronous>, transform_indices = @transform_1, window_bounds = array<i64: 100, 256>}, {pipeline_mode = #tpu.pipeline_mode<synchronous>, transform_indices = @transform_2, window_bounds = array<i64: 1, 256>}, {pipeline_mode = #tpu.pipeline_mode<synchronous>, transform_indices = @transform_3, window_bounds = array<i64: 256, 512>}, {pipeline_mode = #tpu.pipeline_mode<synchronous>, transform_indices = @transform_4, window_bounds = array<i64: 1, 512>}, {pipeline_mode = #tpu.pipeline_mode<synchronous>, transform_indices = @transform_5, window_bounds = array<i64: 512, 1024>}, {pipeline_mode = #tpu.pipeline_mode<synchronous>, transform_indices = @transform_6, window_bounds = array<i64: 1, 1024>}, {pipeline_mode = #tpu.pipeline_mode<synchronous>, transform_indices = @transform_7, window_bounds = array<i64: 1024, 128>}, {pipeline_mode = #tpu.pipeline_mode<synchronous>, transform_indices = @transform_8, window_bounds = array<i64: 1, 128>}, {transform_indices = @transform_9, window_bounds = array<i64: 16, 128>}]} {
    %c0 = arith.constant 0 : index
    %c0_0 = arith.constant 0 : index
    %0 = vector.load %arg1[%c0, %c0_0] : memref<16x100xf32, #tpu.memory_space<vmem>>, vector<16x100xf32>
    %1 = arith.truncf %0 : vector<16x100xf32> to vector<16x100xbf16>
    %c0_1 = arith.constant 0 : index
    %c0_2 = arith.constant 0 : index
    %2 = vector.load %arg2[%c0_1, %c0_2] : memref<100x256xbf16, #tpu.memory_space<vmem>>, vector<100x256xbf16>
    %cst = arith.constant dense<0.000000e+00> : vector<16x256xf32>
    %3 = tpu.matmul %1, %2, %cst {dimension_numbers = #tpu.dot_dimension_numbers<[1], [0], [0], [1], [0, 0, 1, 1], [], []>} : vector<16x100xbf16>, vector<100x256xbf16>, vector<16x256xf32> -> vector<16x256xf32>
    %c0_3 = arith.constant 0 : index
    %c0_4 = arith.constant 0 : index
    %4 = vector.load %arg3[%c0_3, %c0_4] : memref<1x256xf32, #tpu.memory_space<vmem>>, vector<1x256xf32>
    %5 = vector.broadcast %4 : vector<1x256xf32> to vector<16x256xf32>
    %6 = arith.addf %3, %5 : vector<16x256xf32>
    %cst_5 = arith.constant 2.000000e-01 : f32
    %7 = vector.broadcast %cst_5 : f32 to vector<16x256xf32>
    %8 = arith.mulf %7, %6 : vector<16x256xf32>
    %9 = arith.maximumf %6, %8 : vector<16x256xf32>
    %10 = arith.truncf %9 : vector<16x256xf32> to vector<16x256xbf16>
    %c0_6 = arith.constant 0 : index
    %c0_7 = arith.constant 0 : index
    %11 = vector.load %arg4[%c0_6, %c0_7] : memref<256x512xbf16, #tpu.memory_space<vmem>>, vector<256x512xbf16>
    %cst_8 = arith.constant dense<0.000000e+00> : vector<16x512xf32>
    %12 = tpu.matmul %10, %11, %cst_8 {dimension_numbers = #tpu.dot_dimension_numbers<[1], [0], [0], [1], [0, 0, 1, 1], [], []>} : vector<16x256xbf16>, vector<256x512xbf16>, vector<16x512xf32> -> vector<16x512xf32>
    %c0_9 = arith.constant 0 : index
    %c0_10 = arith.constant 0 : index
    %13 = vector.load %arg5[%c0_9, %c0_10] : memref<1x512xf32, #tpu.memory_space<vmem>>, vector<1x512xf32>
    %14 = vector.broadcast %13 : vector<1x512xf32> to vector<16x512xf32>
    %15 = arith.addf %12, %14 : vector<16x512xf32>
    %cst_11 = arith.constant 2.000000e-01 : f32
    %16 = vector.broadcast %cst_11 : f32 to vector<16x512xf32>
    %17 = arith.mulf %16, %15 : vector<16x512xf32>
    %18 = arith.maximumf %15, %17 : vector<16x512xf32>
    %19 = arith.truncf %18 : vector<16x512xf32> to vector<16x512xbf16>
    %c0_12 = arith.constant 0 : index
    %c0_13 = arith.constant 0 : index
    %20 = vector.load %arg6[%c0_12, %c0_13] : memref<512x1024xbf16, #tpu.memory_space<vmem>>, vector<512x1024xbf16>
    %cst_14 = arith.constant dense<0.000000e+00> : vector<16x1024xf32>
    %21 = tpu.matmul %19, %20, %cst_14 {dimension_numbers = #tpu.dot_dimension_numbers<[1], [0], [0], [1], [0, 0, 1, 1], [], []>} : vector<16x512xbf16>, vector<512x1024xbf16>, vector<16x1024xf32> -> vector<16x1024xf32>
    %c0_15 = arith.constant 0 : index
    %c0_16 = arith.constant 0 : index
    %22 = vector.load %arg7[%c0_15, %c0_16] : memref<1x1024xf32, #tpu.memory_space<vmem>>, vector<1x1024xf32>
    %23 = vector.broadcast %22 : vector<1x1024xf32> to vector<16x1024xf32>
    %24 = arith.addf %21, %23 : vector<16x1024xf32>
    %cst_17 = arith.constant 2.000000e-01 : f32
    %25 = vector.broadcast %cst_17 : f32 to vector<16x1024xf32>
    %26 = arith.mulf %25, %24 : vector<16x1024xf32>
    %27 = arith.maximumf %24, %26 : vector<16x1024xf32>
    %28 = arith.truncf %27 : vector<16x1024xf32> to vector<16x1024xbf16>
    %c0_18 = arith.constant 0 : index
    %c0_19 = arith.constant 0 : index
    %29 = vector.load %arg8[%c0_18, %c0_19] : memref<1024x128xbf16, #tpu.memory_space<vmem>>, vector<1024x128xbf16>
    %cst_20 = arith.constant dense<0.000000e+00> : vector<16x128xf32>
    %30 = tpu.matmul %28, %29, %cst_20 {dimension_numbers = #tpu.dot_dimension_numbers<[1], [0], [0], [1], [0, 0, 1, 1], [], []>} : vector<16x1024xbf16>, vector<1024x128xbf16>, vector<16x128xf32> -> vector<16x128xf32>
    %c0_21 = arith.constant 0 : index
    %c0_22 = arith.constant 0 : index
    %31 = vector.load %arg9[%c0_21, %c0_22] : memref<1x128xf32, #tpu.memory_space<vmem>>, vector<1x128xf32>
    %32 = vector.broadcast %31 : vector<1x128xf32> to vector<16x128xf32>
    %33 = arith.addf %30, %32 : vector<16x128xf32>
    %34 = math.tanh %33 : vector<16x128xf32>
    %c0_23 = arith.constant 0 : index
    %c0_24 = arith.constant 0 : index
    %35 = vector.load %arg10[%c0_23, %c0_24] : memref<16x128xf32, #tpu.memory_space<vmem>>, vector<16x128xf32>
    tpu.vector_store %arg10[%c0_23, %c0_24], %34 {strides = array<i32>} : memref<16x128xf32, #tpu.memory_space<vmem>>, vector<16x128xf32>,
    return
  }
  func.func @transform_0(%arg0: i32) -> (i32, i32) {
    %c0_i32 = arith.constant 0 : i32
    %c0_i32_0 = arith.constant 0 : i32
    return %arg0, %c0_i32 : i32, i32
  }
  func.func @transform_1(%arg0: i32) -> (i32, i32) {
    %c0_i32 = arith.constant 0 : i32
    %c0_i32_0 = arith.constant 0 : i32
    %c0_i32_1 = arith.constant 0 : i32
    return %c0_i32, %c0_i32_0 : i32, i32
  }
  func.func @transform_2(%arg0: i32) -> (i32, i32) {
    %c0_i32 = arith.constant 0 : i32
    %c0_i32_0 = arith.constant 0 : i32
    %c0_i32_1 = arith.constant 0 : i32
    return %c0_i32, %c0_i32_0 : i32, i32
  }
  func.func @transform_3(%arg0: i32) -> (i32, i32) {
    %c0_i32 = arith.constant 0 : i32
    %c0_i32_0 = arith.constant 0 : i32
    %c0_i32_1 = arith.constant 0 : i32
    return %c0_i32, %c0_i32_0 : i32, i32
  }
  func.func @transform_4(%arg0: i32) -> (i32, i32) {
    %c0_i32 = arith.constant 0 : i32
    %c0_i32_0 = arith.constant 0 : i32
    %c0_i32_1 = arith.constant 0 : i32
    return %c0_i32, %c0_i32_0 : i32, i32
  }
  func.func @transform_5(%arg0: i32) -> (i32, i32) {
    %c0_i32 = arith.constant 0 : i32
    %c0_i32_0 = arith.constant 0 : i32
    %c0_i32_1 = arith.constant 0 : i32
    return %c0_i32, %c0_i32_0 : i32, i32
  }
  func.func @transform_6(%arg0: i32) -> (i32, i32) {
    %c0_i32 = arith.constant 0 : i32
    %c0_i32_0 = arith.constant 0 : i32
    %c0_i32_1 = arith.constant 0 : i32
    return %c0_i32, %c0_i32_0 : i32, i32
  }
  func.func @transform_7(%arg0: i32) -> (i32, i32) {
    %c0_i32 = arith.constant 0 : i32
    %c0_i32_0 = arith.constant 0 : i32
    %c0_i32_1 = arith.constant 0 : i32
    return %c0_i32, %c0_i32_0 : i32, i32
  }
  func.func @transform_8(%arg0: i32) -> (i32, i32) {
    %c0_i32 = arith.constant 0 : i32
    %c0_i32_0 = arith.constant 0 : i32
    %c0_i32_1 = arith.constant 0 : i32
    return %c0_i32, %c0_i32_0 : i32, i32
  }
  func.func @transform_9(%arg0: i32) -> (i32, i32) {
    %c0_i32 = arith.constant 0 : i32
    %c0_i32_0 = arith.constant 0 : i32
    return %arg0, %c0_i32 : i32, i32
  }
}

module attributes {stable_mosaic.version = 11 : i64} {
  func.func @generator_kernel(%arg0: i32, %arg1: memref<16x100xf32, #tpu.memory_space<vmem>>, %arg2: memref<100x256xbf16, #tpu.memory_space<vmem>>, %arg3: memref<1x256xf32, #tpu.memory_space<vmem>>, %arg4: memref<256x512xbf16, #tpu.memory_space<vmem>>, %arg5: memref<1x512xf32, #tpu.memory_space<vmem>>, %arg6: memref<512x1024xbf16, #tpu.memory_space<vmem>>, %arg7: memref<1x1024xf32, #tpu.memory_space<vmem>>, %arg8: memref<1024x128xbf16, #tpu.memory_space<vmem>>, %arg9: memref<1x128xf32, #tpu.memory_space<vmem>>, %arg10: memref<16x128xf32, #tpu.memory_space<vmem>>) attributes {dimension_semantics = [#tpu.dimension_semantics<parallel>], iteration_bounds = array<i64: 1>, scalar_prefetch = 0 : i64, scratch_operands = 0 : i64, tpu.core_type = #tpu.core_type<tc>, window_params = [{transform_indices = @transform_0, window_bounds = array<i64: 16, 100>}, {pipeline_mode = #tpu.pipeline_mode<synchronous>, transform_indices = @transform_1, window_bounds = array<i64: 100, 256>}, {pipeline_mode = #tpu.pipeline_mode<synchronous>, transform_indices = @transform_2, window_bounds = array<i64: 1, 256>}, {pipeline_mode = #tpu.pipeline_mode<synchronous>, transform_indices = @transform_3, window_bounds = array<i64: 256, 512>}, {pipeline_mode = #tpu.pipeline_mode<synchronous>, transform_indices = @transform_4, window_bounds = array<i64: 1, 512>}, {pipeline_mode = #tpu.pipeline_mode<synchronous>, transform_indices = @transform_5, window_bounds = array<i64: 512, 1024>}, {pipeline_mode = #tpu.pipeline_mode<synchronous>, transform_indices = @transform_6, window_bounds = array<i64: 1, 1024>}, {pipeline_mode = #tpu.pipeline_mode<synchronous>, transform_indices = @transform_7, window_bounds = array<i64: 1024, 128>}, {pipeline_mode = #tpu.pipeline_mode<synchronous>, transform_indices = @transform_8, window_bounds = array<i64: 1, 128>}, {transform_indices = @transform_9, window_bounds = array<i64: 16, 128>}]} {
    %c0 = arith.constant 0 : index
    %c0_0 = arith.constant 0 : index
    %0 = vector.load %arg1[%c0, %c0_0] : memref<16x100xf32, #tpu.memory_space<vmem>>, vector<16x100xf32>
    %1 = arith.truncf %0 : vector<16x100xf32> to vector<16x100xbf16>
    %c0_1 = arith.constant 0 : index
    %c0_2 = arith.constant 0 : index
    %2 = vector.load %arg2[%c0_1, %c0_2] : memref<100x256xbf16, #tpu.memory_space<vmem>>, vector<100x256xbf16>
    %cst = arith.constant dense<0.000000e+00> : vector<16x256xf32>
    %3 = tpu.matmul %1, %2, %cst {dimension_numbers = #tpu.dot_dimension_numbers<[1], [0], [0], [1], [0, 0, 1, 1], [], []>} : vector<16x100xbf16>, vector<100x256xbf16>, vector<16x256xf32> -> vector<16x256xf32>
    %c0_3 = arith.constant 0 : index
    %c0_4 = arith.constant 0 : index
    %4 = vector.load %arg3[%c0_3, %c0_4] : memref<1x256xf32, #tpu.memory_space<vmem>>, vector<1x256xf32>
    %5 = vector.broadcast %4 : vector<1x256xf32> to vector<16x256xf32>
    %6 = arith.addf %3, %5 : vector<16x256xf32>
    %cst_5 = arith.constant 2.000000e-01 : f32
    %7 = vector.broadcast %cst_5 : f32 to vector<16x256xf32>
    %8 = arith.mulf %7, %6 : vector<16x256xf32>
    %9 = arith.maximumf %6, %8 : vector<16x256xf32>
    %10 = arith.truncf %9 : vector<16x256xf32> to vector<16x256xbf16>
    %c0_6 = arith.constant 0 : index
    %c0_7 = arith.constant 0 : index
    %11 = vector.load %arg4[%c0_6, %c0_7] : memref<256x512xbf16, #tpu.memory_space<vmem>>, vector<256x512xbf16>
    %cst_8 = arith.constant dense<0.000000e+00> : vector<16x512xf32>
    %12 = tpu.matmul %10, %11, %cst_8 {dimension_numbers = #tpu.dot_dimension_numbers<[1], [0], [0], [1], [0, 0, 1, 1], [], []>} : vector<16x256xbf16>, vector<256x512xbf16>, vector<16x512xf32> -> vector<16x512xf32>
    %c0_9 = arith.constant 0 : index
    %c0_10 = arith.constant 0 : index
    %13 = vector.load %arg5[%c0_9, %c0_10] : memref<1x512xf32, #tpu.memory_space<vmem>>, vector<1x512xf32>
    %14 = vector.broadcast %13 : vector<1x512xf32> to vector<16x512xf32>
    %15 = arith.addf %12, %14 : vector<16x512xf32>
    %cst_11 = arith.constant 2.000000e-01 : f32
    %16 = vector.broadcast %cst_11 : f32 to vector<16x512xf32>
    %17 = arith.mulf %16, %15 : vector<16x512xf32>
    %18 = arith.maximumf %15, %17 : vector<16x512xf32>
    %19 = arith.truncf %18 : vector<16x512xf32> to vector<16x512xbf16>
    %c0_12 = arith.constant 0 : index
    %c0_13 = arith.constant 0 : index
    %20 = vector.load %arg6[%c0_12, %c0_13] : memref<512x1024xbf16, #tpu.memory_space<vmem>>, vector<512x1024xbf16>
    %cst_14 = arith.constant dense<0.000000e+00> : vector<16x1024xf32>
    %21 = tpu.matmul %19, %20, %cst_14 {dimension_numbers = #tpu.dot_dimension_numbers<[1], [0], [0], [1], [0, 0, 1, 1], [], []>} : vector<16x512xbf16>, vector<512x1024xbf16>, vector<16x1024xf32> -> vector<16x1024xf32>
    %c0_15 = arith.constant 0 : index
    %c0_16 = arith.constant 0 : index
    %22 = vector.load %arg7[%c0_15, %c0_16] : memref<1x1024xf32, #tpu.memory_space<vmem>>, vector<1x1024xf32>
    %23 = vector.broadcast %22 : vector<1x1024xf32> to vector<16x1024xf32>
    %24 = arith.addf %21, %23 : vector<16x1024xf32>
    %cst_17 = arith.constant 2.000000e-01 : f32
    %25 = vector.broadcast %cst_17 : f32 to vector<16x1024xf32>
    %26 = arith.mulf %25, %24 : vector<16x1024xf32>
    %27 = arith.maximumf %24, %26 : vector<16x1024xf32>
    %28 = arith.truncf %27 : vector<16x1024xf32> to vector<16x1024xbf16>
    %c0_18 = arith.constant 0 : index
    %c0_19 = arith.constant 0 : index
    %29 = vector.load %arg8[%c0_18, %c0_19] : memref<1024x128xbf16, #tpu.memory_space<vmem>>, vector<1024x128xbf16>
    %cst_20 = arith.constant dense<0.000000e+00> : vector<16x128xf32>
    %30 = tpu.matmul %28, %29, %cst_20 {dimension_numbers = #tpu.dot_dimension_numbers<[1], [0], [0], [1], [0, 0, 1, 1], [], []>} : vector<16x1024xbf16>, vector<1024x128xbf16>, vector<16x128xf32> -> vector<16x128xf32>
    %c0_21 = arith.constant 0 : index
    %c0_22 = arith.constant 0 : index
    %31 = vector.load %arg9[%c0_21, %c0_22] : memref<1x128xf32, #tpu.memory_space<vmem>>, vector<1x128xf32>
    %32 = vector.broadcast %31 : vector<1x128xf32> to vector<16x128xf32>
    %33 = arith.addf %30, %32 : vector<16x128xf32>
    %34 = math.tanh %33 : vector<16x128xf32>
    %c0_23 = arith.constant 0 : index
    %c0_24 = arith.constant 0 : index
    %35 = vector.load %arg10[%c0_23, %c0_24] : memref<16x128xf32, #tpu.memory_space<vmem>>, vector<16x128xf32>
    tpu.vector_store %arg10[%c0_23, %c0_24], %34 {strides = array<i32>} : memref<16x128xf32, #tpu.memory_space<vmem>>, vector<16x128xf32>,
    return
  }
  func.func @transform_0(%arg0: i32) -> (i32, i32) {
    %c0_i32 = arith.constant 0 : i32
    %c0_i32_0 = arith.constant 0 : i32
    return %arg0, %c0_i32 : i32, i32
  }
  func.func @transform_1(%arg0: i32) -> (i32, i32) {
    %c0_i32 = arith.constant 0 : i32
    %c0_i32_0 = arith.constant 0 : i32
    %c0_i32_1 = arith.constant 0 : i32
    return %c0_i32, %c0_i32_0 : i32, i32
  }
  func.func @transform_2(%arg0: i32) -> (i32, i32) {
    %c0_i32 = arith.constant 0 : i32
    %c0_i32_0 = arith.constant 0 : i32
    %c0_i32_1 = arith.constant 0 : i32
    return %c0_i32, %c0_i32_0 : i32, i32
  }
  func.func @transform_3(%arg0: i32) -> (i32, i32) {
    %c0_i32 = arith.constant 0 : i32
    %c0_i32_0 = arith.constant 0 : i32
    %c0_i32_1 = arith.constant 0 : i32
    return %c0_i32, %c0_i32_0 : i32, i32
  }
  func.func @transform_4(%arg0: i32) -> (i32, i32) {
    %c0_i32 = arith.constant 0 : i32
    %c0_i32_0 = arith.constant 0 : i32
    %c0_i32_1 = arith.constant 0 : i32
    return %c0_i32, %c0_i32_0 : i32, i32
  }
  func.func @transform_5(%arg0: i32) -> (i32, i32) {
    %c0_i32 = arith.constant 0 : i32
    %c0_i32_0 = arith.constant 0 : i32
    %c0_i32_1 = arith.constant 0 : i32
    return %c0_i32, %c0_i32_0 : i32, i32
  }
  func.func @transform_6(%arg0: i32) -> (i32, i32) {
    %c0_i32 = arith.constant 0 : i32
    %c0_i32_0 = arith.constant 0 : i32
    %c0_i32_1 = arith.constant 0 : i32
    return %c0_i32, %c0_i32_0 : i32, i32
  }
  func.func @transform_7(%arg0: i32) -> (i32, i32) {
    %c0_i32 = arith.constant 0 : i32
    %c0_i32_0 = arith.constant 0 : i32
    %c0_i32_1 = arith.constant 0 : i32
    return %c0_i32, %c0_i32_0 : i32, i32
  }
  func.func @transform_8(%arg0: i32) -> (i32, i32) {
    %c0_i32 = arith.constant 0 : i32
    %c0_i32_0 = arith.constant 0 : i32
    %c0_i32_1 = arith.constant 0 : i32
    return %c0_i32, %c0_i32_0 : i32, i32
  }
  func.func @transform_9(%arg0: i32) -> (i32, i32) {
    %c0_i32 = arith.constant 0 : i32
    %c0_i32_0 = arith.constant 0 : i32
    return %arg0, %c0_i32 : i32, i32
  }
}

</mosaic_0001>

<bundles_post_ra>
// kernel: _generator_forward_impl.1
= control target key start
LH: loop header
LB: loop body
LE: loop exit
PB: predicated region body
PF: predicated region fallthrough
CT: control target
= control target key end

     0   :  { %14 = vsyncpa [#allocation3], 0  ;;  %s4590_s0 = inlined_call_operand.hbm [shape: f32[16,100], index: 0, kind: input, shape index: {}]   ;;  %s4591_s1 = inlined_call_operand.hbm [shape: bf16[100,256], index: 1, kind: input, shape index: {}]   ;;  %s4592_s2 = inlined_call_operand.vmem [shape: f32[1,256], index: 2, kind: input, shape index: {}]   ;;  %s4593_s3 = inlined_call_operand.hbm [shape: bf16[256,512], index: 3, kind: input, shape index: {}]   ;;  %s4594_s4 = inlined_call_operand.hbm [shape: f32[1,512], index: 4, kind: input, shape index: {}]   ;;  %s4595_s5 = inlined_call_operand.hbm [shape: bf16[512,1024], index: 5, kind: input, shape index: {}]   ;;  %s4596_s6 = inlined_call_operand.vmem [shape: f32[1,1024], index: 6, kind: input, shape index: {}]   ;;  %s4597_s7 = inlined_call_operand.hbm [shape: bf16[1024,128], index: 7, kind: input, shape index: {}]   ;;  %s4598_s8 = inlined_call_operand.vmem [shape: f32[1,128], index: 8, kind: input, shape index: {}]   ;;  %s4599_s9 = inlined_call_operand.hbm [shape: f32[16,128], index: 9, kind: output, shape index: {}]  }
   0x1   :  { %15 = vsyncpa [#allocation6], 0 }
   0x2   :  { %16 = vsyncpa [#allocation9], 0 }
   0x3   :  { %17 = vsyncpa [#allocation12], 0 }
   0x4   :  { %18 = vsyncpa [#allocation4], 0  ;;  %s4337_s30 = smov [#allocation5]   ;;  %s4338_s11 = smov [#allocation8]  }
   0x5   :  { %s36_s10 = sshll.u32 %s4337_s30, 4  ;;  %s63_s12 = sshll.u32 %s4338_s11, 4  ;;  %s37_s10 = int_to_ptr.vmem [resolvable:$true] %s36_s10  ;;  %s64_s12 = int_to_ptr.vmem [resolvable:$true] %s63_s12 }
   0x6   :  { %s4173_s15 = scalar_lea.hbm %s4591_s1, 1664 }
   0x7   :  { %p4174_p0 = scmp.ne.s32.totalorder %s4591_s1, %s4173_s15  ;;  %p4177_p1 = scmp.lt.u32.totalorder %s4173_s15, %s4591_s1 }
   0x9   :  { %p4179_p2 = pnand %p4177_p1, %p4174_p0 }
   0xb   :  { %4182 = shalt.err (!%p4179_p2)
}
   0xc   :  { %s4183_s20 = scalar_lea.vmem %s37_s10, 1664  ;;  %p4188_p4 = scmp.lt.s32.totalorder %s37_s10, %s37_s10 }
   0xd   :  { %p4184_p3 = scmp.ne.s32.totalorder %s37_s10, %s4183_s20  ;;  %p4189_p5 = scmp.lt.s32.totalorder %s4183_s20, %s4183_s20 }
   0xf   :  { %p4190_p6 = por %p4189_p5, %p4188_p4 }
  0x11   :  { %p4191_p7 = pnand %p4190_p6, %p4184_p3 }
  0x13   :  { %4194 = shalt.err (!%p4191_p7)
}
  0x14   :  { %s4339_s21 = smov 128   ;;  %s4340_s22 = smov 8  }
  0x15   :  { %42 = dma.hbm_to_vmem [thread:$0]  %s4591_s1, 1664, %s37_s10, [#allocation6], %s4339_s21, %s4339_s21, %s4340_s22  }
  0x16   :  { %s4195_s27 = scalar_lea.hbm %s4594_s4, 64 }
  0x17   :  { %p4196_p8 = scmp.ne.s32.totalorder %s4594_s4, %s4195_s27  ;;  %p4199_p9 = scmp.lt.u32.totalorder %s4195_s27, %s4594_s4 }
  0x19   :  { %p4201_p10 = pnand %p4199_p9, %p4196_p8 }
  0x1b   :  { %4204 = shalt.err (!%p4201_p10)
}
  0x1c   :  { %s4205_s13 = scalar_lea.vmem %s64_s12, 64  ;;  %p4210_p12 = scmp.lt.s32.totalorder %s64_s12, %s64_s12 }
  0x1d   :  { %p4206_p11 = scmp.ne.s32.totalorder %s64_s12, %s4205_s13  ;;  %p4211_p13 = scmp.lt.s32.totalorder %s4205_s13, %s4205_s13 }
  0x1f   :  { %p4212_p0 = por %p4211_p13, %p4210_p12 }
  0x21   :  { %p4213_p1 = pnand %p4212_p0, %p4206_p11 }
  0x23   :  { %4216 = shalt.err (!%p4213_p1)
}
  0x24   :  { %66 = dma.hbm_to_vmem [thread:$0]  %s4594_s4, 64, %s64_s12, [#allocation9]  }
  0x25   :  { %s4341_s14 = smov [#allocation2]   ;;  %s4342_s16 = smov [#allocation7]  }
  0x26   :  { %s24_s15 = sshll.u32 %s4341_s14, 4  ;;  %s50_s17 = sshll.u32 %s4342_s16, 4  ;;  %s25_s15 = int_to_ptr.vmem [resolvable:$true] %s24_s15  ;;  %s4430_s17 = int_to_ptr.vmem [resolvable:$true] %s50_s17 }
  0x27   :  { %s4217_s20 = scalar_lea.hbm %s4590_s0, 256 }
  0x28   :  { %p4218_p2 = scmp.ne.s32.totalorder %s4590_s0, %s4217_s20  ;;  %p4221_p3 = scmp.lt.u32.totalorder %s4217_s20, %s4590_s0 }
  0x2a   :  { %p4223_p4 = pnand %p4221_p3, %p4218_p2 }
  0x2c   :  { %4226 = shalt.err (!%p4223_p4)
}
  0x2d   :  { %s4227_s4 = scalar_lea.vmem %s25_s15, 256  ;;  %p4232_p6 = scmp.lt.s32.totalorder %s25_s15, %s25_s15 }
  0x2e   :  { %p4228_p5 = scmp.ne.s32.totalorder %s25_s15, %s4227_s4  ;;  %p4233_p7 = scmp.lt.s32.totalorder %s4227_s4, %s4227_s4 }
  0x30   :  { %p4234_p8 = por %p4233_p7, %p4232_p6 }
  0x32   :  { %p4235_p9 = pnand %p4234_p8, %p4228_p5 }
  0x34   :  { %4238 = shalt.err (!%p4235_p9)
}
  0x35   :  { %30 = dma.hbm_to_vmem [thread:$0]  %s4590_s0, 256, %s25_s15, [#allocation3], %s4339_s21, %s4339_s21, %s4340_s22  }
  0x36   :  { %s4239_s30 = scalar_lea.hbm %s4593_s3, 8192 }
  0x37   :  { %p4240_p10 = scmp.ne.s32.totalorder %s4593_s3, %s4239_s30  ;;  %p4243_p11 = scmp.lt.u32.totalorder %s4239_s30, %s4593_s3 }
  0x39   :  { %p4245_p12 = pnand %p4243_p11, %p4240_p10 }
  0x3b   :  { %4248 = shalt.err (!%p4245_p12)
}
  0x3c   :  { %s4249_s14 = scalar_lea.vmem %s4430_s17, 8192  ;;  %p4254_p0 = scmp.lt.s32.totalorder %s4430_s17, %s4430_s17 }
  0x3d   :  { %p4250_p13 = scmp.ne.s32.totalorder %s4430_s17, %s4249_s14  ;;  %p4255_p1 = scmp.lt.s32.totalorder %s4249_s14, %s4249_s14 }
  0x3f   :  { %p4256_p2 = por %p4255_p1, %p4254_p0 }
  0x41   :  { %p4257_p3 = pnand %p4256_p2, %p4250_p13 }
  0x43   :  { %4260 = shalt.err (!%p4257_p3)
}
  0x44   :  { %s4343_s0 = smov 256   ;;  %s4344_s15 = smov 16  }
  0x45   :  { %56 = dma.hbm_to_vmem [thread:$0]  %s4593_s3, 8192, %s4430_s17, [#allocation6], %s4343_s0, %s4343_s0, %s4344_s15  }
  0x46   :  { %s4345_s19 = smov [#allocation10]   ;;  %s4261_s25 = scalar_lea.hbm %s4595_s5, 32768 }
  0x47   :  { %s72_s20 = sshll.u32 %s4345_s19, 4  ;;  %p4262_p4 = scmp.ne.s32.totalorder %s4595_s5, %s4261_s25  ;;  %s73_s20 = int_to_ptr.vmem [resolvable:$true] %s72_s20 }
  0x48   :  { %p4265_p5 = scmp.lt.u32.totalorder %s4261_s25, %s4595_s5 }
  0x4a   :  { %p4267_p6 = pnand %p4265_p5, %p4262_p4 }
  0x4c   :  { %4270 = shalt.err (!%p4267_p6)
}
  0x4d   :  { %s4271_s28 = scalar_lea.vmem %s73_s20, 32768  ;;  %p4276_p8 = scmp.lt.s32.totalorder %s73_s20, %s73_s20 }
  0x4e   :  { %p4272_p7 = scmp.ne.s32.totalorder %s73_s20, %s4271_s28  ;;  %p4277_p9 = scmp.lt.s32.totalorder %s4271_s28, %s4271_s28 }
  0x50   :  { %p4278_p10 = por %p4277_p9, %p4276_p8 }
  0x52   :  { %p4279_p11 = pnand %p4278_p10, %p4272_p7 }
  0x54   :  { %4282 = shalt.err (!%p4279_p11)
}
  0x55   :  { %s4346_s3 = smov 512   ;;  %s4347_s17 = smov 32  }
  0x56   :  { %78 = dma.hbm_to_vmem [thread:$0]  %s4595_s5, 32768, %s73_s20, [#allocation9], %s4346_s3, %s4346_s3, %s4347_s17  }
  0x57   :  { %s4348_s11 = smov [#allocation11]   ;;  %s4283_s14 = scalar_lea.hbm %s4597_s7, 8192 }
  0x58   :  { %s86_s13 = sshll.u32 %s4348_s11, 4  ;;  %p4284_p12 = scmp.ne.s32.totalorder %s4597_s7, %s4283_s14  ;;  %s87_s13 = int_to_ptr.vmem [resolvable:$true] %s86_s13 }
  0x59   :  { %p4287_p13 = scmp.lt.u32.totalorder %s4283_s14, %s4597_s7 }
  0x5b   :  { %p4289_p0 = pnand %p4287_p13, %p4284_p12 }
  0x5d   :  { %4292 = shalt.err (!%p4289_p0)
}
  0x5e   :  { %s4293_s19 = scalar_lea.vmem %s87_s13, 8192  ;;  %p4298_p2 = scmp.lt.s32.totalorder %s87_s13, %s87_s13 }
  0x5f   :  { %p4294_p1 = scmp.ne.s32.totalorder %s87_s13, %s4293_s19  ;;  %p4299_p3 = scmp.lt.s32.totalorder %s4293_s19, %s4293_s19 }
  0x61   :  { %p4300_p4 = por %p4299_p3, %p4298_p2 }
  0x63   :  { %p4301_p5 = pnand %p4300_p4, %p4294_p1 }
  0x65   :  { %4304 = shalt.err (!%p4301_p5)
}
  0x66   :  { %s4349_s5 = smov 64   ;;  %s4350_s20 = smov 4  }
  0x67   :  { %92 = dma.hbm_to_vmem [thread:$0]  %s4597_s7, 8192, %s87_s13, [#allocation12], %s4349_s5, %s4349_s5, %s4350_s20  }
  0x68   :  { %4327 = dma.done.wait [#allocation3], 256  }
  0x69   :  { %4328 = vsyncadd [#allocation3], 4294967040 }
  0x6a   :  { %4329 = dma.done.wait [#allocation6], 9856  }
  0x6b   :  { %4330 = vsyncadd [#allocation6], 4294957440 }
  0x6c   :  { %4331 = dma.done.wait [#allocation9], 32832  }
  0x6d   :  { %4332 = vsyncadd [#allocation9], 4294934464 }
  0x6e   :  { %4333 = dma.done.wait [#allocation12], 8192  }
  0x6f   :  { %4334 = vsyncadd [#allocation12], 4294959104  ;;  %v4351_v0 = vmov 0   ;;  %v3989_v1 = vld [vmem:[#allocation5 + $0x4] ss:$8 sps:$4 sm:$0xff]   ;;  %vm211_vm0 = vcmask 1041408  }
  0x70   :  { %250 = vmatprep.mubr.bf16.mxu0 %v4351_v0  ;;  %v3991_v2 = vld [vmem:[#allocation5] ss:$8 sps:$4 sm:$0xff]   ;;  %218 = vmatprep.subr.bf16.mxu0 %v3989_v1  ;;  %v3992_v3 = vld [vmem:[#allocation5 + $0x14] ss:$8 sps:$4 sm:$0xff]   ;;  %v3994_v4 = vld [vmem:[#allocation5 + $0x10] ss:$8 sps:$4 sm:$0xff]  }
  0x71   :  { %219 = vmatpush1.bf16.msra.mxu0 %v3991_v2  ;;  %v3995_v5 = vld [vmem:[#allocation5 + $0x24] ss:$8 sps:$4 sm:$0xff]   ;;  %v3997_v6 = vld [vmem:[#allocation5 + $0x20] ss:$8 sps:$4 sm:$0xff]   ;;  %v3998_v7 = vld [vmem:[#allocation5 + $0x34] ss:$8 sps:$4 sm:$0xff]  }
  0x72   :  { %220 = vmatprep.subr.bf16.mxu0 %v3992_v3  ;;  %v4009_v8 = vld [vmem:[#allocation7 + $0x4] ss:$16 sps:$4 sm:$0xff]   ;;  %v4000_v9 = vld [vmem:[#allocation5 + $0x30] ss:$8 sps:$4 sm:$0xff]   ;;  %v4003_v13 = vld [vmem:[#allocation5 + $0x40] ss:$8 sps:$4 sm:$0xff]  }
  0x73   :  { %v4001_v10 = vld [vmem:[#allocation5 + $0x44] ss:$8 sps:$4 sm:$0xff]   ;;  %677 = vmatprep.subr.bf16.mxu1 %v4009_v8  ;;  %v4014_v11 = vld [vmem:[#allocation7] ss:$16 sps:$4 sm:$0xff]   ;;  %v4004_v16 = vld [vmem:[#allocation5 + $0x54] ss:$8 sps:$4 sm:$0xff]  }
  0x74   :  { %v4015_v12 = vld [vmem:[#allocation7 + $0x24] ss:$16 sps:$4 sm:$0xff]   ;;  %678 = vmatpush1.bf16.msra.mxu1 %v4014_v11  ;;  %v4020_v14 = vld [vmem:[#allocation7 + $0x20] ss:$16 sps:$4 sm:$0xff]   ;;  %v129_v17 = vld [vmem:[#allocation5 + $0x60] sm:$0x33] }
  0x75   :  { %221 = vmatpush1.bf16.msra.mxu0 %v3994_v4  ;;  %679 = vmatprep.subr.bf16.mxu1 %v4015_v12  ;;  %v4021_v15 = vld [vmem:[#allocation7 + $0x44] ss:$16 sps:$4 sm:$0xff]   ;;  %v4026_v18 = vld [vmem:[#allocation7 + $0x40] ss:$16 sps:$4 sm:$0xff]   ;;  %v3465_v21 = vcombine.high %v129_v17, %v129_v17  ;;  %v3464_v22 = vcombine.low %v129_v17, %v129_v17  ;;  %v114_v23 = vld [vmem:[#allocation2] sm:$0xff]  ;;  %vm207_vm1 = vcmask 818176  }
  0x76   :  { %222 = vmatprep.subr.bf16.mxu0 %v3995_v5  ;;  %v4027_v19 = vld [vmem:[#allocation7 + $0x64] ss:$16 sps:$4 sm:$0xff]   ;;  %v4006_v20 = vld [vmem:[#allocation5 + $0x50] ss:$8 sps:$4 sm:$0xff]   ;;  %v4013_v28 = vld [vmem:[#allocation7 + $0xc] ss:$16 sps:$4 sm:$0xff]  }
  0x77   :  { %v4032_v24 = vld [vmem:[#allocation7 + $0x60] ss:$16 sps:$4 sm:$0xff]   ;;  %v4033_v25 = vld [vmem:[#allocation7 + $0x84] ss:$16 sps:$4 sm:$0xff]   ;;  %v213_v27 = vsel %vm211_vm0, %v3464_v22, 0 }
  0x78   :  { %680 = vmatpush1.bf16.msra.mxu1 %v4020_v14  ;;  %v115_v26 = vld [vmem:[#allocation2 + $0x8] sm:$0xff]  ;;  %v4011_v32 = vld [vmem:[#allocation7 + $0x8] ss:$16 sps:$4 sm:$0xff]   ;;  %v4019_v33 = vld [vmem:[#allocation7 + $0x2c] ss:$16 sps:$4 sm:$0xff]  }
  0x79   :  { %223 = vmatpush1.bf16.msra.mxu0 %v3997_v6  ;;  %681 = vmatprep.subr.bf16.mxu1 %v4021_v15  ;;  %v4038_v29 = vld [vmem:[#allocation7 + $0x80] ss:$16 sps:$4 sm:$0xff]   ;;  %v116_v30 = vpack.c.bf16 %v115_v26, %v114_v23  ;;  %v4039_v31 = vld [vmem:[#allocation7 + $0xa4] ss:$16 sps:$4 sm:$0xff]   ;;  %v4017_v36 = vld [vmem:[#allocation7 + $0x28] ss:$16 sps:$4 sm:$0xff]  }
  0x7a   :  { %224 = vmatprep.subr.bf16.mxu0 %v3998_v7  ;;  %v4044_v34 = vld [vmem:[#allocation7 + $0xa0] ss:$16 sps:$4 sm:$0xff]   ;;  %v4045_v35 = vld [vmem:[#allocation7 + $0xc4] ss:$16 sps:$4 sm:$0xff]   ;;  %v4025_v37 = vld [vmem:[#allocation7 + $0x4c] ss:$16 sps:$4 sm:$0xff]  }
  0x7b   :  { %v4050_v38 = vld [vmem:[#allocation7 + $0xc0] ss:$16 sps:$4 sm:$0xff]   ;;  %v4051_v39 = vld [vmem:[#allocation7 + $0xe4] ss:$16 sps:$4 sm:$0xff]   ;;  %v4023_v40 = vld [vmem:[#allocation7 + $0x48] ss:$16 sps:$4 sm:$0xff]  }
  0x7c   :  { %682 = vmatpush1.bf16.msra.mxu1 %v4026_v18  ;;  %v4031_v41 = vld [vmem:[#allocation7 + $0x6c] ss:$16 sps:$4 sm:$0xff]   ;;  %v4056_v42 = vld [vmem:[#allocation7 + $0xe0] ss:$16 sps:$4 sm:$0xff]   ;;  %v4057_v43 = vld [vmem:[#allocation7 + $0x104] ss:$16 sps:$4 sm:$0xff]  }
  0x7d   :  { %225 = vmatpush1.bf16.msra.mxu0 %v4000_v9  ;;  %683 = vmatprep.subr.bf16.mxu1 %v4027_v19  ;;  %v4029_v44 = vld [vmem:[#allocation7 + $0x68] ss:$16 sps:$4 sm:$0xff]   ;;  %v4037_v45 = vld [vmem:[#allocation7 + $0x8c] ss:$16 sps:$4 sm:$0xff]   ;;  %v4062_v46 = vld [vmem:[#allocation7 + $0x100] ss:$16 sps:$4 sm:$0xff]  }
  0x7e   :  { %226 = vmatprep.subr.bf16.mxu0 %v4001_v10  ;;  %v4063_v47 = vld [vmem:[#allocation7 + $0x124] ss:$16 sps:$4 sm:$0xff]   ;;  %v4035_v48 = vld [vmem:[#allocation7 + $0x88] ss:$16 sps:$4 sm:$0xff]   ;;  %v4043_v49 = vld [vmem:[#allocation7 + $0xac] ss:$16 sps:$4 sm:$0xff]  }
  0x7f   :  { %v4068_v50 = vld [vmem:[#allocation7 + $0x120] ss:$16 sps:$4 sm:$0xff]   ;;  %v4069_v51 = vld [vmem:[#allocation7 + $0x144] ss:$16 sps:$4 sm:$0xff]   ;;  %v4041_v52 = vld [vmem:[#allocation7 + $0xa8] ss:$16 sps:$4 sm:$0xff]  }
  0x80   :  { %684 = vmatpush1.bf16.msra.mxu1 %v4032_v24  ;;  %v4049_v53 = vld [vmem:[#allocation7 + $0xcc] ss:$16 sps:$4 sm:$0xff]   ;;  %v4074_v54 = vld [vmem:[#allocation7 + $0x140] ss:$16 sps:$4 sm:$0xff]   ;;  %v4075_v55 = vld [vmem:[#allocation7 + $0x164] ss:$16 sps:$4 sm:$0xff]  }
  0x81   :  { %227 = vmatpush1.bf16.msra.mxu0 %v4003_v13  ;;  %685 = vmatprep.subr.bf16.mxu1 %v4033_v25  ;;  %v4047_v56 = vld [vmem:[#allocation7 + $0xc8] ss:$16 sps:$4 sm:$0xff]   ;;  %v4055_v57 = vld [vmem:[#allocation7 + $0xec] ss:$16 sps:$4 sm:$0xff]   ;;  %v4080_v58 = vld [vmem:[#allocation7 + $0x160] ss:$16 sps:$4 sm:$0xff]  }
  0x82   :  { %228 = vmatprep.subr.bf16.mxu0 %v4004_v16  ;;  %v4081_v59 = vld [vmem:[#allocation7 + $0x184] ss:$16 sps:$4 sm:$0xff]   ;;  %v4053_v60 = vld [vmem:[#allocation7 + $0xe8] ss:$16 sps:$4 sm:$0xff]   ;;  %v4061_v61 = vld [vmem:[#allocation7 + $0x10c] ss:$16 sps:$4 sm:$0xff]  }
  0x83   :  { %v4086_v62 = vld [vmem:[#allocation7 + $0x180] ss:$16 sps:$4 sm:$0xff]   ;;  %v4059_v63 = vld [vmem:[#allocation7 + $0x108] ss:$16 sps:$4 sm:$0xff]   ;;  %v4067_v0 = vld [vmem:[#allocation7 + $0x12c] ss:$16 sps:$4 sm:$0xff]  }
  0x84   :  { %686 = vmatpush1.bf16.msra.mxu1 %v4038_v29  ;;  %v4065_v1 = vld [vmem:[#allocation7 + $0x128] ss:$16 sps:$4 sm:$0xff]   ;;  %v4073_v2 = vld [vmem:[#allocation7 + $0x14c] ss:$16 sps:$4 sm:$0xff]   ;;  %v4087_v8 = vld [vmem:[#allocation7 + $0x1a4] ss:$16 sps:$4 sm:$0xff]  }
  0x85   :  { %229 = vmatpush1.bf16.msra.mxu0 %v4006_v20  ;;  %687 = vmatprep.subr.bf16.mxu1 %v4039_v31  ;;  %v4071_v3 = vld [vmem:[#allocation7 + $0x148] ss:$16 sps:$4 sm:$0xff]   ;;  %v4079_v4 = vld [vmem:[#allocation7 + $0x16c] ss:$16 sps:$4 sm:$0xff]   ;;  %v4092_v11 = vld [vmem:[#allocation7 + $0x1a0] ss:$16 sps:$4 sm:$0xff]  }
  0x86   :  { %3466 = vmatprep.subr.msk.bf16.mxu0 %vm211_vm0, %v3465_v21  ;;  %v4077_v5 = vld [vmem:[#allocation7 + $0x168] ss:$16 sps:$4 sm:$0xff]   ;;  %v4085_v6 = vld [vmem:[#allocation7 + $0x18c] ss:$16 sps:$4 sm:$0xff]   ;;  %v4093_v12 = vld [vmem:[#allocation7 + $0x1c4] ss:$16 sps:$4 sm:$0xff]  }
  0x87   :  { %v4083_v7 = vld [vmem:[#allocation7 + $0x188] ss:$16 sps:$4 sm:$0xff]   ;;  %v4091_v9 = vld [vmem:[#allocation7 + $0x1ac] ss:$16 sps:$4 sm:$0xff]   ;;  %v4098_v15 = vld [vmem:[#allocation7 + $0x1c0] ss:$16 sps:$4 sm:$0xff]  }
  0x88   :  { %688 = vmatpush1.bf16.msra.mxu1 %v4044_v34  ;;  %v4089_v10 = vld [vmem:[#allocation7 + $0x1a8] ss:$16 sps:$4 sm:$0xff]   ;;  %v4097_v13 = vld [vmem:[#allocation7 + $0x1cc] ss:$16 sps:$4 sm:$0xff]   ;;  %v4099_v16 = vld [vmem:[#allocation7 + $0x1e4] ss:$16 sps:$4 sm:$0xff]  }
  0x89   :  { %231 = vmatpush1.bf16.msra.mxu0 %v213_v27  ;;  %689 = vmatprep.subr.bf16.mxu1 %v4045_v35  ;;  %v4095_v14 = vld [vmem:[#allocation7 + $0x1c8] ss:$16 sps:$4 sm:$0xff]   ;;  %v4103_v17 = vld [vmem:[#allocation7 + $0x1ec] ss:$16 sps:$4 sm:$0xff]   ;;  %v4104_v19 = vld [vmem:[#allocation7 + $0x1e0] ss:$16 sps:$4 sm:$0xff]  }
  0x8a   :  { %720 = vmatprep.subr.bf16.mxu0 %v4013_v28  ;;  %v4101_v18 = vld [vmem:[#allocation7 + $0x1e8] ss:$16 sps:$4 sm:$0xff]   ;;  %v784_v22 = vld [vmem:[#allocation10 + $0x8] sm:$0xff]  ;;  %v132_v28 = vlaneseq }
  0x8b   :  { %v783_v20 = vld [vmem:[#allocation10] sm:$0xff]  ;;  %v788_v25 = vld [vmem:[#allocation10 + $0x28] sm:$0xff] }
  0x8c   :  { %3467 = vmatmul.mubr.msk.bf16.vlgmr.msra.gmra.mrb[0].mxu0 %vm207_vm1, %v116_v30  ;;  %690 = vmatpush1.bf16.msra.mxu1 %v4050_v38  ;;  %v787_v21 = vld [vmem:[#allocation10 + $0x20] sm:$0xff]  ;;  %v3534_v26 = vcombine.low %v784_v22, %v788_v25  ;;  %v3535_v27 = vcombine.high %v784_v22, %v788_v25  ;;  %v4488_v29 = vshrl.u32 %v132_v28, 7  ;;  %v828_v22 = vld [vmem:[#allocation10 + $0x168] sm:$0xff] }
  0x8d   :  { %721 = vmatpush1.bf16.msra.mxu0 %v4011_v32  ;;  %691 = vmatprep.subr.bf16.mxu1 %v4051_v39  ;;  %v3532_v23 = vcombine.low %v783_v20, %v787_v21  ;;  %v3533_v24 = vcombine.high %v783_v20, %v787_v21  ;;  %v130_v31 = vld [vmem:[%s4592_s2] sm:$0x3]  ;;  %v824_v21 = vld [vmem:[#allocation10 + $0x148] sm:$0xff] }
  0x8e   :  { %722 = vmatprep.subr.bf16.mxu0 %v4019_v33  ;;  %v4491_v30 = vsub.s32 0, %v4488_v29  ;;  %v4497_v32 = vsub.s32 1, %v4488_v29  ;;  %v827_v20 = vld [vmem:[#allocation10 + $0x160] sm:$0xff] }
  0x8f   :  { %v835_v28 = vld [vmem:[#allocation10 + $0x1a0] sm:$0xff] }
  0x90   :  { %692 = vmatpush1.bf16.msra.mxu1 %v4056_v42  ;;  %v135_v33 = vrot.slane %v130_v31, %v4491_v30  ;;  %v139_v34 = vrot.slane %v130_v31, %v4497_v32  ;;  %v832_v31 = vld [vmem:[#allocation10 + $0x188] sm:$0xff] }
  0x91   :  { %723 = vmatpush1.bf16.msra.mxu0 %v4017_v36  ;;  %693 = vmatprep.subr.bf16.mxu1 %v4057_v43 }
  0x92   :  { %724 = vmatprep.subr.bf16.mxu0 %v4025_v37 }
  0x94   :  { %694 = vmatpush1.bf16.msra.mxu1 %v4062_v46 }
  0x95   :  { %725 = vmatpush1.bf16.msra.mxu0 %v4023_v40  ;;  %695 = vmatprep.subr.bf16.mxu1 %v4063_v47 }
  0x96   :  { %726 = vmatprep.subr.bf16.mxu0 %v4031_v41 }
  0x98   :  { %696 = vmatpush1.bf16.msra.mxu1 %v4068_v50 }
  0x99   :  { %727 = vmatpush1.bf16.msra.mxu0 %v4029_v44  ;;  %697 = vmatprep.subr.bf16.mxu1 %v4069_v51 }
  0x9a   :  { %728 = vmatprep.subr.bf16.mxu0 %v4037_v45 }
  0x9c   :  { %698 = vmatpush1.bf16.msra.mxu1 %v4074_v54  ;;  %v796_v54 = vld [vmem:[#allocation10 + $0x68] sm:$0xff] }
  0x9d   :  { %729 = vmatpush1.bf16.msra.mxu0 %v4035_v48  ;;  %699 = vmatprep.subr.bf16.mxu1 %v4075_v55 }
  0x9e   :  { %730 = vmatprep.subr.bf16.mxu0 %v4043_v49  ;;  %v791_v49 = vld [vmem:[#allocation10 + $0x40] sm:$0xff] }
  0xa0   :  { %700 = vmatpush1.bf16.msra.mxu1 %v4080_v58 }
  0xa1   :  { %731 = vmatpush1.bf16.msra.mxu0 %v4041_v52  ;;  %701 = vmatprep.subr.bf16.mxu1 %v4081_v59  ;;  %v795_v52 = vld [vmem:[#allocation10 + $0x60] sm:$0xff] }
  0xa2   :  { %732 = vmatprep.subr.bf16.mxu0 %v4049_v53  ;;  %v792_v53 = vld [vmem:[#allocation10 + $0x48] sm:$0xff]  ;;  %v799_v59 = vld [vmem:[#allocation10 + $0x80] sm:$0xff] }
  0xa3   :  { %v3543_v58 = vcombine.high %v792_v53, %v796_v54 }
  0xa4   :  { %702 = vmatpush1.bf16.msra.mxu1 %v4086_v62  ;;  %v804_v62 = vld [vmem:[#allocation10 + $0xa8] sm:$0xff] }
  0xa5   :  { %733 = vmatpush1.bf16.msra.mxu0 %v4047_v56  ;;  %703 = vmatprep.subr.bf16.mxu1 %v4087_v8 }
  0xa6   :  { %734 = vmatprep.subr.bf16.mxu0 %v4055_v57  ;;  %v3541_v57 = vcombine.high %v791_v49, %v795_v52 }
  0xa8   :  { %704 = vmatpush1.bf16.msra.mxu1 %v4092_v11  ;;  %v815_v11 = vld [vmem:[#allocation10 + $0x100] sm:$0xff] }
  0xa9   :  { %735 = vmatpush1.bf16.msra.mxu0 %v4053_v60  ;;  %705 = vmatprep.subr.bf16.mxu1 %v4093_v12  ;;  %v803_v60 = vld [vmem:[#allocation10 + $0xa0] sm:$0xff] }
  0xaa   :  { %736 = vmatprep.subr.bf16.mxu0 %v4061_v61  ;;  %v800_v61 = vld [vmem:[#allocation10 + $0x88] sm:$0xff]  ;;  %v819_v12 = vld [vmem:[#allocation10 + $0x120] sm:$0xff] }
  0xab   :  { %v3550_v8 = vcombine.low %v800_v61, %v804_v62 }
  0xac   :  { %706 = vmatpush1.bf16.msra.mxu1 %v4098_v15 }
  0xad   :  { %737 = vmatpush1.bf16.msra.mxu0 %v4059_v63  ;;  %707 = vmatprep.subr.bf16.mxu1 %v4099_v16  ;;  %v3540_v63 = vcombine.low %v791_v49, %v795_v52  ;;  %v852_v49 = vld [vmem:[#allocation10 + $0x228] sm:$0xff] }
  0xae   :  { %738 = vmatprep.subr.bf16.mxu0 %v4067_v0  ;;  %v3542_v0 = vcombine.low %v792_v53, %v796_v54  ;;  %v855_v54 = vld [vmem:[#allocation10 + $0x240] sm:$0xff] }
  0xb0   :  { %708 = vmatpush1.bf16.msra.mxu1 %v4104_v19  ;;  %v823_v19 = vld [vmem:[#allocation10 + $0x140] sm:$0xff] }
  0xb1   :  { %739 = vmatpush1.bf16.msra.mxu0 %v4065_v1  ;;  %2361 = vmatprep.subr.bf16.mxu1 %v3533_v24  ;;  %v3549_v1 = vcombine.high %v799_v59, %v803_v60  ;;  %v3573_v25 = vcombine.high %v823_v19, %v827_v20 }
  0xb2   :  { %740 = vmatprep.subr.bf16.mxu0 %v4073_v2  ;;  %v3551_v2 = vcombine.high %v800_v61, %v804_v62  ;;  %v863_v62 = vld [vmem:[#allocation10 + $0x280] sm:$0xff] }
  0xb5   :  { %741 = vmatpush1.bf16.msra.mxu0 %v4071_v3  ;;  %v807_v3 = vld [vmem:[#allocation10 + $0xc0] sm:$0xff] }
  0xb6   :  { %742 = vmatprep.subr.bf16.mxu0 %v4079_v4  ;;  %v811_v4 = vld [vmem:[#allocation10 + $0xe0] sm:$0xff] }
  0xb7   :  { %v3556_v15 = vcombine.low %v807_v3, %v811_v4 }
  0xb9   :  { %743 = vmatpush1.bf16.msra.mxu0 %v4077_v5  ;;  %v808_v5 = vld [vmem:[#allocation10 + $0xc8] sm:$0xff] }
  0xba   :  { %744 = vmatprep.subr.bf16.mxu0 %v4085_v6  ;;  %v812_v6 = vld [vmem:[#allocation10 + $0xe8] sm:$0xff] }
  0xbb   :  { %v3558_v16 = vcombine.low %v808_v5, %v812_v6 }
  0xbd   :  { %745 = vmatpush1.bf16.msra.mxu0 %v4083_v7  ;;  %v3548_v7 = vcombine.low %v799_v59, %v803_v60 }
  0xbe   :  { %746 = vmatprep.subr.bf16.mxu0 %v4091_v9  ;;  %v3557_v9 = vcombine.high %v807_v3, %v811_v4 }
  0xc1   :  { %747 = vmatpush1.bf16.msra.mxu0 %v4089_v10  ;;  %v3559_v10 = vcombine.high %v808_v5, %v812_v6  ;;  %v871_v6 = vld [vmem:[#allocation10 + $0x2c0] sm:$0xff] }
  0xc2   :  { %748 = vmatprep.subr.bf16.mxu0 %v4097_v13  ;;  %v816_v13 = vld [vmem:[#allocation10 + $0x108] sm:$0xff] }
  0xc5   :  { %749 = vmatpush1.bf16.msra.mxu0 %v4095_v14  ;;  %v820_v14 = vld [vmem:[#allocation10 + $0x128] sm:$0xff] }
  0xc6   :  { %750 = vmatprep.subr.bf16.mxu0 %v4103_v17  ;;  %v3565_v17 = vcombine.high %v815_v11, %v819_v12  ;;  %v3566_v24 = vcombine.low %v816_v13, %v820_v14 }
  0xc9   :  { %751 = vmatpush1.bf16.msra.mxu0 %v4101_v18  ;;  %v3567_v18 = vcombine.high %v816_v13, %v820_v14  ;;  %v879_v14 = vld [vmem:[#allocation10 + $0x300] sm:$0xff] }
  0xca   :  { %2447 = vmatprep.subr.bf16.mxu0 %v3535_v27  ;;  %v831_v27 = vld [vmem:[#allocation10 + $0x180] sm:$0xff] }
 0x15f   :  { %v252_v35 = vpop.f32.mrb[0].mxu0 }
 0x160   :  { %v253_v36 = vadd.f32 %v252_v35, %v135_v33  ;;  %v254_v37 = vpop.f32.mrb[1].mxu0  ;;  %v3574_v35 = vcombine.low %v824_v21, %v828_v22 }
 0x161   :  { %v255_v38 = vadd.f32 %v254_v37, %v139_v34  ;;  %v256_v39 = vpop.f32.mrb[2].mxu0 }
 0x162   :  { %v261_v40 = vmul.f32 0.2, %v253_v36  ;;  %v257_v41 = vadd.f32 %v256_v39, %v135_v33  ;;  %v258_v42 = vpop.f32.mrb[3].mxu0  ;;  %v836_v33 = vld [vmem:[#allocation10 + $0x1a8] sm:$0xff]  ;;  %v843_v39 = vld [vmem:[#allocation10 + $0x1e0] sm:$0xff] }
 0x163   :  { %v262_v43 = vmul.f32 0.2, %v255_v38  ;;  %v259_v44 = vadd.f32 %v258_v42, %v139_v34  ;;  %v3572_v34 = vcombine.low %v823_v19, %v827_v20  ;;  %v3583_v37 = vcombine.high %v832_v31, %v836_v33 }
 0x164   :  { %v263_v45 = vmul.f32 0.2, %v257_v41  ;;  %v265_v47 = vmax.f32 %v253_v36, %v261_v40  ;;  %v3581_v36 = vcombine.high %v831_v27, %v835_v28  ;;  %v840_v40 = vld [vmem:[#allocation10 + $0x1c8] sm:$0xff]  ;;  %v3580_v42 = vcombine.low %v831_v27, %v835_v28 }
 0x165   :  { %v264_v46 = vmul.f32 0.2, %v259_v44  ;;  %v266_v50 = vmax.f32 %v255_v38, %v262_v43  ;;  %v839_v38 = vld [vmem:[#allocation10 + $0x1c0] sm:$0xff]  ;;  %v3582_v43 = vcombine.low %v832_v31, %v836_v33  ;;  %v892_v28 = vld [vmem:[#allocation10 + $0x368] sm:$0xff] }
 0x166   :  { %v267_v48 = vmax.f32 %v257_v41, %v263_v45  ;;  %v844_v41 = vld [vmem:[#allocation10 + $0x1e8] sm:$0xff] }
 0x167   :  { %v268_v51 = vmax.f32 %v259_v44, %v264_v46  ;;  %v3589_v44 = vcombine.high %v839_v38, %v843_v39  ;;  %v3591_v45 = vcombine.high %v840_v40, %v844_v41  ;;  %v847_v46 = vld [vmem:[#allocation10 + $0x200] sm:$0xff] }
 0x168   :  { %v269_v55 = vpack.c.bf16 %v267_v48, %v265_v47  ;;  %v851_v47 = vld [vmem:[#allocation10 + $0x220] sm:$0xff]  ;;  %v848_v48 = vld [vmem:[#allocation10 + $0x208] sm:$0xff] }
 0x169   :  { %v270_v56 = vpack.c.bf16 %v268_v51, %v266_v50  ;;  %v3588_v50 = vcombine.low %v839_v38, %v843_v39  ;;  %v3590_v51 = vcombine.low %v840_v40, %v844_v41  ;;  %v3597_v52 = vcombine.high %v847_v46, %v851_v47  ;;  %v900_v39 = vld [vmem:[#allocation10 + $0x3a8] sm:$0xff] }
 0x16a   :  { %v3599_v53 = vcombine.high %v848_v48, %v852_v49  ;;  %v3598_v59 = vcombine.low %v848_v48, %v852_v49 }
 0x16b   :  { %709 = vmatprep.mubr.bf16.mxu1 %v270_v56  ;;  %752 = vmatprep.mubr.bf16.mxu0 %v270_v56  ;;  %v856_v56 = vld [vmem:[#allocation10 + $0x248] sm:$0xff] }
 0x16c   :  { %710 = vmatmul.mubr.bf16.vlgmr.msra.gmra.mrb[0].mxu1 %v269_v55  ;;  %753 = vmatmul.mubr.bf16.vlgmr.msra.gmra.mrb[4].mxu0 %v269_v55  ;;  %v859_v55 = vld [vmem:[#allocation10 + $0x260] sm:$0xff] }
 0x16d   :  { %2362 = vmatpush1.bf16.msra.mxu1 %v3532_v23  ;;  %2448 = vmatpush1.bf16.msra.mxu0 %v3534_v26  ;;  %v3564_v23 = vcombine.low %v815_v11, %v819_v12  ;;  %v3575_v26 = vcombine.high %v824_v21, %v828_v22  ;;  %v3605_v60 = vcombine.high %v855_v54, %v859_v55 }
 0x16e   :  { %2363 = vmatprep.subr.bf16.mxu1 %v3541_v57  ;;  %2449 = vmatprep.subr.bf16.mxu0 %v3543_v58  ;;  %v860_v57 = vld [vmem:[#allocation10 + $0x268] sm:$0xff]  ;;  %v3596_v58 = vcombine.low %v847_v46, %v851_v47 }
 0x16f   :  { %v3607_v61 = vcombine.high %v856_v56, %v860_v57  ;;  %v3606_v3 = vcombine.low %v856_v56, %v860_v57  ;;  %v908_v47 = vld [vmem:[#allocation10 + $0x3e8] sm:$0xff] }
 0x171   :  { %2364 = vmatpush1.bf16.msra.mxu1 %v3540_v63  ;;  %2450 = vmatpush1.bf16.msra.mxu0 %v3542_v0  ;;  %v867_v63 = vld [vmem:[#allocation10 + $0x2a0] sm:$0xff]  ;;  %v864_v0 = vld [vmem:[#allocation10 + $0x288] sm:$0xff] }
 0x172   :  { %2365 = vmatprep.subr.bf16.mxu1 %v3549_v1  ;;  %2451 = vmatprep.subr.bf16.mxu0 %v3551_v2  ;;  %v868_v1 = vld [vmem:[#allocation10 + $0x2a8] sm:$0xff]  ;;  %v3604_v2 = vcombine.low %v855_v54, %v859_v55  ;;  %v3613_v4 = vcombine.high %v863_v62, %v867_v63 }
 0x173   :  { %v3615_v5 = vcombine.high %v864_v0, %v868_v1  ;;  %v3614_v11 = vcombine.low %v864_v0, %v868_v1  ;;  %v4509_v55 = vld [vmem:[#allocation10 + $0x428] sm:$0xff] }
 0x175   :  { %2366 = vmatpush1.bf16.msra.mxu1 %v3548_v7  ;;  %2452 = vmatpush1.bf16.msra.mxu0 %v3550_v8  ;;  %v875_v7 = vld [vmem:[#allocation10 + $0x2e0] sm:$0xff]  ;;  %v872_v8 = vld [vmem:[#allocation10 + $0x2c8] sm:$0xff] }
 0x176   :  { %2367 = vmatprep.subr.bf16.mxu1 %v3557_v9  ;;  %2453 = vmatprep.subr.bf16.mxu0 %v3559_v10  ;;  %v876_v9 = vld [vmem:[#allocation10 + $0x2e8] sm:$0xff]  ;;  %v3612_v10 = vcombine.low %v863_v62, %v867_v63  ;;  %v3621_v12 = vcombine.high %v871_v6, %v875_v7 }
 0x177   :  { %v3623_v13 = vcombine.high %v872_v8, %v876_v9  ;;  %v3622_v19 = vcombine.low %v872_v8, %v876_v9 }
 0x179   :  { %2368 = vmatpush1.bf16.msra.mxu1 %v3556_v15  ;;  %2454 = vmatpush1.bf16.msra.mxu0 %v3558_v16  ;;  %v883_v15 = vld [vmem:[#allocation10 + $0x320] sm:$0xff]  ;;  %v880_v16 = vld [vmem:[#allocation10 + $0x308] sm:$0xff] }
 0x17a   :  { %2369 = vmatprep.subr.bf16.mxu1 %v3565_v17  ;;  %2455 = vmatprep.subr.bf16.mxu0 %v3567_v18  ;;  %v884_v17 = vld [vmem:[#allocation10 + $0x328] sm:$0xff]  ;;  %v3620_v18 = vcombine.low %v871_v6, %v875_v7  ;;  %v3629_v20 = vcombine.high %v879_v14, %v883_v15  ;;  %v3628_v22 = vcombine.low %v879_v14, %v883_v15 }
 0x17b   :  { %v3631_v21 = vcombine.high %v880_v16, %v884_v17 }
 0x17d   :  { %2370 = vmatpush1.bf16.msra.mxu1 %v3564_v23  ;;  %2456 = vmatpush1.bf16.msra.mxu0 %v3566_v24  ;;  %v3630_v23 = vcombine.low %v880_v16, %v884_v17  ;;  %v887_v24 = vld [vmem:[#allocation10 + $0x340] sm:$0xff] }
 0x17e   :  { %2371 = vmatprep.subr.bf16.mxu1 %v3573_v25  ;;  %2457 = vmatprep.subr.bf16.mxu0 %v3575_v26  ;;  %v891_v25 = vld [vmem:[#allocation10 + $0x360] sm:$0xff]  ;;  %v888_v26 = vld [vmem:[#allocation10 + $0x348] sm:$0xff] }
 0x17f   :  { %v3637_v27 = vcombine.high %v887_v24, %v891_v25  ;;  %v3636_v31 = vcombine.low %v887_v24, %v891_v25  ;;  %v3638_v33 = vcombine.low %v888_v26, %v892_v28 }
 0x181   :  { %2372 = vmatpush1.bf16.msra.mxu1 %v3572_v34  ;;  %2458 = vmatpush1.bf16.msra.mxu0 %v3574_v35  ;;  %v3639_v34 = vcombine.high %v888_v26, %v892_v28  ;;  %v895_v35 = vld [vmem:[#allocation10 + $0x380] sm:$0xff] }
 0x182   :  { %2373 = vmatprep.subr.bf16.mxu1 %v3581_v36  ;;  %2459 = vmatprep.subr.bf16.mxu0 %v3583_v37  ;;  %v899_v36 = vld [vmem:[#allocation10 + $0x3a0] sm:$0xff]  ;;  %v896_v37 = vld [vmem:[#allocation10 + $0x388] sm:$0xff] }
 0x183   :  { %v3645_v38 = vcombine.high %v895_v35, %v899_v36  ;;  %v3644_v40 = vcombine.low %v895_v35, %v899_v36  ;;  %v3646_v41 = vcombine.low %v896_v37, %v900_v39 }
 0x185   :  { %2374 = vmatpush1.bf16.msra.mxu1 %v3580_v42  ;;  %2460 = vmatpush1.bf16.msra.mxu0 %v3582_v43  ;;  %v3647_v42 = vcombine.high %v896_v37, %v900_v39  ;;  %v903_v43 = vld [vmem:[#allocation10 + $0x3c0] sm:$0xff] }
 0x186   :  { %2375 = vmatprep.subr.bf16.mxu1 %v3589_v44  ;;  %2461 = vmatprep.subr.bf16.mxu0 %v3591_v45  ;;  %v907_v44 = vld [vmem:[#allocation10 + $0x3e0] sm:$0xff]  ;;  %v904_v45 = vld [vmem:[#allocation10 + $0x3c8] sm:$0xff] }
 0x187   :  { %v3653_v46 = vcombine.high %v903_v43, %v907_v44  ;;  %v3652_v48 = vcombine.low %v903_v43, %v907_v44  ;;  %v3654_v49 = vcombine.low %v904_v45, %v908_v47  ;;  %v919_v37 = vld [vmem:[#allocation10 + $0x440] sm:$0xff] }
 0x189   :  { %2376 = vmatpush1.bf16.msra.mxu1 %v3588_v50  ;;  %2462 = vmatpush1.bf16.msra.mxu0 %v3590_v51  ;;  %v3655_v50 = vcombine.high %v904_v45, %v908_v47  ;;  %v4501_v51 = vld [vmem:[#allocation10 + $0x400] sm:$0xff] }
 0x18a   :  { %2377 = vmatprep.subr.bf16.mxu1 %v3597_v52  ;;  %2463 = vmatprep.subr.bf16.mxu0 %v3599_v53  ;;  %v4503_v52 = vld [vmem:[#allocation10 + $0x420] sm:$0xff]  ;;  %v4505_v53 = vld [vmem:[#allocation10 + $0x408] sm:$0xff] }
 0x18b   :  { %v3661_v54 = vcombine.high %v4501_v51, %v4503_v52  ;;  %v3660_v56 = vcombine.low %v4501_v51, %v4503_v52  ;;  %v3662_v57 = vcombine.low %v4505_v53, %v4509_v55  ;;  %v927_v45 = vld [vmem:[#allocation10 + $0x480] sm:$0xff] }
 0x18d   :  { %2378 = vmatpush1.bf16.msra.mxu1 %v3596_v58  ;;  %2464 = vmatpush1.bf16.msra.mxu0 %v3598_v59  ;;  %v3663_v58 = vcombine.high %v4505_v53, %v4509_v55  ;;  %v347_v59 = vsub.s32 2, %v4488_v29  ;;  %v935_v55 = vld [vmem:[#allocation10 + $0x4c0] sm:$0xff] }
 0x18e   :  { %2379 = vmatprep.subr.bf16.mxu1 %v3605_v60  ;;  %2465 = vmatprep.subr.bf16.mxu0 %v3607_v61  ;;  %v335_v60 = vld [vmem:[#allocation8] sm:$0xf]  ;;  %v351_v61 = vsub.s32 3, %v4488_v29 }
 0x18f   :  { %v340_v62 = vrot.slane %v335_v60, %v4491_v30  ;;  %v348_v63 = vrot.slane %v335_v60, %v347_v59  ;;  %v344_v0 = vrot.slane %v335_v60, %v4497_v32 }
 0x190   :  { %v352_v1 = vrot.slane %v335_v60, %v351_v61  ;;  %v936_v60 = vld [vmem:[#allocation10 + $0x4c8] sm:$0xff] }
 0x191   :  { %2380 = vmatpush1.bf16.msra.mxu1 %v3604_v2  ;;  %2466 = vmatpush1.bf16.msra.mxu0 %v3606_v3 }
 0x192   :  { %2381 = vmatprep.subr.bf16.mxu1 %v3613_v4  ;;  %2467 = vmatprep.subr.bf16.mxu0 %v3615_v5 }
 0x195   :  { %2382 = vmatpush1.bf16.msra.mxu1 %v3612_v10  ;;  %2468 = vmatpush1.bf16.msra.mxu0 %v3614_v11 }
 0x196   :  { %2383 = vmatprep.subr.bf16.mxu1 %v3621_v12  ;;  %2469 = vmatprep.subr.bf16.mxu0 %v3623_v13 }
 0x199   :  { %2384 = vmatpush1.bf16.msra.mxu1 %v3620_v18  ;;  %2470 = vmatpush1.bf16.msra.mxu0 %v3622_v19 }
 0x19a   :  { %2385 = vmatprep.subr.bf16.mxu1 %v3629_v20  ;;  %2471 = vmatprep.subr.bf16.mxu0 %v3631_v21 }
 0x19d   :  { %2386 = vmatpush1.bf16.msra.mxu1 %v3628_v22  ;;  %2472 = vmatpush1.bf16.msra.mxu0 %v3630_v23 }
 0x19e   :  { %2387 = vmatprep.subr.bf16.mxu1 %v3637_v27  ;;  %2473 = vmatprep.subr.bf16.mxu0 %v3639_v34 }
 0x1a1   :  { %2388 = vmatpush1.bf16.msra.mxu1 %v3636_v31  ;;  %2474 = vmatpush1.bf16.msra.mxu0 %v3638_v33 }
 0x1a2   :  { %2389 = vmatprep.subr.bf16.mxu1 %v3645_v38  ;;  %2475 = vmatprep.subr.bf16.mxu0 %v3647_v42  ;;  %v924_v42 = vld [vmem:[#allocation10 + $0x468] sm:$0xff] }
 0x1a5   :  { %2390 = vmatpush1.bf16.msra.mxu1 %v3644_v40  ;;  %2476 = vmatpush1.bf16.msra.mxu0 %v3646_v41  ;;  %v923_v40 = vld [vmem:[#allocation10 + $0x460] sm:$0xff]  ;;  %v920_v41 = vld [vmem:[#allocation10 + $0x448] sm:$0xff] }
 0x1a6   :  { %2391 = vmatprep.subr.bf16.mxu1 %v3653_v46  ;;  %2477 = vmatprep.subr.bf16.mxu0 %v3655_v50  ;;  %v3669_v46 = vcombine.high %v919_v37, %v923_v40  ;;  %v3671_v47 = vcombine.high %v920_v41, %v924_v42  ;;  %v932_v50 = vld [vmem:[#allocation10 + $0x4a8] sm:$0xff]  ;;  %v3668_v51 = vcombine.low %v919_v37, %v923_v40  ;;  %v979_v37 = vld [vmem:[#allocation10 + $0x620] sm:$0xff] }
 0x1a7   :  { %v3670_v52 = vcombine.low %v920_v41, %v924_v42  ;;  %v976_v40 = vld [vmem:[#allocation10 + $0x608] sm:$0xff] }
 0x1a8   :  { %v980_v41 = vld [vmem:[#allocation10 + $0x628] sm:$0xff] }
 0x1a9   :  { %2392 = vmatpush1.bf16.msra.mxu1 %v3652_v48  ;;  %2478 = vmatpush1.bf16.msra.mxu0 %v3654_v49  ;;  %v931_v48 = vld [vmem:[#allocation10 + $0x4a0] sm:$0xff]  ;;  %v928_v49 = vld [vmem:[#allocation10 + $0x488] sm:$0xff] }
 0x1aa   :  { %2404 = vmatprep.subr.bf16.mxu1 %v3661_v54  ;;  %2490 = vmatprep.subr.bf16.mxu0 %v3663_v58  ;;  %v3677_v53 = vcombine.high %v927_v45, %v931_v48  ;;  %v3679_v54 = vcombine.high %v928_v49, %v932_v50  ;;  %v939_v58 = vld [vmem:[#allocation10 + $0x4e0] sm:$0xff] }
 0x23f   :  { %v711_v2 = vpop.f32.mrb[0].mxu1  ;;  %v754_v3 = vpop.f32.mrb[4].mxu0 }
 0x240   :  { %v712_v4 = vadd.f32 %v711_v2, %v340_v62  ;;  %v755_v5 = vadd.f32 %v754_v3, %v348_v63  ;;  %v713_v6 = vpop.f32.mrb[1].mxu1  ;;  %v756_v7 = vpop.f32.mrb[5].mxu0  ;;  %v947_v2 = vld [vmem:[#allocation10 + $0x520] sm:$0xff]  ;;  %v944_v3 = vld [vmem:[#allocation10 + $0x508] sm:$0xff] }
 0x241   :  { %v714_v8 = vadd.f32 %v713_v6, %v344_v0  ;;  %v757_v9 = vadd.f32 %v756_v7, %v352_v1  ;;  %v715_v10 = vpop.f32.mrb[2].mxu1  ;;  %v758_v11 = vpop.f32.mrb[6].mxu0 }
 0x242   :  { %v763_v12 = vmul.f32 0.2, %v712_v4  ;;  %v765_v13 = vmul.f32 0.2, %v755_v5  ;;  %v716_v14 = vadd.f32 %v715_v10, %v340_v62  ;;  %v759_v15 = vadd.f32 %v758_v11, %v348_v63  ;;  %v717_v16 = vpop.f32.mrb[3].mxu1  ;;  %v760_v17 = vpop.f32.mrb[7].mxu0 }
 0x243   :  { %v764_v18 = vmul.f32 0.2, %v714_v8  ;;  %v766_v19 = vmul.f32 0.2, %v757_v9  ;;  %v718_v20 = vadd.f32 %v717_v16, %v344_v0  ;;  %v761_v21 = vadd.f32 %v760_v17, %v352_v1  ;;  %v940_v62 = vld [vmem:[#allocation10 + $0x4e8] sm:$0xff]  ;;  %v943_v1 = vld [vmem:[#allocation10 + $0x500] sm:$0xff] }
 0x244   :  { %v767_v22 = vmul.f32 0.2, %v716_v14  ;;  %v769_v23 = vmul.f32 0.2, %v759_v15  ;;  %v771_v26 = vmax.f32 %v712_v4, %v763_v12  ;;  %v773_v27 = vmax.f32 %v755_v5, %v765_v13  ;;  %v948_v4 = vld [vmem:[#allocation10 + $0x528] sm:$0xff]  ;;  %v955_v10 = vld [vmem:[#allocation10 + $0x560] sm:$0xff] }
 0x245   :  { %v768_v24 = vmul.f32 0.2, %v718_v20  ;;  %v770_v25 = vmul.f32 0.2, %v761_v21  ;;  %v772_v33 = vmax.f32 %v714_v8, %v764_v18  ;;  %v774_v34 = vmax.f32 %v757_v9, %v766_v19  ;;  %v951_v9 = vld [vmem:[#allocation10 + $0x540] sm:$0xff]  ;;  %v952_v11 = vld [vmem:[#allocation10 + $0x548] sm:$0xff] }
 0x246   :  { %v775_v28 = vmax.f32 %v716_v14, %v767_v22  ;;  %v777_v31 = vmax.f32 %v759_v15, %v769_v23  ;;  %v3676_v63 = vcombine.low %v927_v45, %v931_v48  ;;  %v3678_v0 = vcombine.low %v928_v49, %v932_v50  ;;  %v956_v12 = vld [vmem:[#allocation10 + $0x568] sm:$0xff]  ;;  %v959_v17 = vld [vmem:[#allocation10 + $0x580] sm:$0xff] }
 0x247   :  { %v776_v35 = vmax.f32 %v718_v20, %v768_v24  ;;  %v778_v36 = vmax.f32 %v761_v21, %v770_v25  ;;  %v3684_v5 = vcombine.low %v935_v55, %v939_v58  ;;  %v3686_v6 = vcombine.low %v936_v60, %v940_v62  ;;  %v963_v18 = vld [vmem:[#allocation10 + $0x5a0] sm:$0xff]  ;;  %v960_v19 = vld [vmem:[#allocation10 + $0x588] sm:$0xff] }
 0x248   :  { %v4525_v38 = vpack.c.bf16 %v775_v28, %v771_v26  ;;  %v4527_v39 = vpack.c.bf16 %v777_v31, %v773_v27  ;;  %v3693_v7 = vcombine.high %v943_v1, %v947_v2  ;;  %v3695_v8 = vcombine.high %v944_v3, %v948_v4  ;;  %v964_v20 = vld [vmem:[#allocation10 + $0x5a8] sm:$0xff]  ;;  %v967_v25 = vld [vmem:[#allocation10 + $0x5c0] sm:$0xff] }
 0x249   :  { %v4529_v43 = vpack.c.bf16 %v776_v35, %v772_v33  ;;  %v4531_v44 = vpack.c.bf16 %v778_v36, %v774_v34  ;;  %v3692_v13 = vcombine.low %v943_v1, %v947_v2  ;;  %v3694_v14 = vcombine.low %v944_v3, %v948_v4  ;;  %v971_v26 = vld [vmem:[#allocation10 + $0x5e0] sm:$0xff]  ;;  %v968_v27 = vld [vmem:[#allocation10 + $0x5c8] sm:$0xff] }
 0x24a   :  { %v3701_v15 = vcombine.high %v951_v9, %v955_v10  ;;  %v3703_v16 = vcombine.high %v952_v11, %v956_v12  ;;  %v3700_v21 = vcombine.low %v951_v9, %v955_v10  ;;  %v3702_v22 = vcombine.low %v952_v11, %v956_v12  ;;  %v972_v28 = vld [vmem:[#allocation10 + $0x5e8] sm:$0xff]  ;;  %v975_v36 = vld [vmem:[#allocation10 + $0x600] sm:$0xff] }
 0x24b   :  { %2393 = vmatprep.mubr.bf16.mxu1 %v4529_v43  ;;  %2479 = vmatprep.mubr.bf16.mxu0 %v4529_v43  ;;  %v3709_v23 = vcombine.high %v959_v17, %v963_v18  ;;  %v3711_v24 = vcombine.high %v960_v19, %v964_v20  ;;  %v3708_v31 = vcombine.low %v959_v17, %v963_v18  ;;  %v983_v48 = vld [vmem:[#allocation10 + $0x640] sm:$0xff]  ;;  %v984_v50 = vld [vmem:[#allocation10 + $0x648] sm:$0xff] }
 0x24c   :  { %2394 = vmatmul.mubr.bf16.vlgmr.msra.gmra.mrb[4].mxu1 %v4525_v38  ;;  %2480 = vmatmul.mubr.bf16.vlgmr.msra.gmra.mrb[8].mxu0 %v4525_v38  ;;  %v3710_v33 = vcombine.low %v960_v19, %v964_v20  ;;  %v3717_v34 = vcombine.high %v967_v25, %v971_v26  ;;  %v3719_v35 = vcombine.high %v968_v27, %v972_v28  ;;  %v987_v49 = vld [vmem:[#allocation10 + $0x660] sm:$0xff]  ;;  %v1000_v4 = vld [vmem:[#allocation10 + $0x6c8] sm:$0xff] }
 0x24d   :  { %2405 = vmatpush1.bf16.msra.mxu1 %v3660_v56  ;;  %2491 = vmatpush1.bf16.msra.mxu0 %v3662_v57  ;;  %v3685_v56 = vcombine.high %v935_v55, %v939_v58  ;;  %v3687_v57 = vcombine.high %v936_v60, %v940_v62  ;;  %v3716_v42 = vcombine.low %v967_v25, %v971_v26  ;;  %v991_v58 = vld [vmem:[#allocation10 + $0x680] sm:$0xff]  ;;  %v992_v62 = vld [vmem:[#allocation10 + $0x688] sm:$0xff] }
 0x24e   :  { %2436 = vmatprep.mubr.bf16.mxu1 %v4531_v44  ;;  %2522 = vmatprep.mubr.bf16.mxu0 %v4531_v44  ;;  %v3718_v45 = vcombine.low %v968_v27, %v972_v28  ;;  %v995_v60 = vld [vmem:[#allocation10 + $0x6a0] sm:$0xff]  ;;  %v1008_v12 = vld [vmem:[#allocation10 + $0x708] sm:$0xff] }
 0x24f   :  { %2406 = vmatprep.subr.bf16.mxu1 %v3669_v46  ;;  %2492 = vmatprep.subr.bf16.mxu0 %v3671_v47  ;;  %v3725_v46 = vcombine.high %v975_v36, %v979_v37  ;;  %v3727_v47 = vcombine.high %v976_v40, %v980_v41  ;;  %v999_v2 = vld [vmem:[#allocation10 + $0x6c0] sm:$0xff]  ;;  %v1016_v20 = vld [vmem:[#allocation10 + $0x748] sm:$0xff] }
 0x250   :  { %v1003_v3 = vld [vmem:[#allocation10 + $0x6e0] sm:$0xff]  ;;  %v1024_v28 = vld [vmem:[#allocation10 + $0x788] sm:$0xff] }
 0x251   :  { %2407 = vmatpush1.bf16.msra.mxu1 %v3668_v51  ;;  %2493 = vmatpush1.bf16.msra.mxu0 %v3670_v52  ;;  %v988_v51 = vld [vmem:[#allocation10 + $0x668] sm:$0xff]  ;;  %v3724_v52 = vcombine.low %v975_v36, %v979_v37  ;;  %v1007_v10 = vld [vmem:[#allocation10 + $0x700] sm:$0xff] }
 0x252   :  { %2408 = vmatprep.subr.bf16.mxu1 %v3677_v53  ;;  %2494 = vmatprep.subr.bf16.mxu0 %v3679_v54  ;;  %v3726_v53 = vcombine.low %v976_v40, %v980_v41  ;;  %v3733_v54 = vcombine.high %v983_v48, %v987_v49  ;;  %v3735_v55 = vcombine.high %v984_v50, %v988_v51  ;;  %v1011_v11 = vld [vmem:[#allocation10 + $0x720] sm:$0xff]  ;;  %v1032_v41 = vld [vmem:[#allocation10 + $0x7c8] sm:$0xff] }
 0x253   :  { %v1015_v18 = vld [vmem:[#allocation10 + $0x740] sm:$0xff] }
 0x254   :  { %v1019_v19 = vld [vmem:[#allocation10 + $0x760] sm:$0xff] }
 0x255   :  { %2409 = vmatpush1.bf16.msra.mxu1 %v3676_v63  ;;  %2495 = vmatpush1.bf16.msra.mxu0 %v3678_v0  ;;  %v996_v63 = vld [vmem:[#allocation10 + $0x6a8] sm:$0xff]  ;;  %v3732_v0 = vcombine.low %v983_v48, %v987_v49  ;;  %v1023_v26 = vld [vmem:[#allocation10 + $0x780] sm:$0xff]  ;;  %v785_v49 = vld [vmem:[#allocation10 + $0x10] sm:$0xff] }
 0x256   :  { %2410 = vmatprep.subr.bf16.mxu1 %v3685_v56  ;;  %2496 = vmatprep.subr.bf16.mxu0 %v3687_v57  ;;  %v3734_v56 = vcombine.low %v984_v50, %v988_v51  ;;  %v3741_v57 = vcombine.high %v991_v58, %v995_v60  ;;  %v3743_v1 = vcombine.high %v992_v62, %v996_v63  ;;  %v1027_v27 = vld [vmem:[#allocation10 + $0x7a0] sm:$0xff]  ;;  %v789_v50 = vld [vmem:[#allocation10 + $0x30] sm:$0xff]  ;;  %v786_v51 = vld [vmem:[#allocation10 + $0x18] sm:$0xff] }
 0x257   :  { %v1031_v37 = vld [vmem:[#allocation10 + $0x7c0] sm:$0xff] }
 0x258   :  { %v1035_v40 = vld [vmem:[#allocation10 + $0x7e0] sm:$0xff] }
 0x259   :  { %2411 = vmatpush1.bf16.msra.mxu1 %v3684_v5  ;;  %2497 = vmatpush1.bf16.msra.mxu0 %v3686_v6  ;;  %v1004_v5 = vld [vmem:[#allocation10 + $0x6e8] sm:$0xff]  ;;  %v3740_v6 = vcombine.low %v991_v58, %v995_v60  ;;  %v793_v60 = vld [vmem:[#allocation10 + $0x50] sm:$0xff] }
 0x25a   :  { %2412 = vmatprep.subr.bf16.mxu1 %v3693_v7  ;;  %2498 = vmatprep.subr.bf16.mxu0 %v3695_v8  ;;  %v3742_v7 = vcombine.low %v992_v62, %v996_v63  ;;  %v3749_v8 = vcombine.high %v999_v2, %v1003_v3  ;;  %v3751_v9 = vcombine.high %v1000_v4, %v1004_v5  ;;  %v797_v62 = vld [vmem:[#allocation10 + $0x70] sm:$0xff]  ;;  %v794_v63 = vld [vmem:[#allocation10 + $0x58] sm:$0xff] }
 0x25d   :  { %2413 = vmatpush1.bf16.msra.mxu1 %v3692_v13  ;;  %2499 = vmatpush1.bf16.msra.mxu0 %v3694_v14  ;;  %v1012_v13 = vld [vmem:[#allocation10 + $0x728] sm:$0xff]  ;;  %v3748_v14 = vcombine.low %v999_v2, %v1003_v3  ;;  %v801_v3 = vld [vmem:[#allocation10 + $0x90] sm:$0xff] }
 0x25e   :  { %2414 = vmatprep.subr.bf16.mxu1 %v3701_v15  ;;  %2500 = vmatprep.subr.bf16.mxu0 %v3703_v16  ;;  %v3750_v15 = vcombine.low %v1000_v4, %v1004_v5  ;;  %v3757_v16 = vcombine.high %v1007_v10, %v1011_v11  ;;  %v3759_v17 = vcombine.high %v1008_v12, %v1012_v13  ;;  %v805_v4 = vld [vmem:[#allocation10 + $0xb0] sm:$0xff]  ;;  %v802_v5 = vld [vmem:[#allocation10 + $0x98] sm:$0xff] }
 0x261   :  { %2415 = vmatpush1.bf16.msra.mxu1 %v3700_v21  ;;  %2501 = vmatpush1.bf16.msra.mxu0 %v3702_v22  ;;  %v1020_v21 = vld [vmem:[#allocation10 + $0x768] sm:$0xff]  ;;  %v3756_v22 = vcombine.low %v1007_v10, %v1011_v11  ;;  %v809_v11 = vld [vmem:[#allocation10 + $0xd0] sm:$0xff] }
 0x262   :  { %2416 = vmatprep.subr.bf16.mxu1 %v3709_v23  ;;  %2502 = vmatprep.subr.bf16.mxu0 %v3711_v24  ;;  %v3758_v23 = vcombine.low %v1008_v12, %v1012_v13  ;;  %v3765_v24 = vcombine.high %v1015_v18, %v1019_v19  ;;  %v3767_v25 = vcombine.high %v1016_v20, %v1020_v21  ;;  %v813_v12 = vld [vmem:[#allocation10 + $0xf0] sm:$0xff]  ;;  %v810_v13 = vld [vmem:[#allocation10 + $0xd8] sm:$0xff] }
 0x265   :  { %2417 = vmatpush1.bf16.msra.mxu1 %v3708_v31  ;;  %2503 = vmatpush1.bf16.msra.mxu0 %v3710_v33  ;;  %v1028_v31 = vld [vmem:[#allocation10 + $0x7a8] sm:$0xff]  ;;  %v3764_v33 = vcombine.low %v1015_v18, %v1019_v19  ;;  %v817_v19 = vld [vmem:[#allocation10 + $0x110] sm:$0xff] }
 0x266   :  { %2418 = vmatprep.subr.bf16.mxu1 %v3717_v34  ;;  %2504 = vmatprep.subr.bf16.mxu0 %v3719_v35  ;;  %v3766_v34 = vcombine.low %v1016_v20, %v1020_v21  ;;  %v3773_v35 = vcombine.high %v1023_v26, %v1027_v27  ;;  %v3775_v36 = vcombine.high %v1024_v28, %v1028_v31  ;;  %v821_v20 = vld [vmem:[#allocation10 + $0x130] sm:$0xff]  ;;  %v822_v21 = vld [vmem:[#allocation10 + $0x138] sm:$0xff] }
 0x269   :  { %2419 = vmatpush1.bf16.msra.mxu1 %v3716_v42  ;;  %2505 = vmatpush1.bf16.msra.mxu0 %v3718_v45  ;;  %v1036_v42 = vld [vmem:[#allocation10 + $0x7e8] sm:$0xff]  ;;  %v3772_v45 = vcombine.low %v1023_v26, %v1027_v27  ;;  %v825_v26 = vld [vmem:[#allocation10 + $0x150] sm:$0xff] }
 0x26a   :  { %2420 = vmatprep.subr.bf16.mxu1 %v3725_v46  ;;  %2506 = vmatprep.subr.bf16.mxu0 %v3727_v47  ;;  %v3774_v46 = vcombine.low %v1024_v28, %v1028_v31  ;;  %v3781_v47 = vcombine.high %v1031_v37, %v1035_v40  ;;  %v3783_v48 = vcombine.high %v1032_v41, %v1036_v42  ;;  %v829_v27 = vld [vmem:[#allocation10 + $0x170] sm:$0xff]  ;;  %v826_v28 = vld [vmem:[#allocation10 + $0x158] sm:$0xff] }
 0x26b   :  { %v830_v31 = vld [vmem:[#allocation10 + $0x178] sm:$0xff] }
 0x26d   :  { %2421 = vmatpush1.bf16.msra.mxu1 %v3724_v52  ;;  %2507 = vmatpush1.bf16.msra.mxu0 %v3726_v53  ;;  %v790_v52 = vld [vmem:[#allocation10 + $0x38] sm:$0xff]  ;;  %v3780_v53 = vcombine.low %v1031_v37, %v1035_v40  ;;  %v833_v37 = vld [vmem:[#allocation10 + $0x190] sm:$0xff] }
 0x26e   :  { %2422 = vmatprep.subr.bf16.mxu1 %v3733_v54  ;;  %2508 = vmatprep.subr.bf16.mxu0 %v3735_v55  ;;  %v3782_v54 = vcombine.low %v1032_v41, %v1036_v42  ;;  %v3537_v55 = vcombine.high %v785_v49, %v789_v50  ;;  %v3539_v58 = vcombine.high %v786_v51, %v790_v52  ;;  %v837_v40 = vld [vmem:[#allocation10 + $0x1b0] sm:$0xff]  ;;  %v834_v41 = vld [vmem:[#allocation10 + $0x198] sm:$0xff] }
 0x26f   :  { %v838_v42 = vld [vmem:[#allocation10 + $0x1b8] sm:$0xff] }
 0x271   :  { %2423 = vmatpush1.bf16.msra.mxu1 %v3732_v0  ;;  %2509 = vmatpush1.bf16.msra.mxu0 %v3734_v56  ;;  %v798_v0 = vld [vmem:[#allocation10 + $0x78] sm:$0xff]  ;;  %v3536_v56 = vcombine.low %v785_v49, %v789_v50  ;;  %v841_v49 = vld [vmem:[#allocation10 + $0x1d0] sm:$0xff] }
 0x272   :  { %2424 = vmatprep.subr.bf16.mxu1 %v3741_v57  ;;  %2510 = vmatprep.subr.bf16.mxu0 %v3743_v1  ;;  %v3538_v57 = vcombine.low %v786_v51, %v790_v52  ;;  %v3545_v1 = vcombine.high %v793_v60, %v797_v62  ;;  %v3547_v2 = vcombine.high %v794_v63, %v798_v0  ;;  %v845_v50 = vld [vmem:[#allocation10 + $0x1f0] sm:$0xff]  ;;  %v842_v51 = vld [vmem:[#allocation10 + $0x1d8] sm:$0xff] }
 0x273   :  { %v846_v52 = vld [vmem:[#allocation10 + $0x1f8] sm:$0xff] }
 0x275   :  { %2425 = vmatpush1.bf16.msra.mxu1 %v3740_v6  ;;  %2511 = vmatpush1.bf16.msra.mxu0 %v3742_v7  ;;  %v806_v6 = vld [vmem:[#allocation10 + $0xb8] sm:$0xff]  ;;  %v3544_v7 = vcombine.low %v793_v60, %v797_v62  ;;  %v849_v60 = vld [vmem:[#allocation10 + $0x210] sm:$0xff] }
 0x276   :  { %2426 = vmatprep.subr.bf16.mxu1 %v3749_v8  ;;  %2512 = vmatprep.subr.bf16.mxu0 %v3751_v9  ;;  %v3546_v8 = vcombine.low %v794_v63, %v798_v0  ;;  %v3553_v9 = vcombine.high %v801_v3, %v805_v4  ;;  %v3555_v10 = vcombine.high %v802_v5, %v806_v6  ;;  %v853_v62 = vld [vmem:[#allocation10 + $0x230] sm:$0xff]  ;;  %v850_v63 = vld [vmem:[#allocation10 + $0x218] sm:$0xff] }
 0x277   :  { %v854_v0 = vld [vmem:[#allocation10 + $0x238] sm:$0xff] }
 0x279   :  { %2427 = vmatpush1.bf16.msra.mxu1 %v3748_v14  ;;  %2513 = vmatpush1.bf16.msra.mxu0 %v3750_v15  ;;  %v814_v14 = vld [vmem:[#allocation10 + $0xf8] sm:$0xff]  ;;  %v3552_v15 = vcombine.low %v801_v3, %v805_v4  ;;  %v857_v3 = vld [vmem:[#allocation10 + $0x250] sm:$0xff] }
 0x27a   :  { %2428 = vmatprep.subr.bf16.mxu1 %v3757_v16  ;;  %2514 = vmatprep.subr.bf16.mxu0 %v3759_v17  ;;  %v3554_v16 = vcombine.low %v802_v5, %v806_v6  ;;  %v3561_v17 = vcombine.high %v809_v11, %v813_v12  ;;  %v3563_v18 = vcombine.high %v810_v13, %v814_v14  ;;  %v861_v4 = vld [vmem:[#allocation10 + $0x270] sm:$0xff]  ;;  %v858_v5 = vld [vmem:[#allocation10 + $0x258] sm:$0xff] }
 0x27b   :  { %v862_v6 = vld [vmem:[#allocation10 + $0x278] sm:$0xff] }
 0x27d   :  { %2429 = vmatpush1.bf16.msra.mxu1 %v3756_v22  ;;  %2515 = vmatpush1.bf16.msra.mxu0 %v3758_v23  ;;  %v3560_v22 = vcombine.low %v809_v11, %v813_v12  ;;  %v3562_v23 = vcombine.low %v810_v13, %v814_v14  ;;  %v865_v11 = vld [vmem:[#allocation10 + $0x290] sm:$0xff]  ;;  %v866_v13 = vld [vmem:[#allocation10 + $0x298] sm:$0xff] }
 0x27e   :  { %2430 = vmatprep.subr.bf16.mxu1 %v3765_v24  ;;  %2516 = vmatprep.subr.bf16.mxu0 %v3767_v25  ;;  %v3569_v24 = vcombine.high %v817_v19, %v821_v20  ;;  %v869_v12 = vld [vmem:[#allocation10 + $0x2b0] sm:$0xff]  ;;  %v870_v14 = vld [vmem:[#allocation10 + $0x2b8] sm:$0xff] }
 0x281   :  { %2431 = vmatpush1.bf16.msra.mxu1 %v3764_v33  ;;  %2517 = vmatpush1.bf16.msra.mxu0 %v3766_v34  ;;  %v3568_v33 = vcombine.low %v817_v19, %v821_v20  ;;  %v873_v19 = vld [vmem:[#allocation10 + $0x2d0] sm:$0xff] }
 0x282   :  { %2432 = vmatprep.subr.bf16.mxu1 %v3773_v35  ;;  %2518 = vmatprep.subr.bf16.mxu0 %v3775_v36  ;;  %v3577_v35 = vcombine.high %v825_v26, %v829_v27  ;;  %v3579_v36 = vcombine.high %v826_v28, %v830_v31  ;;  %v877_v20 = vld [vmem:[#allocation10 + $0x2f0] sm:$0xff] }
 0x285   :  { %2433 = vmatpush1.bf16.msra.mxu1 %v3772_v45  ;;  %2519 = vmatpush1.bf16.msra.mxu0 %v3774_v46  ;;  %v3576_v45 = vcombine.low %v825_v26, %v829_v27  ;;  %v3578_v46 = vcombine.low %v826_v28, %v830_v31  ;;  %v881_v26 = vld [vmem:[#allocation10 + $0x310] sm:$0xff]  ;;  %v882_v28 = vld [vmem:[#allocation10 + $0x318] sm:$0xff] }
 0x286   :  { %2434 = vmatprep.subr.bf16.mxu1 %v3781_v47  ;;  %2520 = vmatprep.subr.bf16.mxu0 %v3783_v48  ;;  %v3585_v47 = vcombine.high %v833_v37, %v837_v40  ;;  %v3587_v48 = vcombine.high %v834_v41, %v838_v42  ;;  %v885_v27 = vld [vmem:[#allocation10 + $0x330] sm:$0xff]  ;;  %v886_v31 = vld [vmem:[#allocation10 + $0x338] sm:$0xff] }
 0x289   :  { %2435 = vmatpush1.bf16.msra.mxu1 %v3780_v53  ;;  %2521 = vmatpush1.bf16.msra.mxu0 %v3782_v54  ;;  %v3584_v53 = vcombine.low %v833_v37, %v837_v40  ;;  %v3586_v54 = vcombine.low %v834_v41, %v838_v42  ;;  %v889_v37 = vld [vmem:[#allocation10 + $0x350] sm:$0xff]  ;;  %v890_v41 = vld [vmem:[#allocation10 + $0x358] sm:$0xff] }
 0x28a   :  { %2533 = vmatprep.subr.bf16.mxu1 %v3537_v55  ;;  %2619 = vmatprep.subr.bf16.mxu0 %v3539_v58  ;;  %v3593_v55 = vcombine.high %v841_v49, %v845_v50  ;;  %v3595_v58 = vcombine.high %v842_v51, %v846_v52  ;;  %v893_v40 = vld [vmem:[#allocation10 + $0x370] sm:$0xff]  ;;  %v894_v42 = vld [vmem:[#allocation10 + $0x378] sm:$0xff] }
 0x28c   :  { %2437 = vmatmul.mubr.bf16.vlgmr.msra.gmra.mrb[4].mxu1 %v4527_v39  ;;  %2523 = vmatmul.mubr.bf16.vlgmr.msra.gmra.mrb[8].mxu0 %v4527_v39 }
 0x28d   :  { %2534 = vmatpush1.bf16.msra.mxu1 %v3536_v56  ;;  %2565 = vmatprep.mubr.bf16.mxu1 %v4529_v43  ;;  %v3592_v56 = vcombine.low %v841_v49, %v845_v50  ;;  %v897_v49 = vld [vmem:[#allocation10 + $0x390] sm:$0xff] }
 0x28e   :  { %2620 = vmatpush1.bf16.msra.mxu0 %v3538_v57  ;;  %2651 = vmatprep.mubr.bf16.mxu0 %v4529_v43  ;;  %v818_v43 = vld [vmem:[#allocation10 + $0x118] sm:$0xff]  ;;  %v3594_v57 = vcombine.low %v842_v51, %v846_v52  ;;  %v901_v50 = vld [vmem:[#allocation10 + $0x3b0] sm:$0xff] }
 0x28f   :  { %2535 = vmatprep.subr.bf16.mxu1 %v3545_v1  ;;  %2621 = vmatprep.subr.bf16.mxu0 %v3547_v2  ;;  %v3571_v25 = vcombine.high %v818_v43, %v822_v21  ;;  %v3570_v34 = vcombine.low %v818_v43, %v822_v21  ;;  %v3601_v1 = vcombine.high %v849_v60, %v853_v62  ;;  %v874_v43 = vld [vmem:[#allocation10 + $0x2d8] sm:$0xff] }
 0x290   :  { %v3603_v2 = vcombine.high %v850_v63, %v854_v0  ;;  %v878_v21 = vld [vmem:[#allocation10 + $0x2f8] sm:$0xff] }
 0x291   :  { %2536 = vmatpush1.bf16.msra.mxu1 %v3544_v7  ;;  %v3600_v7 = vcombine.low %v849_v60, %v853_v62  ;;  %v898_v51 = vld [vmem:[#allocation10 + $0x398] sm:$0xff]  ;;  %v905_v60 = vld [vmem:[#allocation10 + $0x3d0] sm:$0xff] }
 0x292   :  { %2622 = vmatpush1.bf16.msra.mxu0 %v3546_v8  ;;  %2537 = vmatprep.subr.bf16.mxu1 %v3553_v9  ;;  %v3602_v8 = vcombine.low %v850_v63, %v854_v0  ;;  %v3609_v9 = vcombine.high %v857_v3, %v861_v4  ;;  %v902_v52 = vld [vmem:[#allocation10 + $0x3b8] sm:$0xff]  ;;  %v909_v62 = vld [vmem:[#allocation10 + $0x3f0] sm:$0xff] }
 0x293   :  { %2623 = vmatprep.subr.bf16.mxu0 %v3555_v10  ;;  %v3611_v10 = vcombine.high %v858_v5, %v862_v6  ;;  %v906_v63 = vld [vmem:[#allocation10 + $0x3d8] sm:$0xff] }
 0x294   :  { %v910_v0 = vld [vmem:[#allocation10 + $0x3f8] sm:$0xff] }
 0x295   :  { %2538 = vmatpush1.bf16.msra.mxu1 %v3552_v15  ;;  %v3608_v15 = vcombine.low %v857_v3, %v861_v4  ;;  %v913_v3 = vld [vmem:[#allocation10 + $0x410] sm:$0xff] }
 0x296   :  { %2624 = vmatpush1.bf16.msra.mxu0 %v3554_v16  ;;  %2539 = vmatprep.subr.bf16.mxu1 %v3561_v17  ;;  %v3610_v16 = vcombine.low %v858_v5, %v862_v6  ;;  %v3617_v17 = vcombine.high %v865_v11, %v869_v12  ;;  %v917_v4 = vld [vmem:[#allocation10 + $0x430] sm:$0xff]  ;;  %v914_v5 = vld [vmem:[#allocation10 + $0x418] sm:$0xff] }
 0x297   :  { %2625 = vmatprep.subr.bf16.mxu0 %v3563_v18  ;;  %v3619_v18 = vcombine.high %v866_v13, %v870_v14  ;;  %v918_v6 = vld [vmem:[#allocation10 + $0x438] sm:$0xff] }
 0x299   :  { %2540 = vmatpush1.bf16.msra.mxu1 %v3560_v22  ;;  %v3616_v22 = vcombine.low %v865_v11, %v869_v12  ;;  %v921_v11 = vld [vmem:[#allocation10 + $0x450] sm:$0xff] }
 0x29a   :  { %2626 = vmatpush1.bf16.msra.mxu0 %v3562_v23  ;;  %2541 = vmatprep.subr.bf16.mxu1 %v3569_v24  ;;  %v3618_v23 = vcombine.low %v866_v13, %v870_v14  ;;  %v3625_v24 = vcombine.high %v873_v19, %v877_v20  ;;  %v925_v12 = vld [vmem:[#allocation10 + $0x470] sm:$0xff]  ;;  %v3664_v13 = vcombine.low %v913_v3, %v917_v4  ;;  %v922_v14 = vld [vmem:[#allocation10 + $0x458] sm:$0xff] }
 0x29b   :  { %2627 = vmatprep.subr.bf16.mxu0 %v3571_v25  ;;  %v3627_v25 = vcombine.high %v874_v43, %v878_v21 }
 0x29d   :  { %2542 = vmatpush1.bf16.msra.mxu1 %v3568_v33  ;;  %v3624_v33 = vcombine.low %v873_v19, %v877_v20  ;;  %v933_v19 = vld [vmem:[#allocation10 + $0x4b0] sm:$0xff] }
 0x29e   :  { %2628 = vmatpush1.bf16.msra.mxu0 %v3570_v34  ;;  %2543 = vmatprep.subr.bf16.mxu1 %v3577_v35  ;;  %v3626_v34 = vcombine.low %v874_v43, %v878_v21  ;;  %v3633_v35 = vcombine.high %v881_v26, %v885_v27  ;;  %v930_v43 = vld [vmem:[#allocation10 + $0x498] sm:$0xff] }
 0x29f   :  { %2629 = vmatprep.subr.bf16.mxu0 %v3579_v36  ;;  %v3635_v36 = vcombine.high %v882_v28, %v886_v31  ;;  %v934_v21 = vld [vmem:[#allocation10 + $0x4b8] sm:$0xff] }
 0x2a1   :  { %2544 = vmatpush1.bf16.msra.mxu1 %v3576_v45  ;;  %v3632_v45 = vcombine.low %v881_v26, %v885_v27  ;;  %v937_v26 = vld [vmem:[#allocation10 + $0x4d0] sm:$0xff] }
 0x2a2   :  { %2630 = vmatpush1.bf16.msra.mxu0 %v3578_v46  ;;  %2545 = vmatprep.subr.bf16.mxu1 %v3585_v47  ;;  %v3634_v46 = vcombine.low %v882_v28, %v886_v31  ;;  %v3641_v47 = vcombine.high %v889_v37, %v893_v40  ;;  %v941_v27 = vld [vmem:[#allocation10 + $0x4f0] sm:$0xff]  ;;  %v938_v28 = vld [vmem:[#allocation10 + $0x4d8] sm:$0xff] }
 0x2a3   :  { %2631 = vmatprep.subr.bf16.mxu0 %v3587_v48  ;;  %v3643_v48 = vcombine.high %v890_v41, %v894_v42  ;;  %v942_v31 = vld [vmem:[#allocation10 + $0x4f8] sm:$0xff] }
 0x2a5   :  { %2546 = vmatpush1.bf16.msra.mxu1 %v3584_v53  ;;  %v3640_v53 = vcombine.low %v889_v37, %v893_v40  ;;  %v949_v37 = vld [vmem:[#allocation10 + $0x530] sm:$0xff]  ;;  %v946_v40 = vld [vmem:[#allocation10 + $0x518] sm:$0xff] }
 0x2a6   :  { %2632 = vmatpush1.bf16.msra.mxu0 %v3586_v54  ;;  %2547 = vmatprep.subr.bf16.mxu1 %v3593_v55  ;;  %v3642_v54 = vcombine.low %v890_v41, %v894_v42  ;;  %v3649_v55 = vcombine.high %v897_v49, %v901_v50  ;;  %v950_v41 = vld [vmem:[#allocation10 + $0x538] sm:$0xff]  ;;  %v3690_v42 = vcombine.low %v938_v28, %v942_v31 }
 0x2a7   :  { %2633 = vmatprep.subr.bf16.mxu0 %v3595_v58  ;;  %v3651_v58 = vcombine.high %v898_v51, %v902_v52 }
 0x2a9   :  { %2548 = vmatpush1.bf16.msra.mxu1 %v3592_v56  ;;  %v3648_v56 = vcombine.low %v897_v49, %v901_v50  ;;  %v954_v49 = vld [vmem:[#allocation10 + $0x558] sm:$0xff] }
 0x2aa   :  { %2634 = vmatpush1.bf16.msra.mxu0 %v3594_v57  ;;  %2549 = vmatprep.subr.bf16.mxu1 %v3601_v1  ;;  %v3650_v57 = vcombine.low %v898_v51, %v902_v52  ;;  %v3657_v1 = vcombine.high %v905_v60, %v909_v62  ;;  %v958_v50 = vld [vmem:[#allocation10 + $0x578] sm:$0xff]  ;;  %v3698_v52 = vcombine.low %v946_v40, %v950_v41 }
 0x2ab   :  { %2635 = vmatprep.subr.bf16.mxu0 %v3603_v2  ;;  %v3659_v2 = vcombine.high %v906_v63, %v910_v0 }
 0x2ad   :  { %2550 = vmatpush1.bf16.msra.mxu1 %v3600_v7  ;;  %v3656_v7 = vcombine.low %v905_v60, %v909_v62  ;;  %v962_v60 = vld [vmem:[#allocation10 + $0x598] sm:$0xff] }
 0x2ae   :  { %2636 = vmatpush1.bf16.msra.mxu0 %v3602_v8  ;;  %2551 = vmatprep.subr.bf16.mxu1 %v3609_v9  ;;  %v3658_v8 = vcombine.low %v906_v63, %v910_v0  ;;  %v3665_v9 = vcombine.high %v913_v3, %v917_v4  ;;  %v966_v62 = vld [vmem:[#allocation10 + $0x5b8] sm:$0xff]  ;;  %v3706_v0 = vcombine.low %v954_v49, %v958_v50 }
 0x2af   :  { %2637 = vmatprep.subr.bf16.mxu0 %v3611_v10  ;;  %v3667_v10 = vcombine.high %v914_v5, %v918_v6  ;;  %v970_v3 = vld [vmem:[#allocation10 + $0x5d8] sm:$0xff] }
 0x2b0   :  { %v974_v4 = vld [vmem:[#allocation10 + $0x5f8] sm:$0xff] }
 0x2b1   :  { %2552 = vmatpush1.bf16.msra.mxu1 %v3608_v15  ;;  %v926_v15 = vld [vmem:[#allocation10 + $0x478] sm:$0xff] }
 0x2b2   :  { %2638 = vmatpush1.bf16.msra.mxu0 %v3610_v16  ;;  %2553 = vmatprep.subr.bf16.mxu1 %v3617_v17  ;;  %v3666_v16 = vcombine.low %v914_v5, %v918_v6  ;;  %v3673_v17 = vcombine.high %v921_v11, %v925_v12  ;;  %v3675_v20 = vcombine.high %v922_v14, %v926_v15 }
 0x2b3   :  { %2639 = vmatprep.subr.bf16.mxu0 %v3619_v18  ;;  %v929_v18 = vld [vmem:[#allocation10 + $0x490] sm:$0xff]  ;;  %v3714_v6 = vcombine.low %v962_v60, %v966_v62 }
 0x2b5   :  { %2554 = vmatpush1.bf16.msra.mxu1 %v3616_v22  ;;  %v3672_v22 = vcombine.low %v921_v11, %v925_v12  ;;  %v978_v11 = vld [vmem:[#allocation10 + $0x618] sm:$0xff] }
 0x2b6   :  { %2640 = vmatpush1.bf16.msra.mxu0 %v3618_v23  ;;  %2555 = vmatprep.subr.bf16.mxu1 %v3625_v24  ;;  %v3674_v23 = vcombine.low %v922_v14, %v926_v15  ;;  %v3681_v24 = vcombine.high %v929_v18, %v933_v19  ;;  %v982_v12 = vld [vmem:[#allocation10 + $0x638] sm:$0xff]  ;;  %v3722_v14 = vcombine.low %v970_v3, %v974_v4 }
 0x2b7   :  { %2641 = vmatprep.subr.bf16.mxu0 %v3627_v25  ;;  %v3683_v25 = vcombine.high %v930_v43, %v934_v21 }
 0x2b9   :  { %2556 = vmatpush1.bf16.msra.mxu1 %v3624_v33  ;;  %v3680_v33 = vcombine.low %v929_v18, %v933_v19  ;;  %v989_v18 = vld [vmem:[#allocation10 + $0x670] sm:$0xff]  ;;  %v986_v19 = vld [vmem:[#allocation10 + $0x658] sm:$0xff] }
 0x2ba   :  { %2642 = vmatpush1.bf16.msra.mxu0 %v3626_v34  ;;  %2557 = vmatprep.subr.bf16.mxu1 %v3633_v35  ;;  %v3689_v34 = vcombine.high %v937_v26, %v941_v27  ;;  %v3691_v35 = vcombine.high %v938_v28, %v942_v31 }
 0x2bb   :  { %2643 = vmatprep.subr.bf16.mxu0 %v3635_v36  ;;  %v945_v36 = vld [vmem:[#allocation10 + $0x510] sm:$0xff] }
 0x2bc   :  { %v3696_v51 = vcombine.low %v945_v36, %v949_v37 }
 0x2bd   :  { %2558 = vmatpush1.bf16.msra.mxu1 %v3632_v45  ;;  %v3697_v45 = vcombine.high %v945_v36, %v949_v37  ;;  %v1002_v36 = vld [vmem:[#allocation10 + $0x6d8] sm:$0xff] }
 0x2be   :  { %2644 = vmatpush1.bf16.msra.mxu0 %v3634_v46  ;;  %2559 = vmatprep.subr.bf16.mxu1 %v3641_v47  ;;  %v3699_v46 = vcombine.high %v946_v40, %v950_v41  ;;  %v953_v47 = vld [vmem:[#allocation10 + $0x550] sm:$0xff]  ;;  %v1006_v37 = vld [vmem:[#allocation10 + $0x6f8] sm:$0xff] }
 0x2bf   :  { %2645 = vmatprep.subr.bf16.mxu0 %v3643_v48  ;;  %v957_v48 = vld [vmem:[#allocation10 + $0x570] sm:$0xff] }
 0x2c0   :  { %v3704_v63 = vcombine.low %v953_v47, %v957_v48 }
 0x2c1   :  { %2560 = vmatpush1.bf16.msra.mxu1 %v3640_v53  ;;  %v3705_v53 = vcombine.high %v953_v47, %v957_v48  ;;  %v1010_v47 = vld [vmem:[#allocation10 + $0x718] sm:$0xff] }
 0x2c2   :  { %2646 = vmatpush1.bf16.msra.mxu0 %v3642_v54  ;;  %2561 = vmatprep.subr.bf16.mxu1 %v3649_v55  ;;  %v3707_v54 = vcombine.high %v954_v49, %v958_v50  ;;  %v961_v55 = vld [vmem:[#allocation10 + $0x590] sm:$0xff]  ;;  %v1014_v48 = vld [vmem:[#allocation10 + $0x738] sm:$0xff]  ;;  %v3754_v50 = vcombine.low %v1002_v36, %v1006_v37 }
 0x2c3   :  { %2647 = vmatprep.subr.bf16.mxu0 %v3651_v58  ;;  %v965_v58 = vld [vmem:[#allocation10 + $0x5b0] sm:$0xff] }
 0x2c4   :  { %v3712_v5 = vcombine.low %v961_v55, %v965_v58 }
 0x2c5   :  { %2562 = vmatpush1.bf16.msra.mxu1 %v3648_v56  ;;  %v3713_v56 = vcombine.high %v961_v55, %v965_v58  ;;  %v1018_v55 = vld [vmem:[#allocation10 + $0x758] sm:$0xff] }
 0x2c6   :  { %2648 = vmatpush1.bf16.msra.mxu0 %v3650_v57  ;;  %2563 = vmatprep.subr.bf16.mxu1 %v3657_v1  ;;  %v3715_v57 = vcombine.high %v962_v60, %v966_v62  ;;  %v969_v1 = vld [vmem:[#allocation10 + $0x5d0] sm:$0xff]  ;;  %v1022_v58 = vld [vmem:[#allocation10 + $0x778] sm:$0xff]  ;;  %v3762_v62 = vcombine.low %v1010_v47, %v1014_v48 }
 0x2c7   :  { %2649 = vmatprep.subr.bf16.mxu0 %v3659_v2  ;;  %v973_v2 = vld [vmem:[#allocation10 + $0x5f0] sm:$0xff] }
 0x2c9   :  { %2564 = vmatpush1.bf16.msra.mxu1 %v3656_v7  ;;  %v3721_v7 = vcombine.high %v969_v1, %v973_v2 }
 0x2ca   :  { %2650 = vmatpush1.bf16.msra.mxu0 %v3658_v8  ;;  %2576 = vmatprep.subr.bf16.mxu1 %v3665_v9  ;;  %v3723_v8 = vcombine.high %v970_v3, %v974_v4  ;;  %v977_v9 = vld [vmem:[#allocation10 + $0x610] sm:$0xff]  ;;  %v3770_v4 = vcombine.low %v1018_v55, %v1022_v58 }
 0x2cb   :  { %2662 = vmatprep.subr.bf16.mxu0 %v3667_v10  ;;  %v981_v10 = vld [vmem:[#allocation10 + $0x630] sm:$0xff] }
 0x2cc   :  { %2566 = vmatmul.mubr.bf16.vlgmr.msra.gmra.mrb[8].mxu1 %v4525_v38  ;;  %v3729_v15 = vcombine.high %v977_v9, %v981_v10 }
 0x2cd   :  { %2652 = vmatmul.mubr.bf16.vlgmr.msra.gmra.mrb[12].mxu0 %v4525_v38  ;;  %2577 = vmatpush1.bf16.msra.mxu1 %v3664_v13  ;;  %v3682_v38 = vcombine.low %v930_v43, %v934_v21  ;;  %v3720_v13 = vcombine.low %v969_v1, %v973_v2  ;;  %v3728_v43 = vcombine.low %v977_v9, %v981_v10  ;;  %v1026_v1 = vld [vmem:[#allocation10 + $0x798] sm:$0xff] }
 0x2ce   :  { %2608 = vmatprep.mubr.bf16.mxu1 %v4531_v44  ;;  %2663 = vmatpush1.bf16.msra.mxu0 %v3666_v16  ;;  %v3731_v16 = vcombine.high %v978_v11, %v982_v12  ;;  %v3730_v21 = vcombine.low %v978_v11, %v982_v12  ;;  %v1030_v2 = vld [vmem:[#allocation10 + $0x7b8] sm:$0xff] }
 0x2cf   :  { %2694 = vmatprep.mubr.bf16.mxu0 %v4531_v44  ;;  %2578 = vmatprep.subr.bf16.mxu1 %v3673_v17  ;;  %v3688_v44 = vcombine.low %v937_v26, %v941_v27  ;;  %v985_v17 = vld [vmem:[#allocation10 + $0x650] sm:$0xff]  ;;  %v994_v26 = vld [vmem:[#allocation10 + $0x698] sm:$0xff]  ;;  %v3778_v12 = vcombine.low %v1026_v1, %v1030_v2 }
 0x2d0   :  { %2664 = vmatprep.subr.bf16.mxu0 %v3675_v20  ;;  %v990_v20 = vld [vmem:[#allocation10 + $0x678] sm:$0xff]  ;;  %v3736_v28 = vcombine.low %v985_v17, %v989_v18 }
 0x2d1   :  { %2579 = vmatpush1.bf16.msra.mxu1 %v3672_v22  ;;  %v3737_v22 = vcombine.high %v985_v17, %v989_v18  ;;  %v998_v27 = vld [vmem:[#allocation10 + $0x6b8] sm:$0xff]  ;;  %v3738_v31 = vcombine.low %v986_v19, %v990_v20  ;;  %v4105_v17 = vld [vmem:[#allocation11 + $0x40] sm:$0xff]  }
 0x2d2   :  { %2665 = vmatpush1.bf16.msra.mxu0 %v3674_v23  ;;  %2580 = vmatprep.subr.bf16.mxu1 %v3681_v24  ;;  %v3739_v23 = vcombine.high %v986_v19, %v990_v20  ;;  %v993_v24 = vld [vmem:[#allocation10 + $0x690] sm:$0xff]  ;;  %v3746_v41 = vcombine.low %v994_v26, %v998_v27  ;;  %v1034_v9 = vld [vmem:[#allocation10 + $0x7d8] sm:$0xff]  ;;  %v4106_v18 = vld [vmem:[#allocation11 + $0xc0] sm:$0xff]  }
 0x2d3   :  { %2666 = vmatprep.subr.bf16.mxu0 %v3683_v25  ;;  %v997_v25 = vld [vmem:[#allocation10 + $0x6b0] sm:$0xff]  ;;  %v1038_v10 = vld [vmem:[#allocation10 + $0x7f8] sm:$0xff]  ;;  %v4107_v19 = vld [vmem:[#allocation11] sm:$0xff]  }
 0x2d4   :  { %v3744_v40 = vcombine.low %v993_v24, %v997_v25  ;;  %v4108_v20 = vld [vmem:[#allocation11 + $0x80] sm:$0xff]  }
 0x2d5   :  { %2581 = vmatpush1.bf16.msra.mxu1 %v3680_v33  ;;  %v3745_v33 = vcombine.high %v993_v24, %v997_v25  ;;  %v4113_v24 = vld [vmem:[#allocation11 + $0x50] sm:$0xff]  }
 0x2d6   :  { %2667 = vmatpush1.bf16.msra.mxu0 %v3682_v38  ;;  %2582 = vmatprep.subr.bf16.mxu1 %v3689_v34  ;;  %v3747_v38 = vcombine.high %v994_v26, %v998_v27  ;;  %v1001_v34 = vld [vmem:[#allocation10 + $0x6d0] sm:$0xff] }
 0x2d7   :  { %2668 = vmatprep.subr.bf16.mxu0 %v3691_v35  ;;  %v1005_v35 = vld [vmem:[#allocation10 + $0x6f0] sm:$0xff] }
 0x2d8   :  { %v3752_v49 = vcombine.low %v1001_v34, %v1005_v35  ;;  %v4114_v25 = vld [vmem:[#allocation11 + $0xd0] sm:$0xff]  }
 0x2d9   :  { %2583 = vmatpush1.bf16.msra.mxu1 %v3688_v44  ;;  %v3753_v44 = vcombine.high %v1001_v34, %v1005_v35  ;;  %v4115_v26 = vld [vmem:[#allocation11 + $0x10] sm:$0xff]   ;;  %v4122_v34 = vld [vmem:[#allocation11 + $0xe0] sm:$0xff]  }
 0x2da   :  { %2669 = vmatpush1.bf16.msra.mxu0 %v3690_v42  ;;  %2584 = vmatprep.subr.bf16.mxu1 %v3697_v45  ;;  %v3755_v42 = vcombine.high %v1002_v36, %v1006_v37  ;;  %v1009_v45 = vld [vmem:[#allocation10 + $0x710] sm:$0xff]  ;;  %v4123_v35 = vld [vmem:[#allocation11 + $0x20] sm:$0xff]   ;;  %v4125_v37 = vld [vmem:[#allocation11 + $0x68] sm:$0xff]  }
 0x2db   :  { %2670 = vmatprep.subr.bf16.mxu0 %v3699_v46  ;;  %v1013_v46 = vld [vmem:[#allocation10 + $0x730] sm:$0xff]  ;;  %v4124_v36 = vld [vmem:[#allocation11 + $0xa0] sm:$0xff]  }
 0x2dc   :  { %v3760_v60 = vcombine.low %v1009_v45, %v1013_v46  ;;  %v4116_v27 = vld [vmem:[#allocation11 + $0x90] sm:$0xff]  }
 0x2dd   :  { %2585 = vmatpush1.bf16.msra.mxu1 %v3696_v51  ;;  %v3761_v51 = vcombine.high %v1009_v45, %v1013_v46  ;;  %v4130_v45 = vld [vmem:[#allocation11 + $0xf0] sm:$0xff]  }
 0x2de   :  { %2671 = vmatpush1.bf16.msra.mxu0 %v3698_v52  ;;  %2586 = vmatprep.subr.bf16.mxu1 %v3705_v53  ;;  %v3763_v52 = vcombine.high %v1010_v47, %v1014_v48  ;;  %v1017_v53 = vld [vmem:[#allocation10 + $0x750] sm:$0xff]  ;;  %v4133_v48 = vld [vmem:[#allocation11 + $0x78] sm:$0xff]  }
 0x2df   :  { %2672 = vmatprep.subr.bf16.mxu0 %v3707_v54  ;;  %v1021_v54 = vld [vmem:[#allocation10 + $0x770] sm:$0xff] }
 0x2e0   :  { %v3768_v3 = vcombine.low %v1017_v53, %v1021_v54  ;;  %v4131_v46 = vld [vmem:[#allocation11 + $0x30] sm:$0xff]  }
 0x2e1   :  { %2587 = vmatpush1.bf16.msra.mxu1 %v3704_v63  ;;  %v3769_v63 = vcombine.high %v1017_v53, %v1021_v54  ;;  %v4132_v47 = vld [vmem:[#allocation11 + $0xb0] sm:$0xff]   ;;  %v4138_v53 = vld [vmem:[#allocation11 + $0x1c0] sm:$0xff]  }
 0x2e2   :  { %2673 = vmatpush1.bf16.msra.mxu0 %v3706_v0  ;;  %2588 = vmatprep.subr.bf16.mxu1 %v3713_v56  ;;  %v3771_v0 = vcombine.high %v1018_v55, %v1022_v58  ;;  %v1025_v56 = vld [vmem:[#allocation10 + $0x790] sm:$0xff]  ;;  %v4552_v54 = vld [vmem:[%s4596_s6] sm:$0xff] }
 0x2e3   :  { %2674 = vmatprep.subr.bf16.mxu0 %v3715_v57  ;;  %v1029_v57 = vld [vmem:[#allocation10 + $0x7b0] sm:$0xff]  ;;  %v1044_v55 = vrot.slane %v4552_v54, %v4491_v30  ;;  %v1052_v58 = vrot.slane %v4552_v54, %v347_v59 }
 0x2e4   :  { %v3776_v11 = vcombine.low %v1025_v56, %v1029_v57 }
 0x2e5   :  { %2589 = vmatpush1.bf16.msra.mxu1 %v3712_v5  ;;  %v3777_v5 = vcombine.high %v1025_v56, %v1029_v57 }
 0x2e6   :  { %2675 = vmatpush1.bf16.msra.mxu0 %v3714_v6  ;;  %2590 = vmatprep.subr.bf16.mxu1 %v3721_v7  ;;  %v3779_v6 = vcombine.high %v1026_v1, %v1030_v2  ;;  %v1033_v7 = vld [vmem:[#allocation10 + $0x7d0] sm:$0xff] }
 0x2e7   :  { %2676 = vmatprep.subr.bf16.mxu0 %v3723_v8  ;;  %v1037_v8 = vld [vmem:[#allocation10 + $0x7f0] sm:$0xff] }
 0x2e9   :  { %2591 = vmatpush1.bf16.msra.mxu1 %v3720_v13  ;;  %v3785_v13 = vcombine.high %v1033_v7, %v1037_v8 }
 0x2ea   :  { %2677 = vmatpush1.bf16.msra.mxu0 %v3722_v14  ;;  %2592 = vmatprep.subr.bf16.mxu1 %v3729_v15  ;;  %v3787_v14 = vcombine.high %v1034_v9, %v1038_v10  ;;  %v3784_v15 = vcombine.low %v1033_v7, %v1037_v8 }
 0x2eb   :  { %2678 = vmatprep.subr.bf16.mxu0 %v3731_v16  ;;  %v3786_v16 = vcombine.low %v1034_v9, %v1038_v10 }
 0x2ed   :  { %2593 = vmatpush1.bf16.msra.mxu1 %v3728_v43  ;;  %v4109_v43 = vld [vmem:[#allocation11 + $0x48] sm:$0xff]  }
 0x2ee   :  { %2679 = vmatpush1.bf16.msra.mxu0 %v3730_v21  ;;  %2594 = vmatprep.subr.bf16.mxu1 %v3737_v22  ;;  %v4110_v21 = vld [vmem:[#allocation11 + $0xc8] sm:$0xff]  }
 0x2ef   :  { %2680 = vmatprep.subr.bf16.mxu0 %v3739_v23  ;;  %v4111_v22 = vld [vmem:[#allocation11 + $0x8] sm:$0xff]  }
 0x2f0   :  { %v4112_v23 = vld [vmem:[#allocation11 + $0x88] sm:$0xff]  }
 0x2f1   :  { %2595 = vmatpush1.bf16.msra.mxu1 %v3736_v28  ;;  %v4117_v28 = vld [vmem:[#allocation11 + $0x58] sm:$0xff]  }
 0x2f2   :  { %2681 = vmatpush1.bf16.msra.mxu0 %v3738_v31  ;;  %2596 = vmatprep.subr.bf16.mxu1 %v3745_v33  ;;  %v4118_v31 = vld [vmem:[#allocation11 + $0xd8] sm:$0xff]  }
 0x2f3   :  { %2682 = vmatprep.subr.bf16.mxu0 %v3747_v38  ;;  %v4119_v33 = vld [vmem:[#allocation11 + $0x18] sm:$0xff]   ;;  %v4121_v38 = vld [vmem:[#allocation11 + $0x60] sm:$0xff]  }
 0x2f5   :  { %2597 = vmatpush1.bf16.msra.mxu1 %v3744_v40  ;;  %v4126_v40 = vld [vmem:[#allocation11 + $0xe8] sm:$0xff]  }
 0x2f6   :  { %2683 = vmatpush1.bf16.msra.mxu0 %v3746_v41  ;;  %2598 = vmatprep.subr.bf16.mxu1 %v3753_v44  ;;  %v4127_v41 = vld [vmem:[#allocation11 + $0x28] sm:$0xff]  }
 0x2f7   :  { %2684 = vmatprep.subr.bf16.mxu0 %v3755_v42  ;;  %v4128_v44 = vld [vmem:[#allocation11 + $0xa8] sm:$0xff]   ;;  %v4129_v42 = vld [vmem:[#allocation11 + $0x70] sm:$0xff]  }
 0x2f9   :  { %2599 = vmatpush1.bf16.msra.mxu1 %v3752_v49  ;;  %v4134_v49 = vld [vmem:[#allocation11 + $0xf8] sm:$0xff]  }
 0x2fa   :  { %2685 = vmatpush1.bf16.msra.mxu0 %v3754_v50  ;;  %2600 = vmatprep.subr.bf16.mxu1 %v3761_v51  ;;  %v4135_v50 = vld [vmem:[#allocation11 + $0x38] sm:$0xff]  }
 0x2fb   :  { %2686 = vmatprep.subr.bf16.mxu0 %v3763_v52  ;;  %v4136_v51 = vld [vmem:[#allocation11 + $0xb8] sm:$0xff]   ;;  %v4137_v52 = vld [vmem:[#allocation11 + $0x140] sm:$0xff]  }
 0x2fd   :  { %2601 = vmatpush1.bf16.msra.mxu1 %v3760_v60  ;;  %v1048_v60 = vrot.slane %v4552_v54, %v4497_v32 }
 0x2fe   :  { %2687 = vmatpush1.bf16.msra.mxu0 %v3762_v62  ;;  %2602 = vmatprep.subr.bf16.mxu1 %v3769_v63  ;;  %v1056_v62 = vrot.slane %v4552_v54, %v351_v61 }
 0x2ff   :  { %2688 = vmatprep.subr.bf16.mxu0 %v3771_v0 }
 0x301   :  { %2603 = vmatpush1.bf16.msra.mxu1 %v3768_v3 }
 0x302   :  { %2689 = vmatpush1.bf16.msra.mxu0 %v3770_v4  ;;  %2604 = vmatprep.subr.bf16.mxu1 %v3777_v5 }
 0x303   :  { %2690 = vmatprep.subr.bf16.mxu0 %v3779_v6 }
 0x305   :  { %2605 = vmatpush1.bf16.msra.mxu1 %v3776_v11 }
 0x306   :  { %2691 = vmatpush1.bf16.msra.mxu0 %v3778_v12  ;;  %2606 = vmatprep.subr.bf16.mxu1 %v3785_v13 }
 0x307   :  { %2692 = vmatprep.subr.bf16.mxu0 %v3787_v14 }
 0x309   :  { %2607 = vmatpush1.bf16.msra.mxu1 %v3784_v15 }
 0x30a   :  { %2693 = vmatpush1.bf16.msra.mxu0 %v3786_v16  ;;  %3853 = vmatprep.subr.bf16.mxu1 %v4105_v17 }
 0x30b   :  { %3875 = vmatprep.subr.bf16.mxu0 %v4106_v18 }
 0x30c   :  { %2609 = vmatmul.mubr.bf16.vlgmr.msra.gmra.mrb[8].mxu1 %v4527_v39 }
 0x30d   :  { %2695 = vmatmul.mubr.bf16.vlgmr.msra.gmra.mrb[12].mxu0 %v4527_v39  ;;  %3854 = vmatpush3.bf16.msra.mxu1 %v4107_v19  ;;  %v4120_v39 = vld [vmem:[#allocation11 + $0x98] sm:$0xff]  }
 0x30e   :  { %3876 = vmatpush3.bf16.msra.mxu0 %v4108_v20  ;;  %3855 = vmatprep.subr.bf16.mxu1 %v4109_v43 }
 0x30f   :  { %3877 = vmatprep.subr.bf16.mxu0 %v4110_v21 }
 0x311   :  { %3856 = vmatpush3.bf16.msra.mxu1 %v4111_v22 }
 0x312   :  { %3878 = vmatpush3.bf16.msra.mxu0 %v4112_v23  ;;  %3857 = vmatprep.subr.bf16.mxu1 %v4113_v24 }
 0x313   :  { %3879 = vmatprep.subr.bf16.mxu0 %v4114_v25 }
 0x315   :  { %3858 = vmatpush3.bf16.msra.mxu1 %v4115_v26 }
 0x316   :  { %3880 = vmatpush3.bf16.msra.mxu0 %v4116_v27  ;;  %3859 = vmatprep.subr.bf16.mxu1 %v4117_v28  ;;  %v4139_v28 = vld [vmem:[#allocation11 + $0x100] sm:$0xff]  }
 0x317   :  { %3881 = vmatprep.subr.bf16.mxu0 %v4118_v31  ;;  %v4140_v31 = vld [vmem:[#allocation11 + $0x180] sm:$0xff]  }
 0x319   :  { %3860 = vmatpush3.bf16.msra.mxu1 %v4119_v33  ;;  %v4141_v33 = vld [vmem:[#allocation11 + $0x148] sm:$0xff]  }
 0x31a   :  { %3882 = vmatpush3.bf16.msra.mxu0 %v4120_v39  ;;  %3861 = vmatprep.subr.bf16.mxu1 %v4121_v38  ;;  %v4142_v39 = vld [vmem:[#allocation11 + $0x1c8] sm:$0xff]  }
 0x31b   :  { %3883 = vmatprep.subr.bf16.mxu0 %v4122_v34  ;;  %v4143_v38 = vld [vmem:[#allocation11 + $0x108] sm:$0xff]  }
 0x31c   :  { %v4144_v34 = vld [vmem:[#allocation11 + $0x188] sm:$0xff]  }
 0x31d   :  { %3862 = vmatpush3.bf16.msra.mxu1 %v4123_v35  ;;  %v4145_v35 = vld [vmem:[#allocation11 + $0x150] sm:$0xff]  }
 0x31e   :  { %3884 = vmatpush3.bf16.msra.mxu0 %v4124_v36  ;;  %3863 = vmatprep.subr.bf16.mxu1 %v4125_v37  ;;  %v4146_v36 = vld [vmem:[#allocation11 + $0x1d0] sm:$0xff]  }
 0x31f   :  { %3885 = vmatprep.subr.bf16.mxu0 %v4126_v40  ;;  %v4147_v37 = vld [vmem:[#allocation11 + $0x110] sm:$0xff]  }
 0x320   :  { %v4148_v40 = vld [vmem:[#allocation11 + $0x190] sm:$0xff]  }
 0x321   :  { %3864 = vmatpush3.bf16.msra.mxu1 %v4127_v41  ;;  %v4149_v41 = vld [vmem:[#allocation11 + $0x158] sm:$0xff]  }
 0x322   :  { %3886 = vmatpush3.bf16.msra.mxu0 %v4128_v44  ;;  %3865 = vmatprep.subr.bf16.mxu1 %v4129_v42  ;;  %v4150_v44 = vld [vmem:[#allocation11 + $0x1d8] sm:$0xff]  }
 0x323   :  { %3887 = vmatprep.subr.bf16.mxu0 %v4130_v45  ;;  %v4151_v42 = vld [vmem:[#allocation11 + $0x118] sm:$0xff]  }
 0x324   :  { %v4152_v45 = vld [vmem:[#allocation11 + $0x198] sm:$0xff]  }
 0x325   :  { %3866 = vmatpush3.bf16.msra.mxu1 %v4131_v46  ;;  %v4153_v46 = vld [vmem:[#allocation11 + $0x160] sm:$0xff]  }
 0x326   :  { %3888 = vmatpush3.bf16.msra.mxu0 %v4132_v47  ;;  %3867 = vmatprep.subr.bf16.mxu1 %v4133_v48  ;;  %v4154_v47 = vld [vmem:[#allocation11 + $0x1e0] sm:$0xff]  }
 0x327   :  { %3889 = vmatprep.subr.bf16.mxu0 %v4134_v49  ;;  %v4155_v48 = vld [vmem:[#allocation11 + $0x120] sm:$0xff]  }
 0x328   :  { %v4156_v49 = vld [vmem:[#allocation11 + $0x1a0] sm:$0xff]  }
 0x329   :  { %3868 = vmatpush3.bf16.msra.mxu1 %v4135_v50  ;;  %v4157_v50 = vld [vmem:[#allocation11 + $0x168] sm:$0xff]  }
 0x32a   :  { %3890 = vmatpush3.bf16.msra.mxu0 %v4136_v51  ;;  %3897 = vmatprep.subr.bf16.mxu1 %v4137_v52  ;;  %v4158_v51 = vld [vmem:[#allocation11 + $0x1e8] sm:$0xff]  }
 0x32b   :  { %3919 = vmatprep.subr.bf16.mxu0 %v4138_v53  ;;  %v4159_v52 = vld [vmem:[#allocation11 + $0x128] sm:$0xff]  }
 0x32c   :  { %v4160_v53 = vld [vmem:[#allocation11 + $0x1a8] sm:$0xff]  }
 0x35f   :  { %v2438_v63 = vpop.f32.mrb[4].mxu1  ;;  %v2524_v0 = vpop.f32.mrb[8].mxu0 }
 0x360   :  { %v3941_v56 = vadd.f32 %v2438_v63, %v1044_v55  ;;  %v3945_v57 = vadd.f32 %v2524_v0, %v1052_v58  ;;  %v2440_v1 = vpop.f32.mrb[5].mxu1  ;;  %v2526_v2 = vpop.f32.mrb[9].mxu0  ;;  %v4165_v63 = vld [vmem:[#allocation11 + $0x178] sm:$0xff]  }
 0x361   :  { %v3942_v3 = vadd.f32 %v2440_v1, %v1048_v60  ;;  %v3946_v4 = vadd.f32 %v2526_v2, %v1056_v62  ;;  %v2442_v30 = vpop.f32.mrb[6].mxu1  ;;  %v2528_v5 = vpop.f32.mrb[10].mxu0  ;;  %v4166_v0 = vld [vmem:[#allocation11 + $0x1f8] sm:$0xff]   ;;  %v1059_v1 = vsub.s32 4, %v4488_v29  ;;  %v1067_v2 = vsub.s32 6, %v4488_v29 }
 0x362   :  { %v2705_v6 = vmul.f32 0.2, %v3941_v56  ;;  %v2707_v7 = vmul.f32 0.2, %v3945_v57  ;;  %v3943_v59 = vadd.f32 %v2442_v30, %v1044_v55  ;;  %v3947_v8 = vadd.f32 %v2528_v5, %v1052_v58  ;;  %v2444_v9 = vpop.f32.mrb[7].mxu1  ;;  %v2530_v32 = vpop.f32.mrb[11].mxu0 }
 0x363   :  { %v2706_v10 = vmul.f32 0.2, %v3942_v3  ;;  %v2708_v11 = vmul.f32 0.2, %v3946_v4  ;;  %v3944_v12 = vadd.f32 %v2444_v9, %v1048_v60  ;;  %v3948_v61 = vadd.f32 %v2530_v32, %v1056_v62  ;;  %v4161_v55 = vld [vmem:[#allocation11 + $0x170] sm:$0xff]  }
 0x364   :  { %v2713_v13 = vmul.f32 0.2, %v3943_v59  ;;  %v2715_v14 = vmul.f32 0.2, %v3947_v8  ;;  %v2721_v17 = vmax.f32 %v3941_v56, %v2705_v6  ;;  %v2723_v18 = vmax.f32 %v3945_v57, %v2707_v7  ;;  %v4162_v58 = vld [vmem:[#allocation11 + $0x1f0] sm:$0xff]   ;;  %v4167_v56 = vld [vmem:[#allocation11 + $0x138] sm:$0xff]  }
 0x365   :  { %v2714_v15 = vmul.f32 0.2, %v3944_v12  ;;  %v2716_v16 = vmul.f32 0.2, %v3948_v61  ;;  %v2722_v43 = vmax.f32 %v3942_v3, %v2706_v10  ;;  %v2724_v21 = vmax.f32 %v3946_v4, %v2708_v11  ;;  %v4163_v60 = vld [vmem:[#allocation11 + $0x130] sm:$0xff]   ;;  %v4168_v57 = vld [vmem:[#allocation11 + $0x1b8] sm:$0xff]  }
 0x366   :  { %v2729_v19 = vmax.f32 %v3943_v59, %v2713_v13  ;;  %v2731_v20 = vmax.f32 %v3947_v8, %v2715_v14  ;;  %v4164_v62 = vld [vmem:[#allocation11 + $0x1b0] sm:$0xff]   ;;  %v1063_v3 = vsub.s32 5, %v4488_v29  ;;  %v1071_v4 = vsub.s32 7, %v4488_v29 }
 0x367   :  { %v2730_v22 = vmax.f32 %v3944_v12, %v2714_v15  ;;  %v2732_v23 = vmax.f32 %v3948_v61, %v2716_v16  ;;  %v1060_v30 = vrot.slane %v4552_v54, %v1059_v1  ;;  %v1068_v5 = vrot.slane %v4552_v54, %v1067_v2 }
 0x368   :  { %v2737_v24 = vpack.c.bf16 %v2729_v19, %v2721_v17  ;;  %v2739_v25 = vpack.c.bf16 %v2731_v20, %v2723_v18  ;;  %v1064_v6 = vrot.slane %v4552_v54, %v1063_v3  ;;  %v1072_v7 = vrot.slane %v4552_v54, %v1071_v4 }
 0x369   :  { %v2738_v26 = vpack.c.bf16 %v2730_v22, %v2722_v43  ;;  %v2740_v27 = vpack.c.bf16 %v2732_v23, %v2724_v21 }
 0x36b   :  { %3296 = vmatprep.mubr.bf16.mxu1 %v2738_v26  ;;  %3337 = vmatprep.mubr.bf16.mxu0 %v2740_v27 }
 0x36c   :  { %3297 = vmatmul.mubr.bf16.vlgmr.msra.gmra.mrb[12].mxu1 %v2737_v24  ;;  %3338 = vmatmul.mubr.bf16.vlgmr.msra.gmra.mrb[16].mxu0 %v2739_v25 }
 0x36d   :  { %3898 = vmatpush3.bf16.msra.mxu1 %v4139_v28  ;;  %3920 = vmatpush3.bf16.msra.mxu0 %v4140_v31 }
 0x36e   :  { %3899 = vmatprep.subr.bf16.mxu1 %v4141_v33  ;;  %3921 = vmatprep.subr.bf16.mxu0 %v4142_v39 }
 0x371   :  { %3900 = vmatpush3.bf16.msra.mxu1 %v4143_v38  ;;  %3922 = vmatpush3.bf16.msra.mxu0 %v4144_v34 }
 0x372   :  { %3901 = vmatprep.subr.bf16.mxu1 %v4145_v35  ;;  %3923 = vmatprep.subr.bf16.mxu0 %v4146_v36 }
 0x375   :  { %3902 = vmatpush3.bf16.msra.mxu1 %v4147_v37  ;;  %3924 = vmatpush3.bf16.msra.mxu0 %v4148_v40 }
 0x376   :  { %3903 = vmatprep.subr.bf16.mxu1 %v4149_v41  ;;  %3925 = vmatprep.subr.bf16.mxu0 %v4150_v44 }
 0x379   :  { %3904 = vmatpush3.bf16.msra.mxu1 %v4151_v42  ;;  %3926 = vmatpush3.bf16.msra.mxu0 %v4152_v45  ;;  %v3788_v42 = vld [vmem:[%s4598_s8] ss:$0 sm:$0xff]  ;;  %s4352_s8 = smov [#allocation13]  }
 0x37a   :  { %3905 = vmatprep.subr.bf16.mxu1 %v4153_v46  ;;  %3927 = vmatprep.subr.bf16.mxu0 %v4154_v47  ;;  %s3437_s12 = sshll.u32 %s4352_s8, 4  ;;  %s3438_s12 = int_to_ptr.vmem [resolvable:$true] %s3437_s12 }
 0x37b   :  { %s4305_s27 = scalar_lea.vmem %s3438_s12, 256  ;;  %p4310_p7 = scmp.lt.s32.totalorder %s3438_s12, %s3438_s12 }
 0x37c   :  { %p4306_p6 = scmp.ne.s32.totalorder %s3438_s12, %s4305_s27  ;;  %p4311_p8 = scmp.lt.s32.totalorder %s4305_s27, %s4305_s27 }
 0x37d   :  { %3906 = vmatpush3.bf16.msra.mxu1 %v4155_v48  ;;  %3928 = vmatpush3.bf16.msra.mxu0 %v4156_v49 }
 0x37e   :  { %3907 = vmatprep.subr.bf16.mxu1 %v4157_v50  ;;  %3929 = vmatprep.subr.bf16.mxu0 %v4158_v51  ;;  %p4312_p9 = por %p4311_p8, %p4310_p7 }
 0x380   :  { %p4313_p10 = pnand %p4312_p9, %p4306_p6 }
 0x381   :  { %3908 = vmatpush3.bf16.msra.mxu1 %v4159_v52  ;;  %3930 = vmatpush3.bf16.msra.mxu0 %v4160_v53 }
 0x382   :  { %3909 = vmatprep.subr.bf16.mxu1 %v4161_v55  ;;  %3931 = vmatprep.subr.bf16.mxu0 %v4162_v58 }
 0x385   :  { %3910 = vmatpush3.bf16.msra.mxu1 %v4163_v60  ;;  %3932 = vmatpush3.bf16.msra.mxu0 %v4164_v62 }
 0x386   :  { %3911 = vmatprep.subr.bf16.mxu1 %v4165_v63  ;;  %3933 = vmatprep.subr.bf16.mxu0 %v4166_v0 }
 0x389   :  { %3912 = vmatpush3.bf16.msra.mxu1 %v4167_v56  ;;  %3934 = vmatpush3.bf16.msra.mxu0 %v4168_v57 }
 0x3df   :  { %v2610_v59 = vpop.f32.mrb[8].mxu1 }
 0x3e0   :  { %v3949_v8 = vadd.f32 %v2610_v59, %v1060_v30  ;;  %v2696_v9 = vpop.f32.mrb[12].mxu0  ;;  %v2612_v32 = vpop.f32.mrb[9].mxu1 }
 0x3e1   :  { %v3953_v10 = vadd.f32 %v2696_v9, %v1068_v5  ;;  %v3950_v11 = vadd.f32 %v2612_v32, %v1064_v6  ;;  %v2698_v12 = vpop.f32.mrb[13].mxu0  ;;  %v2614_v61 = vpop.f32.mrb[10].mxu1 }
 0x3e2   :  { %v2709_v13 = vmul.f32 0.2, %v3949_v8  ;;  %v3954_v14 = vadd.f32 %v2698_v12, %v1072_v7  ;;  %v3951_v15 = vadd.f32 %v2614_v61, %v1060_v30  ;;  %v2700_v29 = vpop.f32.mrb[14].mxu0  ;;  %v2616_v16 = vpop.f32.mrb[11].mxu1 }
 0x3e3   :  { %v2711_v17 = vmul.f32 0.2, %v3953_v10  ;;  %v2710_v18 = vmul.f32 0.2, %v3950_v11  ;;  %v3955_v19 = vadd.f32 %v2700_v29, %v1068_v5  ;;  %v3952_v20 = vadd.f32 %v2616_v16, %v1064_v6  ;;  %v2702_v43 = vpop.f32.mrb[15].mxu0 }
 0x3e4   :  { %v2712_v21 = vmul.f32 0.2, %v3954_v14  ;;  %v2717_v54 = vmul.f32 0.2, %v3951_v15  ;;  %v3956_v22 = vadd.f32 %v2702_v43, %v1072_v7  ;;  %v2725_v25 = vmax.f32 %v3949_v8, %v2709_v13 }
 0x3e5   :  { %v2719_v23 = vmul.f32 0.2, %v3955_v19  ;;  %v2718_v24 = vmul.f32 0.2, %v3952_v20  ;;  %v2727_v28 = vmax.f32 %v3953_v10, %v2711_v17  ;;  %v2726_v31 = vmax.f32 %v3950_v11, %v2710_v18 }
 0x3e6   :  { %v2733_v26 = vmax.f32 %v3951_v15, %v2717_v54  ;;  %v2720_v27 = vmul.f32 0.2, %v3956_v22  ;;  %v2728_v38 = vmax.f32 %v3954_v14, %v2712_v21 }
 0x3e7   :  { %v2735_v33 = vmax.f32 %v3955_v19, %v2719_v23  ;;  %v2734_v39 = vmax.f32 %v3952_v20, %v2718_v24 }
 0x3e8   :  { %v2741_v34 = vpack.c.bf16 %v2733_v26, %v2725_v25  ;;  %v2736_v35 = vmax.f32 %v3956_v22, %v2720_v27 }
 0x3e9   :  { %v2743_v36 = vpack.c.bf16 %v2735_v33, %v2727_v28  ;;  %v2742_v37 = vpack.c.bf16 %v2734_v39, %v2726_v31 }
 0x3ea   :  { %v2744_v40 = vpack.c.bf16 %v2736_v35, %v2728_v38 }
 0x3eb   :  { %3378 = vmatprep.mubr.bf16.mxu1 %v2742_v37 }
 0x3ec   :  { %3419 = vmatprep.mubr.bf16.mxu0 %v2744_v40  ;;  %3379 = vmatmul.mubr.bf16.vlgmr.msra.gmra.mrb[16].mxu1 %v2741_v34 }
 0x3ed   :  { %3420 = vmatmul.mubr.bf16.vlgmr.msra.gmra.mrb[20].mxu0 %v2743_v36 }
 0x43f   :  { %v3869_v41 = vpop.f32.mrb[12].mxu1  ;;  %v3891_v44 = vpop.f32.mrb[16].mxu0 }
 0x440   :  { %v3870_v45 = vpop.f32.mrb[13].mxu1  ;;  %v3892_v46 = vpop.f32.mrb[17].mxu0 }
 0x441   :  { %v3871_v47 = vadd.f32 %v3870_v45, %v3869_v41  ;;  %v3893_v48 = vadd.f32 %v3892_v46, %v3891_v44  ;;  %v3872_v49 = vpop.f32.mrb[14].mxu1  ;;  %v3894_v50 = vpop.f32.mrb[18].mxu0 }
 0x442   :  { %v3873_v51 = vpop.f32.mrb[15].mxu1  ;;  %v3895_v52 = vpop.f32.mrb[19].mxu0 }
 0x443   :  { %v3299_v53 = vadd.f32 %v3871_v47, %v3788_v42  ;;  %v3874_v55 = vadd.f32 %v3873_v51, %v3872_v49  ;;  %v3896_v58 = vadd.f32 %v3895_v52, %v3894_v50 }
 0x445   :  { %v3340_v60 = vadd.f32 %v3893_v48, %v3299_v53  ;;  %v3302_v62 = vadd.f32 %v3874_v55, %v3788_v42 }
 0x447   :  { %v3343_v63 = vadd.f32 %v3896_v58, %v3302_v62 }
 0x4bf   :  { %v3913_v0 = vpop.f32.mrb[16].mxu1 }
 0x4c0   :  { %v3935_v56 = vpop.f32.mrb[20].mxu0  ;;  %v3914_v57 = vpop.f32.mrb[17].mxu1 }
 0x4c1   :  { %v3915_v1 = vadd.f32 %v3914_v57, %v3913_v0  ;;  %v3936_v2 = vpop.f32.mrb[21].mxu0  ;;  %v3916_v3 = vpop.f32.mrb[18].mxu1 }
 0x4c2   :  { %v3937_v4 = vadd.f32 %v3936_v2, %v3935_v56  ;;  %v3938_v30 = vpop.f32.mrb[22].mxu0  ;;  %v3917_v5 = vpop.f32.mrb[19].mxu1 }
 0x4c3   :  { %v3381_v6 = vadd.f32 %v3915_v1, %v3340_v60  ;;  %v3918_v7 = vadd.f32 %v3917_v5, %v3916_v3  ;;  %v3939_v59 = vpop.f32.mrb[23].mxu0 }
 0x4c4   :  { %v3940_v8 = vadd.f32 %v3939_v59, %v3938_v30 }
 0x4c5   :  { %v3422_v9 = vadd.f32 %v3937_v4, %v3381_v6  ;;  %v3384_v32 = vadd.f32 %v3918_v7, %v3343_v63 }
 0x4c7   :  { %4169 = vtanh.f32 %v3422_v9  ;;  %v3425_v10 = vadd.f32 %v3940_v8, %v3384_v32 }
 0x4c9   :  { %4171 = vtanh.f32 %v3425_v10 }
 0x4d1   :  { %v4170_v11 = vpop.eup %4169 }
 0x4d2   :  { %3430 = vst [vmem:[#allocation13] sm:$0xff] %v4170_v11 }
 0x4d3   :  { %v4172_v12 = vpop.eup %4171 }
 0x4d4   :  { %3431 = vst [vmem:[#allocation13 + $0x8] sm:$0xff] %v4172_v12 }
 0x4d5   :  { %4316 = shalt.err (!%p4313_p10)
}
 0x4d6   :  { %s4317_s17 = scalar_lea.hbm %s4599_s9, 256 }
 0x4d7   :  { %p4318_p11 = scmp.ne.s32.totalorder %s4599_s9, %s4317_s17  ;;  %p4321_p12 = scmp.lt.u32.totalorder %s4317_s17, %s4599_s9 }
 0x4d9   :  { %p4323_p13 = pnand %p4321_p12, %p4318_p11 }
 0x4db   :  { %4326 = shalt.err (!%p4323_p13)
}
 0x4dc   :  { %3443 = dma.vmem_to_hbm [thread:$0]  %s3438_s12, 256, %s4599_s9, [#allocation4], %s4339_s21, %s4339_s21, %s4340_s22  }
 0x4dd   :  { %4335 = dma.done.wait [#allocation4], 256  }
 0x4de   :  { %4336 = vsyncadd [#allocation4], 4294967040 }
 0x4df   :  { %3447 = vsyncpa [#allocation3], 1 }
 0x4e0   :  { %3448 = vsyncpa [#allocation6], 1 }
 0x4e1   :  { %3449 = vsyncpa [#allocation9], 1 }
 0x4e2   :  { %3450 = vsyncpa [#allocation12], 1 }
 0x4e3   :  { %3451 = vsyncpa [#allocation4], 1 }

// kernel: _generator_forward_impl.1
= control target key start
LH: loop header
LB: loop body
LE: loop exit
PB: predicated region body
PF: predicated region fallthrough
CT: control target
= control target key end

     0   :  { %14 = vsyncpa [#allocation3], 0  ;;  %s4590_s0 = inlined_call_operand.hbm [shape: f32[16,100], index: 0, kind: input, shape index: {}]   ;;  %s4591_s1 = inlined_call_operand.hbm [shape: bf16[100,256], index: 1, kind: input, shape index: {}]   ;;  %s4592_s2 = inlined_call_operand.vmem [shape: f32[1,256], index: 2, kind: input, shape index: {}]   ;;  %s4593_s3 = inlined_call_operand.hbm [shape: bf16[256,512], index: 3, kind: input, shape index: {}]   ;;  %s4594_s4 = inlined_call_operand.hbm [shape: f32[1,512], index: 4, kind: input, shape index: {}]   ;;  %s4595_s5 = inlined_call_operand.hbm [shape: bf16[512,1024], index: 5, kind: input, shape index: {}]   ;;  %s4596_s6 = inlined_call_operand.vmem [shape: f32[1,1024], index: 6, kind: input, shape index: {}]   ;;  %s4597_s7 = inlined_call_operand.hbm [shape: bf16[1024,128], index: 7, kind: input, shape index: {}]   ;;  %s4598_s8 = inlined_call_operand.vmem [shape: f32[1,128], index: 8, kind: input, shape index: {}]   ;;  %s4599_s9 = inlined_call_operand.hbm [shape: f32[16,128], index: 9, kind: output, shape index: {}]  }
   0x1   :  { %15 = vsyncpa [#allocation6], 0 }
   0x2   :  { %16 = vsyncpa [#allocation9], 0 }
   0x3   :  { %17 = vsyncpa [#allocation12], 0 }
   0x4   :  { %18 = vsyncpa [#allocation4], 0  ;;  %s4337_s30 = smov [#allocation5]   ;;  %s4338_s11 = smov [#allocation8]  }
   0x5   :  { %s36_s10 = sshll.u32 %s4337_s30, 4  ;;  %s63_s12 = sshll.u32 %s4338_s11, 4  ;;  %s37_s10 = int_to_ptr.vmem [resolvable:$true] %s36_s10  ;;  %s64_s12 = int_to_ptr.vmem [resolvable:$true] %s63_s12 }
   0x6   :  { %s4173_s15 = scalar_lea.hbm %s4591_s1, 1664 }
   0x7   :  { %p4174_p0 = scmp.ne.s32.totalorder %s4591_s1, %s4173_s15  ;;  %p4177_p1 = scmp.lt.u32.totalorder %s4173_s15, %s4591_s1 }
   0x9   :  { %p4179_p2 = pnand %p4177_p1, %p4174_p0 }
   0xb   :  { %4182 = shalt.err (!%p4179_p2)
}
   0xc   :  { %s4183_s20 = scalar_lea.vmem %s37_s10, 1664  ;;  %p4188_p4 = scmp.lt.s32.totalorder %s37_s10, %s37_s10 }
   0xd   :  { %p4184_p3 = scmp.ne.s32.totalorder %s37_s10, %s4183_s20  ;;  %p4189_p5 = scmp.lt.s32.totalorder %s4183_s20, %s4183_s20 }
   0xf   :  { %p4190_p6 = por %p4189_p5, %p4188_p4 }
  0x11   :  { %p4191_p7 = pnand %p4190_p6, %p4184_p3 }
  0x13   :  { %4194 = shalt.err (!%p4191_p7)
}
  0x14   :  { %s4339_s21 = smov 128   ;;  %s4340_s22 = smov 8  }
  0x15   :  { %42 = dma.hbm_to_vmem [thread:$0]  %s4591_s1, 1664, %s37_s10, [#allocation6], %s4339_s21, %s4339_s21, %s4340_s22  }
  0x16   :  { %s4195_s27 = scalar_lea.hbm %s4594_s4, 64 }
  0x17   :  { %p4196_p8 = scmp.ne.s32.totalorder %s4594_s4, %s4195_s27  ;;  %p4199_p9 = scmp.lt.u32.totalorder %s4195_s27, %s4594_s4 }
  0x19   :  { %p4201_p10 = pnand %p4199_p9, %p4196_p8 }
  0x1b   :  { %4204 = shalt.err (!%p4201_p10)
}
  0x1c   :  { %s4205_s13 = scalar_lea.vmem %s64_s12, 64  ;;  %p4210_p12 = scmp.lt.s32.totalorder %s64_s12, %s64_s12 }
  0x1d   :  { %p4206_p11 = scmp.ne.s32.totalorder %s64_s12, %s4205_s13  ;;  %p4211_p13 = scmp.lt.s32.totalorder %s4205_s13, %s4205_s13 }
  0x1f   :  { %p4212_p0 = por %p4211_p13, %p4210_p12 }
  0x21   :  { %p4213_p1 = pnand %p4212_p0, %p4206_p11 }
  0x23   :  { %4216 = shalt.err (!%p4213_p1)
}
  0x24   :  { %66 = dma.hbm_to_vmem [thread:$0]  %s4594_s4, 64, %s64_s12, [#allocation9]  }
  0x25   :  { %s4341_s14 = smov [#allocation2]   ;;  %s4342_s16 = smov [#allocation7]  }
  0x26   :  { %s24_s15 = sshll.u32 %s4341_s14, 4  ;;  %s50_s17 = sshll.u32 %s4342_s16, 4  ;;  %s25_s15 = int_to_ptr.vmem [resolvable:$true] %s24_s15  ;;  %s4430_s17 = int_to_ptr.vmem [resolvable:$true] %s50_s17 }
  0x27   :  { %s4217_s20 = scalar_lea.hbm %s4590_s0, 256 }
  0x28   :  { %p4218_p2 = scmp.ne.s32.totalorder %s4590_s0, %s4217_s20  ;;  %p4221_p3 = scmp.lt.u32.totalorder %s4217_s20, %s4590_s0 }
  0x2a   :  { %p4223_p4 = pnand %p4221_p3, %p4218_p2 }
  0x2c   :  { %4226 = shalt.err (!%p4223_p4)
}
  0x2d   :  { %s4227_s4 = scalar_lea.vmem %s25_s15, 256  ;;  %p4232_p6 = scmp.lt.s32.totalorder %s25_s15, %s25_s15 }
  0x2e   :  { %p4228_p5 = scmp.ne.s32.totalorder %s25_s15, %s4227_s4  ;;  %p4233_p7 = scmp.lt.s32.totalorder %s4227_s4, %s4227_s4 }
  0x30   :  { %p4234_p8 = por %p4233_p7, %p4232_p6 }
  0x32   :  { %p4235_p9 = pnand %p4234_p8, %p4228_p5 }
  0x34   :  { %4238 = shalt.err (!%p4235_p9)
}
  0x35   :  { %30 = dma.hbm_to_vmem [thread:$0]  %s4590_s0, 256, %s25_s15, [#allocation3], %s4339_s21, %s4339_s21, %s4340_s22  }
  0x36   :  { %s4239_s30 = scalar_lea.hbm %s4593_s3, 8192 }
  0x37   :  { %p4240_p10 = scmp.ne.s32.totalorder %s4593_s3, %s4239_s30  ;;  %p4243_p11 = scmp.lt.u32.totalorder %s4239_s30, %s4593_s3 }
  0x39   :  { %p4245_p12 = pnand %p4243_p11, %p4240_p10 }
  0x3b   :  { %4248 = shalt.err (!%p4245_p12)
}
  0x3c   :  { %s4249_s14 = scalar_lea.vmem %s4430_s17, 8192  ;;  %p4254_p0 = scmp.lt.s32.totalorder %s4430_s17, %s4430_s17 }
  0x3d   :  { %p4250_p13 = scmp.ne.s32.totalorder %s4430_s17, %s4249_s14  ;;  %p4255_p1 = scmp.lt.s32.totalorder %s4249_s14, %s4249_s14 }
  0x3f   :  { %p4256_p2 = por %p4255_p1, %p4254_p0 }
  0x41   :  { %p4257_p3 = pnand %p4256_p2, %p4250_p13 }
  0x43   :  { %4260 = shalt.err (!%p4257_p3)
}
  0x44   :  { %s4343_s0 = smov 256   ;;  %s4344_s15 = smov 16  }
  0x45   :  { %56 = dma.hbm_to_vmem [thread:$0]  %s4593_s3, 8192, %s4430_s17, [#allocation6], %s4343_s0, %s4343_s0, %s4344_s15  }
  0x46   :  { %s4345_s19 = smov [#allocation10]   ;;  %s4261_s25 = scalar_lea.hbm %s4595_s5, 32768 }
  0x47   :  { %s72_s20 = sshll.u32 %s4345_s19, 4  ;;  %p4262_p4 = scmp.ne.s32.totalorder %s4595_s5, %s4261_s25  ;;  %s73_s20 = int_to_ptr.vmem [resolvable:$true] %s72_s20 }
  0x48   :  { %p4265_p5 = scmp.lt.u32.totalorder %s4261_s25, %s4595_s5 }
  0x4a   :  { %p4267_p6 = pnand %p4265_p5, %p4262_p4 }
  0x4c   :  { %4270 = shalt.err (!%p4267_p6)
}
  0x4d   :  { %s4271_s28 = scalar_lea.vmem %s73_s20, 32768  ;;  %p4276_p8 = scmp.lt.s32.totalorder %s73_s20, %s73_s20 }
  0x4e   :  { %p4272_p7 = scmp.ne.s32.totalorder %s73_s20, %s4271_s28  ;;  %p4277_p9 = scmp.lt.s32.totalorder %s4271_s28, %s4271_s28 }
  0x50   :  { %p4278_p10 = por %p4277_p9, %p4276_p8 }
  0x52   :  { %p4279_p11 = pnand %p4278_p10, %p4272_p7 }
  0x54   :  { %4282 = shalt.err (!%p4279_p11)
}
  0x55   :  { %s4346_s3 = smov 512   ;;  %s4347_s17 = smov 32  }
  0x56   :  { %78 = dma.hbm_to_vmem [thread:$0]  %s4595_s5, 32768, %s73_s20, [#allocation9], %s4346_s3, %s4346_s3, %s4347_s17  }
  0x57   :  { %s4348_s11 = smov [#allocation11]   ;;  %s4283_s14 = scalar_lea.hbm %s4597_s7, 8192 }
  0x58   :  { %s86_s13 = sshll.u32 %s4348_s11, 4  ;;  %p4284_p12 = scmp.ne.s32.totalorder %s4597_s7, %s4283_s14  ;;  %s87_s13 = int_to_ptr.vmem [resolvable:$true] %s86_s13 }
  0x59   :  { %p4287_p13 = scmp.lt.u32.totalorder %s4283_s14, %s4597_s7 }
  0x5b   :  { %p4289_p0 = pnand %p4287_p13, %p4284_p12 }
  0x5d   :  { %4292 = shalt.err (!%p4289_p0)
}
  0x5e   :  { %s4293_s19 = scalar_lea.vmem %s87_s13, 8192  ;;  %p4298_p2 = scmp.lt.s32.totalorder %s87_s13, %s87_s13 }
  0x5f   :  { %p4294_p1 = scmp.ne.s32.totalorder %s87_s13, %s4293_s19  ;;  %p4299_p3 = scmp.lt.s32.totalorder %s4293_s19, %s4293_s19 }
  0x61   :  { %p4300_p4 = por %p4299_p3, %p4298_p2 }
  0x63   :  { %p4301_p5 = pnand %p4300_p4, %p4294_p1 }
  0x65   :  { %4304 = shalt.err (!%p4301_p5)
}
  0x66   :  { %s4349_s5 = smov 64   ;;  %s4350_s20 = smov 4  }
  0x67   :  { %92 = dma.hbm_to_vmem [thread:$0]  %s4597_s7, 8192, %s87_s13, [#allocation12], %s4349_s5, %s4349_s5, %s4350_s20  }
  0x68   :  { %4327 = dma.done.wait [#allocation3], 256  }
  0x69   :  { %4328 = vsyncadd [#allocation3], 4294967040 }
  0x6a   :  { %4329 = dma.done.wait [#allocation6], 9856  }
  0x6b   :  { %4330 = vsyncadd [#allocation6], 4294957440 }
  0x6c   :  { %4331 = dma.done.wait [#allocation9], 32832  }
  0x6d   :  { %4332 = vsyncadd [#allocation9], 4294934464 }
  0x6e   :  { %4333 = dma.done.wait [#allocation12], 8192  }
  0x6f   :  { %4334 = vsyncadd [#allocation12], 4294959104  ;;  %v4351_v0 = vmov 0   ;;  %v3989_v1 = vld [vmem:[#allocation5 + $0x4] ss:$8 sps:$4 sm:$0xff]   ;;  %vm211_vm0 = vcmask 1041408  }
  0x70   :  { %250 = vmatprep.mubr.bf16.mxu0 %v4351_v0  ;;  %v3991_v2 = vld [vmem:[#allocation5] ss:$8 sps:$4 sm:$0xff]   ;;  %218 = vmatprep.subr.bf16.mxu0 %v3989_v1  ;;  %v3992_v3 = vld [vmem:[#allocation5 + $0x14] ss:$8 sps:$4 sm:$0xff]   ;;  %v3994_v4 = vld [vmem:[#allocation5 + $0x10] ss:$8 sps:$4 sm:$0xff]  }
  0x71   :  { %219 = vmatpush1.bf16.msra.mxu0 %v3991_v2  ;;  %v3995_v5 = vld [vmem:[#allocation5 + $0x24] ss:$8 sps:$4 sm:$0xff]   ;;  %v3997_v6 = vld [vmem:[#allocation5 + $0x20] ss:$8 sps:$4 sm:$0xff]   ;;  %v3998_v7 = vld [vmem:[#allocation5 + $0x34] ss:$8 sps:$4 sm:$0xff]  }
  0x72   :  { %220 = vmatprep.subr.bf16.mxu0 %v3992_v3  ;;  %v4009_v8 = vld [vmem:[#allocation7 + $0x4] ss:$16 sps:$4 sm:$0xff]   ;;  %v4000_v9 = vld [vmem:[#allocation5 + $0x30] ss:$8 sps:$4 sm:$0xff]   ;;  %v4003_v13 = vld [vmem:[#allocation5 + $0x40] ss:$8 sps:$4 sm:$0xff]  }
  0x73   :  { %v4001_v10 = vld [vmem:[#allocation5 + $0x44] ss:$8 sps:$4 sm:$0xff]   ;;  %677 = vmatprep.subr.bf16.mxu1 %v4009_v8  ;;  %v4014_v11 = vld [vmem:[#allocation7] ss:$16 sps:$4 sm:$0xff]   ;;  %v4004_v16 = vld [vmem:[#allocation5 + $0x54] ss:$8 sps:$4 sm:$0xff]  }
  0x74   :  { %v4015_v12 = vld [vmem:[#allocation7 + $0x24] ss:$16 sps:$4 sm:$0xff]   ;;  %678 = vmatpush1.bf16.msra.mxu1 %v4014_v11  ;;  %v4020_v14 = vld [vmem:[#allocation7 + $0x20] ss:$16 sps:$4 sm:$0xff]   ;;  %v129_v17 = vld [vmem:[#allocation5 + $0x60] sm:$0x33] }
  0x75   :  { %221 = vmatpush1.bf16.msra.mxu0 %v3994_v4  ;;  %679 = vmatprep.subr.bf16.mxu1 %v4015_v12  ;;  %v4021_v15 = vld [vmem:[#allocation7 + $0x44] ss:$16 sps:$4 sm:$0xff]   ;;  %v4026_v18 = vld [vmem:[#allocation7 + $0x40] ss:$16 sps:$4 sm:$0xff]   ;;  %v3465_v21 = vcombine.high %v129_v17, %v129_v17  ;;  %v3464_v22 = vcombine.low %v129_v17, %v129_v17  ;;  %v114_v23 = vld [vmem:[#allocation2] sm:$0xff]  ;;  %vm207_vm1 = vcmask 818176  }
  0x76   :  { %222 = vmatprep.subr.bf16.mxu0 %v3995_v5  ;;  %v4027_v19 = vld [vmem:[#allocation7 + $0x64] ss:$16 sps:$4 sm:$0xff]   ;;  %v4006_v20 = vld [vmem:[#allocation5 + $0x50] ss:$8 sps:$4 sm:$0xff]   ;;  %v4013_v28 = vld [vmem:[#allocation7 + $0xc] ss:$16 sps:$4 sm:$0xff]  }
  0x77   :  { %v4032_v24 = vld [vmem:[#allocation7 + $0x60] ss:$16 sps:$4 sm:$0xff]   ;;  %v4033_v25 = vld [vmem:[#allocation7 + $0x84] ss:$16 sps:$4 sm:$0xff]   ;;  %v213_v27 = vsel %vm211_vm0, %v3464_v22, 0 }
  0x78   :  { %680 = vmatpush1.bf16.msra.mxu1 %v4020_v14  ;;  %v115_v26 = vld [vmem:[#allocation2 + $0x8] sm:$0xff]  ;;  %v4011_v32 = vld [vmem:[#allocation7 + $0x8] ss:$16 sps:$4 sm:$0xff]   ;;  %v4019_v33 = vld [vmem:[#allocation7 + $0x2c] ss:$16 sps:$4 sm:$0xff]  }
  0x79   :  { %223 = vmatpush1.bf16.msra.mxu0 %v3997_v6  ;;  %681 = vmatprep.subr.bf16.mxu1 %v4021_v15  ;;  %v4038_v29 = vld [vmem:[#allocation7 + $0x80] ss:$16 sps:$4 sm:$0xff]   ;;  %v116_v30 = vpack.c.bf16 %v115_v26, %v114_v23  ;;  %v4039_v31 = vld [vmem:[#allocation7 + $0xa4] ss:$16 sps:$4 sm:$0xff]   ;;  %v4017_v36 = vld [vmem:[#allocation7 + $0x28] ss:$16 sps:$4 sm:$0xff]  }
  0x7a   :  { %224 = vmatprep.subr.bf16.mxu0 %v3998_v7  ;;  %v4044_v34 = vld [vmem:[#allocation7 + $0xa0] ss:$16 sps:$4 sm:$0xff]   ;;  %v4045_v35 = vld [vmem:[#allocation7 + $0xc4] ss:$16 sps:$4 sm:$0xff]   ;;  %v4025_v37 = vld [vmem:[#allocation7 + $0x4c] ss:$16 sps:$4 sm:$0xff]  }
  0x7b   :  { %v4050_v38 = vld [vmem:[#allocation7 + $0xc0] ss:$16 sps:$4 sm:$0xff]   ;;  %v4051_v39 = vld [vmem:[#allocation7 + $0xe4] ss:$16 sps:$4 sm:$0xff]   ;;  %v4023_v40 = vld [vmem:[#allocation7 + $0x48] ss:$16 sps:$4 sm:$0xff]  }
  0x7c   :  { %682 = vmatpush1.bf16.msra.mxu1 %v4026_v18  ;;  %v4031_v41 = vld [vmem:[#allocation7 + $0x6c] ss:$16 sps:$4 sm:$0xff]   ;;  %v4056_v42 = vld [vmem:[#allocation7 + $0xe0] ss:$16 sps:$4 sm:$0xff]   ;;  %v4057_v43 = vld [vmem:[#allocation7 + $0x104] ss:$16 sps:$4 sm:$0xff]  }
  0x7d   :  { %225 = vmatpush1.bf16.msra.mxu0 %v4000_v9  ;;  %683 = vmatprep.subr.bf16.mxu1 %v4027_v19  ;;  %v4029_v44 = vld [vmem:[#allocation7 + $0x68] ss:$16 sps:$4 sm:$0xff]   ;;  %v4037_v45 = vld [vmem:[#allocation7 + $0x8c] ss:$16 sps:$4 sm:$0xff]   ;;  %v4062_v46 = vld [vmem:[#allocation7 + $0x100] ss:$16 sps:$4 sm:$0xff]  }
  0x7e   :  { %226 = vmatprep.subr.bf16.mxu0 %v4001_v10  ;;  %v4063_v47 = vld [vmem:[#allocation7 + $0x124] ss:$16 sps:$4 sm:$0xff]   ;;  %v4035_v48 = vld [vmem:[#allocation7 + $0x88] ss:$16 sps:$4 sm:$0xff]   ;;  %v4043_v49 = vld [vmem:[#allocation7 + $0xac] ss:$16 sps:$4 sm:$0xff]  }
  0x7f   :  { %v4068_v50 = vld [vmem:[#allocation7 + $0x120] ss:$16 sps:$4 sm:$0xff]   ;;  %v4069_v51 = vld [vmem:[#allocation7 + $0x144] ss:$16 sps:$4 sm:$0xff]   ;;  %v4041_v52 = vld [vmem:[#allocation7 + $0xa8] ss:$16 sps:$4 sm:$0xff]  }
  0x80   :  { %684 = vmatpush1.bf16.msra.mxu1 %v4032_v24  ;;  %v4049_v53 = vld [vmem:[#allocation7 + $0xcc] ss:$16 sps:$4 sm:$0xff]   ;;  %v4074_v54 = vld [vmem:[#allocation7 + $0x140] ss:$16 sps:$4 sm:$0xff]   ;;  %v4075_v55 = vld [vmem:[#allocation7 + $0x164] ss:$16 sps:$4 sm:$0xff]  }
  0x81   :  { %227 = vmatpush1.bf16.msra.mxu0 %v4003_v13  ;;  %685 = vmatprep.subr.bf16.mxu1 %v4033_v25  ;;  %v4047_v56 = vld [vmem:[#allocation7 + $0xc8] ss:$16 sps:$4 sm:$0xff]   ;;  %v4055_v57 = vld [vmem:[#allocation7 + $0xec] ss:$16 sps:$4 sm:$0xff]   ;;  %v4080_v58 = vld [vmem:[#allocation7 + $0x160] ss:$16 sps:$4 sm:$0xff]  }
  0x82   :  { %228 = vmatprep.subr.bf16.mxu0 %v4004_v16  ;;  %v4081_v59 = vld [vmem:[#allocation7 + $0x184] ss:$16 sps:$4 sm:$0xff]   ;;  %v4053_v60 = vld [vmem:[#allocation7 + $0xe8] ss:$16 sps:$4 sm:$0xff]   ;;  %v4061_v61 = vld [vmem:[#allocation7 + $0x10c] ss:$16 sps:$4 sm:$0xff]  }
  0x83   :  { %v4086_v62 = vld [vmem:[#allocation7 + $0x180] ss:$16 sps:$4 sm:$0xff]   ;;  %v4059_v63 = vld [vmem:[#allocation7 + $0x108] ss:$16 sps:$4 sm:$0xff]   ;;  %v4067_v0 = vld [vmem:[#allocation7 + $0x12c] ss:$16 sps:$4 sm:$0xff]  }
  0x84   :  { %686 = vmatpush1.bf16.msra.mxu1 %v4038_v29  ;;  %v4065_v1 = vld [vmem:[#allocation7 + $0x128] ss:$16 sps:$4 sm:$0xff]   ;;  %v4073_v2 = vld [vmem:[#allocation7 + $0x14c] ss:$16 sps:$4 sm:$0xff]   ;;  %v4087_v8 = vld [vmem:[#allocation7 + $0x1a4] ss:$16 sps:$4 sm:$0xff]  }
  0x85   :  { %229 = vmatpush1.bf16.msra.mxu0 %v4006_v20  ;;  %687 = vmatprep.subr.bf16.mxu1 %v4039_v31  ;;  %v4071_v3 = vld [vmem:[#allocation7 + $0x148] ss:$16 sps:$4 sm:$0xff]   ;;  %v4079_v4 = vld [vmem:[#allocation7 + $0x16c] ss:$16 sps:$4 sm:$0xff]   ;;  %v4092_v11 = vld [vmem:[#allocation7 + $0x1a0] ss:$16 sps:$4 sm:$0xff]  }
  0x86   :  { %3466 = vmatprep.subr.msk.bf16.mxu0 %vm211_vm0, %v3465_v21  ;;  %v4077_v5 = vld [vmem:[#allocation7 + $0x168] ss:$16 sps:$4 sm:$0xff]   ;;  %v4085_v6 = vld [vmem:[#allocation7 + $0x18c] ss:$16 sps:$4 sm:$0xff]   ;;  %v4093_v12 = vld [vmem:[#allocation7 + $0x1c4] ss:$16 sps:$4 sm:$0xff]  }
  0x87   :  { %v4083_v7 = vld [vmem:[#allocation7 + $0x188] ss:$16 sps:$4 sm:$0xff]   ;;  %v4091_v9 = vld [vmem:[#allocation7 + $0x1ac] ss:$16 sps:$4 sm:$0xff]   ;;  %v4098_v15 = vld [vmem:[#allocation7 + $0x1c0] ss:$16 sps:$4 sm:$0xff]  }
  0x88   :  { %688 = vmatpush1.bf16.msra.mxu1 %v4044_v34  ;;  %v4089_v10 = vld [vmem:[#allocation7 + $0x1a8] ss:$16 sps:$4 sm:$0xff]   ;;  %v4097_v13 = vld [vmem:[#allocation7 + $0x1cc] ss:$16 sps:$4 sm:$0xff]   ;;  %v4099_v16 = vld [vmem:[#allocation7 + $0x1e4] ss:$16 sps:$4 sm:$0xff]  }
  0x89   :  { %231 = vmatpush1.bf16.msra.mxu0 %v213_v27  ;;  %689 = vmatprep.subr.bf16.mxu1 %v4045_v35  ;;  %v4095_v14 = vld [vmem:[#allocation7 + $0x1c8] ss:$16 sps:$4 sm:$0xff]   ;;  %v4103_v17 = vld [vmem:[#allocation7 + $0x1ec] ss:$16 sps:$4 sm:$0xff]   ;;  %v4104_v19 = vld [vmem:[#allocation7 + $0x1e0] ss:$16 sps:$4 sm:$0xff]  }
  0x8a   :  { %720 = vmatprep.subr.bf16.mxu0 %v4013_v28  ;;  %v4101_v18 = vld [vmem:[#allocation7 + $0x1e8] ss:$16 sps:$4 sm:$0xff]   ;;  %v784_v22 = vld [vmem:[#allocation10 + $0x8] sm:$0xff]  ;;  %v132_v28 = vlaneseq }
  0x8b   :  { %v783_v20 = vld [vmem:[#allocation10] sm:$0xff]  ;;  %v788_v25 = vld [vmem:[#allocation10 + $0x28] sm:$0xff] }
  0x8c   :  { %3467 = vmatmul.mubr.msk.bf16.vlgmr.msra.gmra.mrb[0].mxu0 %vm207_vm1, %v116_v30  ;;  %690 = vmatpush1.bf16.msra.mxu1 %v4050_v38  ;;  %v787_v21 = vld [vmem:[#allocation10 + $0x20] sm:$0xff]  ;;  %v3534_v26 = vcombine.low %v784_v22, %v788_v25  ;;  %v3535_v27 = vcombine.high %v784_v22, %v788_v25  ;;  %v4488_v29 = vshrl.u32 %v132_v28, 7  ;;  %v828_v22 = vld [vmem:[#allocation10 + $0x168] sm:$0xff] }
  0x8d   :  { %721 = vmatpush1.bf16.msra.mxu0 %v4011_v32  ;;  %691 = vmatprep.subr.bf16.mxu1 %v4051_v39  ;;  %v3532_v23 = vcombine.low %v783_v20, %v787_v21  ;;  %v3533_v24 = vcombine.high %v783_v20, %v787_v21  ;;  %v130_v31 = vld [vmem:[%s4592_s2] sm:$0x3]  ;;  %v824_v21 = vld [vmem:[#allocation10 + $0x148] sm:$0xff] }
  0x8e   :  { %722 = vmatprep.subr.bf16.mxu0 %v4019_v33  ;;  %v4491_v30 = vsub.s32 0, %v4488_v29  ;;  %v4497_v32 = vsub.s32 1, %v4488_v29  ;;  %v827_v20 = vld [vmem:[#allocation10 + $0x160] sm:$0xff] }
  0x8f   :  { %v835_v28 = vld [vmem:[#allocation10 + $0x1a0] sm:$0xff] }
  0x90   :  { %692 = vmatpush1.bf16.msra.mxu1 %v4056_v42  ;;  %v135_v33 = vrot.slane %v130_v31, %v4491_v30  ;;  %v139_v34 = vrot.slane %v130_v31, %v4497_v32  ;;  %v832_v31 = vld [vmem:[#allocation10 + $0x188] sm:$0xff] }
  0x91   :  { %723 = vmatpush1.bf16.msra.mxu0 %v4017_v36  ;;  %693 = vmatprep.subr.bf16.mxu1 %v4057_v43 }
  0x92   :  { %724 = vmatprep.subr.bf16.mxu0 %v4025_v37 }
  0x94   :  { %694 = vmatpush1.bf16.msra.mxu1 %v4062_v46 }
  0x95   :  { %725 = vmatpush1.bf16.msra.mxu0 %v4023_v40  ;;  %695 = vmatprep.subr.bf16.mxu1 %v4063_v47 }
  0x96   :  { %726 = vmatprep.subr.bf16.mxu0 %v4031_v41 }
  0x98   :  { %696 = vmatpush1.bf16.msra.mxu1 %v4068_v50 }
  0x99   :  { %727 = vmatpush1.bf16.msra.mxu0 %v4029_v44  ;;  %697 = vmatprep.subr.bf16.mxu1 %v4069_v51 }
  0x9a   :  { %728 = vmatprep.subr.bf16.mxu0 %v4037_v45 }
  0x9c   :  { %698 = vmatpush1.bf16.msra.mxu1 %v4074_v54  ;;  %v796_v54 = vld [vmem:[#allocation10 + $0x68] sm:$0xff] }
  0x9d   :  { %729 = vmatpush1.bf16.msra.mxu0 %v4035_v48  ;;  %699 = vmatprep.subr.bf16.mxu1 %v4075_v55 }
  0x9e   :  { %730 = vmatprep.subr.bf16.mxu0 %v4043_v49  ;;  %v791_v49 = vld [vmem:[#allocation10 + $0x40] sm:$0xff] }
  0xa0   :  { %700 = vmatpush1.bf16.msra.mxu1 %v4080_v58 }
  0xa1   :  { %731 = vmatpush1.bf16.msra.mxu0 %v4041_v52  ;;  %701 = vmatprep.subr.bf16.mxu1 %v4081_v59  ;;  %v795_v52 = vld [vmem:[#allocation10 + $0x60] sm:$0xff] }
  0xa2   :  { %732 = vmatprep.subr.bf16.mxu0 %v4049_v53  ;;  %v792_v53 = vld [vmem:[#allocation10 + $0x48] sm:$0xff]  ;;  %v799_v59 = vld [vmem:[#allocation10 + $0x80] sm:$0xff] }
  0xa3   :  { %v3543_v58 = vcombine.high %v792_v53, %v796_v54 }
  0xa4   :  { %702 = vmatpush1.bf16.msra.mxu1 %v4086_v62  ;;  %v804_v62 = vld [vmem:[#allocation10 + $0xa8] sm:$0xff] }
  0xa5   :  { %733 = vmatpush1.bf16.msra.mxu0 %v4047_v56  ;;  %703 = vmatprep.subr.bf16.mxu1 %v4087_v8 }
  0xa6   :  { %734 = vmatprep.subr.bf16.mxu0 %v4055_v57  ;;  %v3541_v57 = vcombine.high %v791_v49, %v795_v52 }
  0xa8   :  { %704 = vmatpush1.bf16.msra.mxu1 %v4092_v11  ;;  %v815_v11 = vld [vmem:[#allocation10 + $0x100] sm:$0xff] }
  0xa9   :  { %735 = vmatpush1.bf16.msra.mxu0 %v4053_v60  ;;  %705 = vmatprep.subr.bf16.mxu1 %v4093_v12  ;;  %v803_v60 = vld [vmem:[#allocation10 + $0xa0] sm:$0xff] }
  0xaa   :  { %736 = vmatprep.subr.bf16.mxu0 %v4061_v61  ;;  %v800_v61 = vld [vmem:[#allocation10 + $0x88] sm:$0xff]  ;;  %v819_v12 = vld [vmem:[#allocation10 + $0x120] sm:$0xff] }
  0xab   :  { %v3550_v8 = vcombine.low %v800_v61, %v804_v62 }
  0xac   :  { %706 = vmatpush1.bf16.msra.mxu1 %v4098_v15 }
  0xad   :  { %737 = vmatpush1.bf16.msra.mxu0 %v4059_v63  ;;  %707 = vmatprep.subr.bf16.mxu1 %v4099_v16  ;;  %v3540_v63 = vcombine.low %v791_v49, %v795_v52  ;;  %v852_v49 = vld [vmem:[#allocation10 + $0x228] sm:$0xff] }
  0xae   :  { %738 = vmatprep.subr.bf16.mxu0 %v4067_v0  ;;  %v3542_v0 = vcombine.low %v792_v53, %v796_v54  ;;  %v855_v54 = vld [vmem:[#allocation10 + $0x240] sm:$0xff] }
  0xb0   :  { %708 = vmatpush1.bf16.msra.mxu1 %v4104_v19  ;;  %v823_v19 = vld [vmem:[#allocation10 + $0x140] sm:$0xff] }
  0xb1   :  { %739 = vmatpush1.bf16.msra.mxu0 %v4065_v1  ;;  %2361 = vmatprep.subr.bf16.mxu1 %v3533_v24  ;;  %v3549_v1 = vcombine.high %v799_v59, %v803_v60  ;;  %v3573_v25 = vcombine.high %v823_v19, %v827_v20 }
  0xb2   :  { %740 = vmatprep.subr.bf16.mxu0 %v4073_v2  ;;  %v3551_v2 = vcombine.high %v800_v61, %v804_v62  ;;  %v863_v62 = vld [vmem:[#allocation10 + $0x280] sm:$0xff] }
  0xb5   :  { %741 = vmatpush1.bf16.msra.mxu0 %v4071_v3  ;;  %v807_v3 = vld [vmem:[#allocation10 + $0xc0] sm:$0xff] }
  0xb6   :  { %742 = vmatprep.subr.bf16.mxu0 %v4079_v4  ;;  %v811_v4 = vld [vmem:[#allocation10 + $0xe0] sm:$0xff] }
  0xb7   :  { %v3556_v15 = vcombine.low %v807_v3, %v811_v4 }
  0xb9   :  { %743 = vmatpush1.bf16.msra.mxu0 %v4077_v5  ;;  %v808_v5 = vld [vmem:[#allocation10 + $0xc8] sm:$0xff] }
  0xba   :  { %744 = vmatprep.subr.bf16.mxu0 %v4085_v6  ;;  %v812_v6 = vld [vmem:[#allocation10 + $0xe8] sm:$0xff] }
  0xbb   :  { %v3558_v16 = vcombine.low %v808_v5, %v812_v6 }
  0xbd   :  { %745 = vmatpush1.bf16.msra.mxu0 %v4083_v7  ;;  %v3548_v7 = vcombine.low %v799_v59, %v803_v60 }
  0xbe   :  { %746 = vmatprep.subr.bf16.mxu0 %v4091_v9  ;;  %v3557_v9 = vcombine.high %v807_v3, %v811_v4 }
  0xc1   :  { %747 = vmatpush1.bf16.msra.mxu0 %v4089_v10  ;;  %v3559_v10 = vcombine.high %v808_v5, %v812_v6  ;;  %v871_v6 = vld [vmem:[#allocation10 + $0x2c0] sm:$0xff] }
  0xc2   :  { %748 = vmatprep.subr.bf16.mxu0 %v4097_v13  ;;  %v816_v13 = vld [vmem:[#allocation10 + $0x108] sm:$0xff] }
  0xc5   :  { %749 = vmatpush1.bf16.msra.mxu0 %v4095_v14  ;;  %v820_v14 = vld [vmem:[#allocation10 + $0x128] sm:$0xff] }
  0xc6   :  { %750 = vmatprep.subr.bf16.mxu0 %v4103_v17  ;;  %v3565_v17 = vcombine.high %v815_v11, %v819_v12  ;;  %v3566_v24 = vcombine.low %v816_v13, %v820_v14 }
  0xc9   :  { %751 = vmatpush1.bf16.msra.mxu0 %v4101_v18  ;;  %v3567_v18 = vcombine.high %v816_v13, %v820_v14  ;;  %v879_v14 = vld [vmem:[#allocation10 + $0x300] sm:$0xff] }
  0xca   :  { %2447 = vmatprep.subr.bf16.mxu0 %v3535_v27  ;;  %v831_v27 = vld [vmem:[#allocation10 + $0x180] sm:$0xff] }
 0x15f   :  { %v252_v35 = vpop.f32.mrb[0].mxu0 }
 0x160   :  { %v253_v36 = vadd.f32 %v252_v35, %v135_v33  ;;  %v254_v37 = vpop.f32.mrb[1].mxu0  ;;  %v3574_v35 = vcombine.low %v824_v21, %v828_v22 }
 0x161   :  { %v255_v38 = vadd.f32 %v254_v37, %v139_v34  ;;  %v256_v39 = vpop.f32.mrb[2].mxu0 }
 0x162   :  { %v261_v40 = vmul.f32 0.2, %v253_v36  ;;  %v257_v41 = vadd.f32 %v256_v39, %v135_v33  ;;  %v258_v42 = vpop.f32.mrb[3].mxu0  ;;  %v836_v33 = vld [vmem:[#allocation10 + $0x1a8] sm:$0xff]  ;;  %v843_v39 = vld [vmem:[#allocation10 + $0x1e0] sm:$0xff] }
 0x163   :  { %v262_v43 = vmul.f32 0.2, %v255_v38  ;;  %v259_v44 = vadd.f32 %v258_v42, %v139_v34  ;;  %v3572_v34 = vcombine.low %v823_v19, %v827_v20  ;;  %v3583_v37 = vcombine.high %v832_v31, %v836_v33 }
 0x164   :  { %v263_v45 = vmul.f32 0.2, %v257_v41  ;;  %v265_v47 = vmax.f32 %v253_v36, %v261_v40  ;;  %v3581_v36 = vcombine.high %v831_v27, %v835_v28  ;;  %v840_v40 = vld [vmem:[#allocation10 + $0x1c8] sm:$0xff]  ;;  %v3580_v42 = vcombine.low %v831_v27, %v835_v28 }
 0x165   :  { %v264_v46 = vmul.f32 0.2, %v259_v44  ;;  %v266_v50 = vmax.f32 %v255_v38, %v262_v43  ;;  %v839_v38 = vld [vmem:[#allocation10 + $0x1c0] sm:$0xff]  ;;  %v3582_v43 = vcombine.low %v832_v31, %v836_v33  ;;  %v892_v28 = vld [vmem:[#allocation10 + $0x368] sm:$0xff] }
 0x166   :  { %v267_v48 = vmax.f32 %v257_v41, %v263_v45  ;;  %v844_v41 = vld [vmem:[#allocation10 + $0x1e8] sm:$0xff] }
 0x167   :  { %v268_v51 = vmax.f32 %v259_v44, %v264_v46  ;;  %v3589_v44 = vcombine.high %v839_v38, %v843_v39  ;;  %v3591_v45 = vcombine.high %v840_v40, %v844_v41  ;;  %v847_v46 = vld [vmem:[#allocation10 + $0x200] sm:$0xff] }
 0x168   :  { %v269_v55 = vpack.c.bf16 %v267_v48, %v265_v47  ;;  %v851_v47 = vld [vmem:[#allocation10 + $0x220] sm:$0xff]  ;;  %v848_v48 = vld [vmem:[#allocation10 + $0x208] sm:$0xff] }
 0x169   :  { %v270_v56 = vpack.c.bf16 %v268_v51, %v266_v50  ;;  %v3588_v50 = vcombine.low %v839_v38, %v843_v39  ;;  %v3590_v51 = vcombine.low %v840_v40, %v844_v41  ;;  %v3597_v52 = vcombine.high %v847_v46, %v851_v47  ;;  %v900_v39 = vld [vmem:[#allocation10 + $0x3a8] sm:$0xff] }
 0x16a   :  { %v3599_v53 = vcombine.high %v848_v48, %v852_v49  ;;  %v3598_v59 = vcombine.low %v848_v48, %v852_v49 }
 0x16b   :  { %709 = vmatprep.mubr.bf16.mxu1 %v270_v56  ;;  %752 = vmatprep.mubr.bf16.mxu0 %v270_v56  ;;  %v856_v56 = vld [vmem:[#allocation10 + $0x248] sm:$0xff] }
 0x16c   :  { %710 = vmatmul.mubr.bf16.vlgmr.msra.gmra.mrb[0].mxu1 %v269_v55  ;;  %753 = vmatmul.mubr.bf16.vlgmr.msra.gmra.mrb[4].mxu0 %v269_v55  ;;  %v859_v55 = vld [vmem:[#allocation10 + $0x260] sm:$0xff] }
 0x16d   :  { %2362 = vmatpush1.bf16.msra.mxu1 %v3532_v23  ;;  %2448 = vmatpush1.bf16.msra.mxu0 %v3534_v26  ;;  %v3564_v23 = vcombine.low %v815_v11, %v819_v12  ;;  %v3575_v26 = vcombine.high %v824_v21, %v828_v22  ;;  %v3605_v60 = vcombine.high %v855_v54, %v859_v55 }
 0x16e   :  { %2363 = vmatprep.subr.bf16.mxu1 %v3541_v57  ;;  %2449 = vmatprep.subr.bf16.mxu0 %v3543_v58  ;;  %v860_v57 = vld [vmem:[#allocation10 + $0x268] sm:$0xff]  ;;  %v3596_v58 = vcombine.low %v847_v46, %v851_v47 }
 0x16f   :  { %v3607_v61 = vcombine.high %v856_v56, %v860_v57  ;;  %v3606_v3 = vcombine.low %v856_v56, %v860_v57  ;;  %v908_v47 = vld [vmem:[#allocation10 + $0x3e8] sm:$0xff] }
 0x171   :  { %2364 = vmatpush1.bf16.msra.mxu1 %v3540_v63  ;;  %2450 = vmatpush1.bf16.msra.mxu0 %v3542_v0  ;;  %v867_v63 = vld [vmem:[#allocation10 + $0x2a0] sm:$0xff]  ;;  %v864_v0 = vld [vmem:[#allocation10 + $0x288] sm:$0xff] }
 0x172   :  { %2365 = vmatprep.subr.bf16.mxu1 %v3549_v1  ;;  %2451 = vmatprep.subr.bf16.mxu0 %v3551_v2  ;;  %v868_v1 = vld [vmem:[#allocation10 + $0x2a8] sm:$0xff]  ;;  %v3604_v2 = vcombine.low %v855_v54, %v859_v55  ;;  %v3613_v4 = vcombine.high %v863_v62, %v867_v63 }
 0x173   :  { %v3615_v5 = vcombine.high %v864_v0, %v868_v1  ;;  %v3614_v11 = vcombine.low %v864_v0, %v868_v1  ;;  %v4509_v55 = vld [vmem:[#allocation10 + $0x428] sm:$0xff] }
 0x175   :  { %2366 = vmatpush1.bf16.msra.mxu1 %v3548_v7  ;;  %2452 = vmatpush1.bf16.msra.mxu0 %v3550_v8  ;;  %v875_v7 = vld [vmem:[#allocation10 + $0x2e0] sm:$0xff]  ;;  %v872_v8 = vld [vmem:[#allocation10 + $0x2c8] sm:$0xff] }
 0x176   :  { %2367 = vmatprep.subr.bf16.mxu1 %v3557_v9  ;;  %2453 = vmatprep.subr.bf16.mxu0 %v3559_v10  ;;  %v876_v9 = vld [vmem:[#allocation10 + $0x2e8] sm:$0xff]  ;;  %v3612_v10 = vcombine.low %v863_v62, %v867_v63  ;;  %v3621_v12 = vcombine.high %v871_v6, %v875_v7 }
 0x177   :  { %v3623_v13 = vcombine.high %v872_v8, %v876_v9  ;;  %v3622_v19 = vcombine.low %v872_v8, %v876_v9 }
 0x179   :  { %2368 = vmatpush1.bf16.msra.mxu1 %v3556_v15  ;;  %2454 = vmatpush1.bf16.msra.mxu0 %v3558_v16  ;;  %v883_v15 = vld [vmem:[#allocation10 + $0x320] sm:$0xff]  ;;  %v880_v16 = vld [vmem:[#allocation10 + $0x308] sm:$0xff] }
 0x17a   :  { %2369 = vmatprep.subr.bf16.mxu1 %v3565_v17  ;;  %2455 = vmatprep.subr.bf16.mxu0 %v3567_v18  ;;  %v884_v17 = vld [vmem:[#allocation10 + $0x328] sm:$0xff]  ;;  %v3620_v18 = vcombine.low %v871_v6, %v875_v7  ;;  %v3629_v20 = vcombine.high %v879_v14, %v883_v15  ;;  %v3628_v22 = vcombine.low %v879_v14, %v883_v15 }
 0x17b   :  { %v3631_v21 = vcombine.high %v880_v16, %v884_v17 }
 0x17d   :  { %2370 = vmatpush1.bf16.msra.mxu1 %v3564_v23  ;;  %2456 = vmatpush1.bf16.msra.mxu0 %v3566_v24  ;;  %v3630_v23 = vcombine.low %v880_v16, %v884_v17  ;;  %v887_v24 = vld [vmem:[#allocation10 + $0x340] sm:$0xff] }
 0x17e   :  { %2371 = vmatprep.subr.bf16.mxu1 %v3573_v25  ;;  %2457 = vmatprep.subr.bf16.mxu0 %v3575_v26  ;;  %v891_v25 = vld [vmem:[#allocation10 + $0x360] sm:$0xff]  ;;  %v888_v26 = vld [vmem:[#allocation10 + $0x348] sm:$0xff] }
 0x17f   :  { %v3637_v27 = vcombine.high %v887_v24, %v891_v25  ;;  %v3636_v31 = vcombine.low %v887_v24, %v891_v25  ;;  %v3638_v33 = vcombine.low %v888_v26, %v892_v28 }
 0x181   :  { %2372 = vmatpush1.bf16.msra.mxu1 %v3572_v34  ;;  %2458 = vmatpush1.bf16.msra.mxu0 %v3574_v35  ;;  %v3639_v34 = vcombine.high %v888_v26, %v892_v28  ;;  %v895_v35 = vld [vmem:[#allocation10 + $0x380] sm:$0xff] }
 0x182   :  { %2373 = vmatprep.subr.bf16.mxu1 %v3581_v36  ;;  %2459 = vmatprep.subr.bf16.mxu0 %v3583_v37  ;;  %v899_v36 = vld [vmem:[#allocation10 + $0x3a0] sm:$0xff]  ;;  %v896_v37 = vld [vmem:[#allocation10 + $0x388] sm:$0xff] }
 0x183   :  { %v3645_v38 = vcombine.high %v895_v35, %v899_v36  ;;  %v3644_v40 = vcombine.low %v895_v35, %v899_v36  ;;  %v3646_v41 = vcombine.low %v896_v37, %v900_v39 }
 0x185   :  { %2374 = vmatpush1.bf16.msra.mxu1 %v3580_v42  ;;  %2460 = vmatpush1.bf16.msra.mxu0 %v3582_v43  ;;  %v3647_v42 = vcombine.high %v896_v37, %v900_v39  ;;  %v903_v43 = vld [vmem:[#allocation10 + $0x3c0] sm:$0xff] }
 0x186   :  { %2375 = vmatprep.subr.bf16.mxu1 %v3589_v44  ;;  %2461 = vmatprep.subr.bf16.mxu0 %v3591_v45  ;;  %v907_v44 = vld [vmem:[#allocation10 + $0x3e0] sm:$0xff]  ;;  %v904_v45 = vld [vmem:[#allocation10 + $0x3c8] sm:$0xff] }
 0x187   :  { %v3653_v46 = vcombine.high %v903_v43, %v907_v44  ;;  %v3652_v48 = vcombine.low %v903_v43, %v907_v44  ;;  %v3654_v49 = vcombine.low %v904_v45, %v908_v47  ;;  %v919_v37 = vld [vmem:[#allocation10 + $0x440] sm:$0xff] }
 0x189   :  { %2376 = vmatpush1.bf16.msra.mxu1 %v3588_v50  ;;  %2462 = vmatpush1.bf16.msra.mxu0 %v3590_v51  ;;  %v3655_v50 = vcombine.high %v904_v45, %v908_v47  ;;  %v4501_v51 = vld [vmem:[#allocation10 + $0x400] sm:$0xff] }
 0x18a   :  { %2377 = vmatprep.subr.bf16.mxu1 %v3597_v52  ;;  %2463 = vmatprep.subr.bf16.mxu0 %v3599_v53  ;;  %v4503_v52 = vld [vmem:[#allocation10 + $0x420] sm:$0xff]  ;;  %v4505_v53 = vld [vmem:[#allocation10 + $0x408] sm:$0xff] }
 0x18b   :  { %v3661_v54 = vcombine.high %v4501_v51, %v4503_v52  ;;  %v3660_v56 = vcombine.low %v4501_v51, %v4503_v52  ;;  %v3662_v57 = vcombine.low %v4505_v53, %v4509_v55  ;;  %v927_v45 = vld [vmem:[#allocation10 + $0x480] sm:$0xff] }
 0x18d   :  { %2378 = vmatpush1.bf16.msra.mxu1 %v3596_v58  ;;  %2464 = vmatpush1.bf16.msra.mxu0 %v3598_v59  ;;  %v3663_v58 = vcombine.high %v4505_v53, %v4509_v55  ;;  %v347_v59 = vsub.s32 2, %v4488_v29  ;;  %v935_v55 = vld [vmem:[#allocation10 + $0x4c0] sm:$0xff] }
 0x18e   :  { %2379 = vmatprep.subr.bf16.mxu1 %v3605_v60  ;;  %2465 = vmatprep.subr.bf16.mxu0 %v3607_v61  ;;  %v335_v60 = vld [vmem:[#allocation8] sm:$0xf]  ;;  %v351_v61 = vsub.s32 3, %v4488_v29 }
 0x18f   :  { %v340_v62 = vrot.slane %v335_v60, %v4491_v30  ;;  %v348_v63 = vrot.slane %v335_v60, %v347_v59  ;;  %v344_v0 = vrot.slane %v335_v60, %v4497_v32 }
 0x190   :  { %v352_v1 = vrot.slane %v335_v60, %v351_v61  ;;  %v936_v60 = vld [vmem:[#allocation10 + $0x4c8] sm:$0xff] }
 0x191   :  { %2380 = vmatpush1.bf16.msra.mxu1 %v3604_v2  ;;  %2466 = vmatpush1.bf16.msra.mxu0 %v3606_v3 }
 0x192   :  { %2381 = vmatprep.subr.bf16.mxu1 %v3613_v4  ;;  %2467 = vmatprep.subr.bf16.mxu0 %v3615_v5 }
 0x195   :  { %2382 = vmatpush1.bf16.msra.mxu1 %v3612_v10  ;;  %2468 = vmatpush1.bf16.msra.mxu0 %v3614_v11 }
 0x196   :  { %2383 = vmatprep.subr.bf16.mxu1 %v3621_v12  ;;  %2469 = vmatprep.subr.bf16.mxu0 %v3623_v13 }
 0x199   :  { %2384 = vmatpush1.bf16.msra.mxu1 %v3620_v18  ;;  %2470 = vmatpush1.bf16.msra.mxu0 %v3622_v19 }
 0x19a   :  { %2385 = vmatprep.subr.bf16.mxu1 %v3629_v20  ;;  %2471 = vmatprep.subr.bf16.mxu0 %v3631_v21 }
 0x19d   :  { %2386 = vmatpush1.bf16.msra.mxu1 %v3628_v22  ;;  %2472 = vmatpush1.bf16.msra.mxu0 %v3630_v23 }
 0x19e   :  { %2387 = vmatprep.subr.bf16.mxu1 %v3637_v27  ;;  %2473 = vmatprep.subr.bf16.mxu0 %v3639_v34 }
 0x1a1   :  { %2388 = vmatpush1.bf16.msra.mxu1 %v3636_v31  ;;  %2474 = vmatpush1.bf16.msra.mxu0 %v3638_v33 }
 0x1a2   :  { %2389 = vmatprep.subr.bf16.mxu1 %v3645_v38  ;;  %2475 = vmatprep.subr.bf16.mxu0 %v3647_v42  ;;  %v924_v42 = vld [vmem:[#allocation10 + $0x468] sm:$0xff] }
 0x1a5   :  { %2390 = vmatpush1.bf16.msra.mxu1 %v3644_v40  ;;  %2476 = vmatpush1.bf16.msra.mxu0 %v3646_v41  ;;  %v923_v40 = vld [vmem:[#allocation10 + $0x460] sm:$0xff]  ;;  %v920_v41 = vld [vmem:[#allocation10 + $0x448] sm:$0xff] }
 0x1a6   :  { %2391 = vmatprep.subr.bf16.mxu1 %v3653_v46  ;;  %2477 = vmatprep.subr.bf16.mxu0 %v3655_v50  ;;  %v3669_v46 = vcombine.high %v919_v37, %v923_v40  ;;  %v3671_v47 = vcombine.high %v920_v41, %v924_v42  ;;  %v932_v50 = vld [vmem:[#allocation10 + $0x4a8] sm:$0xff]  ;;  %v3668_v51 = vcombine.low %v919_v37, %v923_v40  ;;  %v979_v37 = vld [vmem:[#allocation10 + $0x620] sm:$0xff] }
 0x1a7   :  { %v3670_v52 = vcombine.low %v920_v41, %v924_v42  ;;  %v976_v40 = vld [vmem:[#allocation10 + $0x608] sm:$0xff] }
 0x1a8   :  { %v980_v41 = vld [vmem:[#allocation10 + $0x628] sm:$0xff] }
 0x1a9   :  { %2392 = vmatpush1.bf16.msra.mxu1 %v3652_v48  ;;  %2478 = vmatpush1.bf16.msra.mxu0 %v3654_v49  ;;  %v931_v48 = vld [vmem:[#allocation10 + $0x4a0] sm:$0xff]  ;;  %v928_v49 = vld [vmem:[#allocation10 + $0x488] sm:$0xff] }
 0x1aa   :  { %2404 = vmatprep.subr.bf16.mxu1 %v3661_v54  ;;  %2490 = vmatprep.subr.bf16.mxu0 %v3663_v58  ;;  %v3677_v53 = vcombine.high %v927_v45, %v931_v48  ;;  %v3679_v54 = vcombine.high %v928_v49, %v932_v50  ;;  %v939_v58 = vld [vmem:[#allocation10 + $0x4e0] sm:$0xff] }
 0x23f   :  { %v711_v2 = vpop.f32.mrb[0].mxu1  ;;  %v754_v3 = vpop.f32.mrb[4].mxu0 }
 0x240   :  { %v712_v4 = vadd.f32 %v711_v2, %v340_v62  ;;  %v755_v5 = vadd.f32 %v754_v3, %v348_v63  ;;  %v713_v6 = vpop.f32.mrb[1].mxu1  ;;  %v756_v7 = vpop.f32.mrb[5].mxu0  ;;  %v947_v2 = vld [vmem:[#allocation10 + $0x520] sm:$0xff]  ;;  %v944_v3 = vld [vmem:[#allocation10 + $0x508] sm:$0xff] }
 0x241   :  { %v714_v8 = vadd.f32 %v713_v6, %v344_v0  ;;  %v757_v9 = vadd.f32 %v756_v7, %v352_v1  ;;  %v715_v10 = vpop.f32.mrb[2].mxu1  ;;  %v758_v11 = vpop.f32.mrb[6].mxu0 }
 0x242   :  { %v763_v12 = vmul.f32 0.2, %v712_v4  ;;  %v765_v13 = vmul.f32 0.2, %v755_v5  ;;  %v716_v14 = vadd.f32 %v715_v10, %v340_v62  ;;  %v759_v15 = vadd.f32 %v758_v11, %v348_v63  ;;  %v717_v16 = vpop.f32.mrb[3].mxu1  ;;  %v760_v17 = vpop.f32.mrb[7].mxu0 }
 0x243   :  { %v764_v18 = vmul.f32 0.2, %v714_v8  ;;  %v766_v19 = vmul.f32 0.2, %v757_v9  ;;  %v718_v20 = vadd.f32 %v717_v16, %v344_v0  ;;  %v761_v21 = vadd.f32 %v760_v17, %v352_v1  ;;  %v940_v62 = vld [vmem:[#allocation10 + $0x4e8] sm:$0xff]  ;;  %v943_v1 = vld [vmem:[#allocation10 + $0x500] sm:$0xff] }
 0x244   :  { %v767_v22 = vmul.f32 0.2, %v716_v14  ;;  %v769_v23 = vmul.f32 0.2, %v759_v15  ;;  %v771_v26 = vmax.f32 %v712_v4, %v763_v12  ;;  %v773_v27 = vmax.f32 %v755_v5, %v765_v13  ;;  %v948_v4 = vld [vmem:[#allocation10 + $0x528] sm:$0xff]  ;;  %v955_v10 = vld [vmem:[#allocation10 + $0x560] sm:$0xff] }
 0x245   :  { %v768_v24 = vmul.f32 0.2, %v718_v20  ;;  %v770_v25 = vmul.f32 0.2, %v761_v21  ;;  %v772_v33 = vmax.f32 %v714_v8, %v764_v18  ;;  %v774_v34 = vmax.f32 %v757_v9, %v766_v19  ;;  %v951_v9 = vld [vmem:[#allocation10 + $0x540] sm:$0xff]  ;;  %v952_v11 = vld [vmem:[#allocation10 + $0x548] sm:$0xff] }
 0x246   :  { %v775_v28 = vmax.f32 %v716_v14, %v767_v22  ;;  %v777_v31 = vmax.f32 %v759_v15, %v769_v23  ;;  %v3676_v63 = vcombine.low %v927_v45, %v931_v48  ;;  %v3678_v0 = vcombine.low %v928_v49, %v932_v50  ;;  %v956_v12 = vld [vmem:[#allocation10 + $0x568] sm:$0xff]  ;;  %v959_v17 = vld [vmem:[#allocation10 + $0x580] sm:$0xff] }
 0x247   :  { %v776_v35 = vmax.f32 %v718_v20, %v768_v24  ;;  %v778_v36 = vmax.f32 %v761_v21, %v770_v25  ;;  %v3684_v5 = vcombine.low %v935_v55, %v939_v58  ;;  %v3686_v6 = vcombine.low %v936_v60, %v940_v62  ;;  %v963_v18 = vld [vmem:[#allocation10 + $0x5a0] sm:$0xff]  ;;  %v960_v19 = vld [vmem:[#allocation10 + $0x588] sm:$0xff] }
 0x248   :  { %v4525_v38 = vpack.c.bf16 %v775_v28, %v771_v26  ;;  %v4527_v39 = vpack.c.bf16 %v777_v31, %v773_v27  ;;  %v3693_v7 = vcombine.high %v943_v1, %v947_v2  ;;  %v3695_v8 = vcombine.high %v944_v3, %v948_v4  ;;  %v964_v20 = vld [vmem:[#allocation10 + $0x5a8] sm:$0xff]  ;;  %v967_v25 = vld [vmem:[#allocation10 + $0x5c0] sm:$0xff] }
 0x249   :  { %v4529_v43 = vpack.c.bf16 %v776_v35, %v772_v33  ;;  %v4531_v44 = vpack.c.bf16 %v778_v36, %v774_v34  ;;  %v3692_v13 = vcombine.low %v943_v1, %v947_v2  ;;  %v3694_v14 = vcombine.low %v944_v3, %v948_v4  ;;  %v971_v26 = vld [vmem:[#allocation10 + $0x5e0] sm:$0xff]  ;;  %v968_v27 = vld [vmem:[#allocation10 + $0x5c8] sm:$0xff] }
 0x24a   :  { %v3701_v15 = vcombine.high %v951_v9, %v955_v10  ;;  %v3703_v16 = vcombine.high %v952_v11, %v956_v12  ;;  %v3700_v21 = vcombine.low %v951_v9, %v955_v10  ;;  %v3702_v22 = vcombine.low %v952_v11, %v956_v12  ;;  %v972_v28 = vld [vmem:[#allocation10 + $0x5e8] sm:$0xff]  ;;  %v975_v36 = vld [vmem:[#allocation10 + $0x600] sm:$0xff] }
 0x24b   :  { %2393 = vmatprep.mubr.bf16.mxu1 %v4529_v43  ;;  %2479 = vmatprep.mubr.bf16.mxu0 %v4529_v43  ;;  %v3709_v23 = vcombine.high %v959_v17, %v963_v18  ;;  %v3711_v24 = vcombine.high %v960_v19, %v964_v20  ;;  %v3708_v31 = vcombine.low %v959_v17, %v963_v18  ;;  %v983_v48 = vld [vmem:[#allocation10 + $0x640] sm:$0xff]  ;;  %v984_v50 = vld [vmem:[#allocation10 + $0x648] sm:$0xff] }
 0x24c   :  { %2394 = vmatmul.mubr.bf16.vlgmr.msra.gmra.mrb[4].mxu1 %v4525_v38  ;;  %2480 = vmatmul.mubr.bf16.vlgmr.msra.gmra.mrb[8].mxu0 %v4525_v38  ;;  %v3710_v33 = vcombine.low %v960_v19, %v964_v20  ;;  %v3717_v34 = vcombine.high %v967_v25, %v971_v26  ;;  %v3719_v35 = vcombine.high %v968_v27, %v972_v28  ;;  %v987_v49 = vld [vmem:[#allocation10 + $0x660] sm:$0xff]  ;;  %v1000_v4 = vld [vmem:[#allocation10 + $0x6c8] sm:$0xff] }
 0x24d   :  { %2405 = vmatpush1.bf16.msra.mxu1 %v3660_v56  ;;  %2491 = vmatpush1.bf16.msra.mxu0 %v3662_v57  ;;  %v3685_v56 = vcombine.high %v935_v55, %v939_v58  ;;  %v3687_v57 = vcombine.high %v936_v60, %v940_v62  ;;  %v3716_v42 = vcombine.low %v967_v25, %v971_v26  ;;  %v991_v58 = vld [vmem:[#allocation10 + $0x680] sm:$0xff]  ;;  %v992_v62 = vld [vmem:[#allocation10 + $0x688] sm:$0xff] }
 0x24e   :  { %2436 = vmatprep.mubr.bf16.mxu1 %v4531_v44  ;;  %2522 = vmatprep.mubr.bf16.mxu0 %v4531_v44  ;;  %v3718_v45 = vcombine.low %v968_v27, %v972_v28  ;;  %v995_v60 = vld [vmem:[#allocation10 + $0x6a0] sm:$0xff]  ;;  %v1008_v12 = vld [vmem:[#allocation10 + $0x708] sm:$0xff] }
 0x24f   :  { %2406 = vmatprep.subr.bf16.mxu1 %v3669_v46  ;;  %2492 = vmatprep.subr.bf16.mxu0 %v3671_v47  ;;  %v3725_v46 = vcombine.high %v975_v36, %v979_v37  ;;  %v3727_v47 = vcombine.high %v976_v40, %v980_v41  ;;  %v999_v2 = vld [vmem:[#allocation10 + $0x6c0] sm:$0xff]  ;;  %v1016_v20 = vld [vmem:[#allocation10 + $0x748] sm:$0xff] }
 0x250   :  { %v1003_v3 = vld [vmem:[#allocation10 + $0x6e0] sm:$0xff]  ;;  %v1024_v28 = vld [vmem:[#allocation10 + $0x788] sm:$0xff] }
 0x251   :  { %2407 = vmatpush1.bf16.msra.mxu1 %v3668_v51  ;;  %2493 = vmatpush1.bf16.msra.mxu0 %v3670_v52  ;;  %v988_v51 = vld [vmem:[#allocation10 + $0x668] sm:$0xff]  ;;  %v3724_v52 = vcombine.low %v975_v36, %v979_v37  ;;  %v1007_v10 = vld [vmem:[#allocation10 + $0x700] sm:$0xff] }
 0x252   :  { %2408 = vmatprep.subr.bf16.mxu1 %v3677_v53  ;;  %2494 = vmatprep.subr.bf16.mxu0 %v3679_v54  ;;  %v3726_v53 = vcombine.low %v976_v40, %v980_v41  ;;  %v3733_v54 = vcombine.high %v983_v48, %v987_v49  ;;  %v3735_v55 = vcombine.high %v984_v50, %v988_v51  ;;  %v1011_v11 = vld [vmem:[#allocation10 + $0x720] sm:$0xff]  ;;  %v1032_v41 = vld [vmem:[#allocation10 + $0x7c8] sm:$0xff] }
 0x253   :  { %v1015_v18 = vld [vmem:[#allocation10 + $0x740] sm:$0xff] }
 0x254   :  { %v1019_v19 = vld [vmem:[#allocation10 + $0x760] sm:$0xff] }
 0x255   :  { %2409 = vmatpush1.bf16.msra.mxu1 %v3676_v63  ;;  %2495 = vmatpush1.bf16.msra.mxu0 %v3678_v0  ;;  %v996_v63 = vld [vmem:[#allocation10 + $0x6a8] sm:$0xff]  ;;  %v3732_v0 = vcombine.low %v983_v48, %v987_v49  ;;  %v1023_v26 = vld [vmem:[#allocation10 + $0x780] sm:$0xff]  ;;  %v785_v49 = vld [vmem:[#allocation10 + $0x10] sm:$0xff] }
 0x256   :  { %2410 = vmatprep.subr.bf16.mxu1 %v3685_v56  ;;  %2496 = vmatprep.subr.bf16.mxu0 %v3687_v57  ;;  %v3734_v56 = vcombine.low %v984_v50, %v988_v51  ;;  %v3741_v57 = vcombine.high %v991_v58, %v995_v60  ;;  %v3743_v1 = vcombine.high %v992_v62, %v996_v63  ;;  %v1027_v27 = vld [vmem:[#allocation10 + $0x7a0] sm:$0xff]  ;;  %v789_v50 = vld [vmem:[#allocation10 + $0x30] sm:$0xff]  ;;  %v786_v51 = vld [vmem:[#allocation10 + $0x18] sm:$0xff] }
 0x257   :  { %v1031_v37 = vld [vmem:[#allocation10 + $0x7c0] sm:$0xff] }
 0x258   :  { %v1035_v40 = vld [vmem:[#allocation10 + $0x7e0] sm:$0xff] }
 0x259   :  { %2411 = vmatpush1.bf16.msra.mxu1 %v3684_v5  ;;  %2497 = vmatpush1.bf16.msra.mxu0 %v3686_v6  ;;  %v1004_v5 = vld [vmem:[#allocation10 + $0x6e8] sm:$0xff]  ;;  %v3740_v6 = vcombine.low %v991_v58, %v995_v60  ;;  %v793_v60 = vld [vmem:[#allocation10 + $0x50] sm:$0xff] }
 0x25a   :  { %2412 = vmatprep.subr.bf16.mxu1 %v3693_v7  ;;  %2498 = vmatprep.subr.bf16.mxu0 %v3695_v8  ;;  %v3742_v7 = vcombine.low %v992_v62, %v996_v63  ;;  %v3749_v8 = vcombine.high %v999_v2, %v1003_v3  ;;  %v3751_v9 = vcombine.high %v1000_v4, %v1004_v5  ;;  %v797_v62 = vld [vmem:[#allocation10 + $0x70] sm:$0xff]  ;;  %v794_v63 = vld [vmem:[#allocation10 + $0x58] sm:$0xff] }
 0x25d   :  { %2413 = vmatpush1.bf16.msra.mxu1 %v3692_v13  ;;  %2499 = vmatpush1.bf16.msra.mxu0 %v3694_v14  ;;  %v1012_v13 = vld [vmem:[#allocation10 + $0x728] sm:$0xff]  ;;  %v3748_v14 = vcombine.low %v999_v2, %v1003_v3  ;;  %v801_v3 = vld [vmem:[#allocation10 + $0x90] sm:$0xff] }
 0x25e   :  { %2414 = vmatprep.subr.bf16.mxu1 %v3701_v15  ;;  %2500 = vmatprep.subr.bf16.mxu0 %v3703_v16  ;;  %v3750_v15 = vcombine.low %v1000_v4, %v1004_v5  ;;  %v3757_v16 = vcombine.high %v1007_v10, %v1011_v11  ;;  %v3759_v17 = vcombine.high %v1008_v12, %v1012_v13  ;;  %v805_v4 = vld [vmem:[#allocation10 + $0xb0] sm:$0xff]  ;;  %v802_v5 = vld [vmem:[#allocation10 + $0x98] sm:$0xff] }
 0x261   :  { %2415 = vmatpush1.bf16.msra.mxu1 %v3700_v21  ;;  %2501 = vmatpush1.bf16.msra.mxu0 %v3702_v22  ;;  %v1020_v21 = vld [vmem:[#allocation10 + $0x768] sm:$0xff]  ;;  %v3756_v22 = vcombine.low %v1007_v10, %v1011_v11  ;;  %v809_v11 = vld [vmem:[#allocation10 + $0xd0] sm:$0xff] }
 0x262   :  { %2416 = vmatprep.subr.bf16.mxu1 %v3709_v23  ;;  %2502 = vmatprep.subr.bf16.mxu0 %v3711_v24  ;;  %v3758_v23 = vcombine.low %v1008_v12, %v1012_v13  ;;  %v3765_v24 = vcombine.high %v1015_v18, %v1019_v19  ;;  %v3767_v25 = vcombine.high %v1016_v20, %v1020_v21  ;;  %v813_v12 = vld [vmem:[#allocation10 + $0xf0] sm:$0xff]  ;;  %v810_v13 = vld [vmem:[#allocation10 + $0xd8] sm:$0xff] }
 0x265   :  { %2417 = vmatpush1.bf16.msra.mxu1 %v3708_v31  ;;  %2503 = vmatpush1.bf16.msra.mxu0 %v3710_v33  ;;  %v1028_v31 = vld [vmem:[#allocation10 + $0x7a8] sm:$0xff]  ;;  %v3764_v33 = vcombine.low %v1015_v18, %v1019_v19  ;;  %v817_v19 = vld [vmem:[#allocation10 + $0x110] sm:$0xff] }
 0x266   :  { %2418 = vmatprep.subr.bf16.mxu1 %v3717_v34  ;;  %2504 = vmatprep.subr.bf16.mxu0 %v3719_v35  ;;  %v3766_v34 = vcombine.low %v1016_v20, %v1020_v21  ;;  %v3773_v35 = vcombine.high %v1023_v26, %v1027_v27  ;;  %v3775_v36 = vcombine.high %v1024_v28, %v1028_v31  ;;  %v821_v20 = vld [vmem:[#allocation10 + $0x130] sm:$0xff]  ;;  %v822_v21 = vld [vmem:[#allocation10 + $0x138] sm:$0xff] }
 0x269   :  { %2419 = vmatpush1.bf16.msra.mxu1 %v3716_v42  ;;  %2505 = vmatpush1.bf16.msra.mxu0 %v3718_v45  ;;  %v1036_v42 = vld [vmem:[#allocation10 + $0x7e8] sm:$0xff]  ;;  %v3772_v45 = vcombine.low %v1023_v26, %v1027_v27  ;;  %v825_v26 = vld [vmem:[#allocation10 + $0x150] sm:$0xff] }
 0x26a   :  { %2420 = vmatprep.subr.bf16.mxu1 %v3725_v46  ;;  %2506 = vmatprep.subr.bf16.mxu0 %v3727_v47  ;;  %v3774_v46 = vcombine.low %v1024_v28, %v1028_v31  ;;  %v3781_v47 = vcombine.high %v1031_v37, %v1035_v40  ;;  %v3783_v48 = vcombine.high %v1032_v41, %v1036_v42  ;;  %v829_v27 = vld [vmem:[#allocation10 + $0x170] sm:$0xff]  ;;  %v826_v28 = vld [vmem:[#allocation10 + $0x158] sm:$0xff] }
 0x26b   :  { %v830_v31 = vld [vmem:[#allocation10 + $0x178] sm:$0xff] }
 0x26d   :  { %2421 = vmatpush1.bf16.msra.mxu1 %v3724_v52  ;;  %2507 = vmatpush1.bf16.msra.mxu0 %v3726_v53  ;;  %v790_v52 = vld [vmem:[#allocation10 + $0x38] sm:$0xff]  ;;  %v3780_v53 = vcombine.low %v1031_v37, %v1035_v40  ;;  %v833_v37 = vld [vmem:[#allocation10 + $0x190] sm:$0xff] }
 0x26e   :  { %2422 = vmatprep.subr.bf16.mxu1 %v3733_v54  ;;  %2508 = vmatprep.subr.bf16.mxu0 %v3735_v55  ;;  %v3782_v54 = vcombine.low %v1032_v41, %v1036_v42  ;;  %v3537_v55 = vcombine.high %v785_v49, %v789_v50  ;;  %v3539_v58 = vcombine.high %v786_v51, %v790_v52  ;;  %v837_v40 = vld [vmem:[#allocation10 + $0x1b0] sm:$0xff]  ;;  %v834_v41 = vld [vmem:[#allocation10 + $0x198] sm:$0xff] }
 0x26f   :  { %v838_v42 = vld [vmem:[#allocation10 + $0x1b8] sm:$0xff] }
 0x271   :  { %2423 = vmatpush1.bf16.msra.mxu1 %v3732_v0  ;;  %2509 = vmatpush1.bf16.msra.mxu0 %v3734_v56  ;;  %v798_v0 = vld [vmem:[#allocation10 + $0x78] sm:$0xff]  ;;  %v3536_v56 = vcombine.low %v785_v49, %v789_v50  ;;  %v841_v49 = vld [vmem:[#allocation10 + $0x1d0] sm:$0xff] }
 0x272   :  { %2424 = vmatprep.subr.bf16.mxu1 %v3741_v57  ;;  %2510 = vmatprep.subr.bf16.mxu0 %v3743_v1  ;;  %v3538_v57 = vcombine.low %v786_v51, %v790_v52  ;;  %v3545_v1 = vcombine.high %v793_v60, %v797_v62  ;;  %v3547_v2 = vcombine.high %v794_v63, %v798_v0  ;;  %v845_v50 = vld [vmem:[#allocation10 + $0x1f0] sm:$0xff]  ;;  %v842_v51 = vld [vmem:[#allocation10 + $0x1d8] sm:$0xff] }
 0x273   :  { %v846_v52 = vld [vmem:[#allocation10 + $0x1f8] sm:$0xff] }
 0x275   :  { %2425 = vmatpush1.bf16.msra.mxu1 %v3740_v6  ;;  %2511 = vmatpush1.bf16.msra.mxu0 %v3742_v7  ;;  %v806_v6 = vld [vmem:[#allocation10 + $0xb8] sm:$0xff]  ;;  %v3544_v7 = vcombine.low %v793_v60, %v797_v62  ;;  %v849_v60 = vld [vmem:[#allocation10 + $0x210] sm:$0xff] }
 0x276   :  { %2426 = vmatprep.subr.bf16.mxu1 %v3749_v8  ;;  %2512 = vmatprep.subr.bf16.mxu0 %v3751_v9  ;;  %v3546_v8 = vcombine.low %v794_v63, %v798_v0  ;;  %v3553_v9 = vcombine.high %v801_v3, %v805_v4  ;;  %v3555_v10 = vcombine.high %v802_v5, %v806_v6  ;;  %v853_v62 = vld [vmem:[#allocation10 + $0x230] sm:$0xff]  ;;  %v850_v63 = vld [vmem:[#allocation10 + $0x218] sm:$0xff] }
 0x277   :  { %v854_v0 = vld [vmem:[#allocation10 + $0x238] sm:$0xff] }
 0x279   :  { %2427 = vmatpush1.bf16.msra.mxu1 %v3748_v14  ;;  %2513 = vmatpush1.bf16.msra.mxu0 %v3750_v15  ;;  %v814_v14 = vld [vmem:[#allocation10 + $0xf8] sm:$0xff]  ;;  %v3552_v15 = vcombine.low %v801_v3, %v805_v4  ;;  %v857_v3 = vld [vmem:[#allocation10 + $0x250] sm:$0xff] }
 0x27a   :  { %2428 = vmatprep.subr.bf16.mxu1 %v3757_v16  ;;  %2514 = vmatprep.subr.bf16.mxu0 %v3759_v17  ;;  %v3554_v16 = vcombine.low %v802_v5, %v806_v6  ;;  %v3561_v17 = vcombine.high %v809_v11, %v813_v12  ;;  %v3563_v18 = vcombine.high %v810_v13, %v814_v14  ;;  %v861_v4 = vld [vmem:[#allocation10 + $0x270] sm:$0xff]  ;;  %v858_v5 = vld [vmem:[#allocation10 + $0x258] sm:$0xff] }
 0x27b   :  { %v862_v6 = vld [vmem:[#allocation10 + $0x278] sm:$0xff] }
 0x27d   :  { %2429 = vmatpush1.bf16.msra.mxu1 %v3756_v22  ;;  %2515 = vmatpush1.bf16.msra.mxu0 %v3758_v23  ;;  %v3560_v22 = vcombine.low %v809_v11, %v813_v12  ;;  %v3562_v23 = vcombine.low %v810_v13, %v814_v14  ;;  %v865_v11 = vld [vmem:[#allocation10 + $0x290] sm:$0xff]  ;;  %v866_v13 = vld [vmem:[#allocation10 + $0x298] sm:$0xff] }
 0x27e   :  { %2430 = vmatprep.subr.bf16.mxu1 %v3765_v24  ;;  %2516 = vmatprep.subr.bf16.mxu0 %v3767_v25  ;;  %v3569_v24 = vcombine.high %v817_v19, %v821_v20  ;;  %v869_v12 = vld [vmem:[#allocation10 + $0x2b0] sm:$0xff]  ;;  %v870_v14 = vld [vmem:[#allocation10 + $0x2b8] sm:$0xff] }
 0x281   :  { %2431 = vmatpush1.bf16.msra.mxu1 %v3764_v33  ;;  %2517 = vmatpush1.bf16.msra.mxu0 %v3766_v34  ;;  %v3568_v33 = vcombine.low %v817_v19, %v821_v20  ;;  %v873_v19 = vld [vmem:[#allocation10 + $0x2d0] sm:$0xff] }
 0x282   :  { %2432 = vmatprep.subr.bf16.mxu1 %v3773_v35  ;;  %2518 = vmatprep.subr.bf16.mxu0 %v3775_v36  ;;  %v3577_v35 = vcombine.high %v825_v26, %v829_v27  ;;  %v3579_v36 = vcombine.high %v826_v28, %v830_v31  ;;  %v877_v20 = vld [vmem:[#allocation10 + $0x2f0] sm:$0xff] }
 0x285   :  { %2433 = vmatpush1.bf16.msra.mxu1 %v3772_v45  ;;  %2519 = vmatpush1.bf16.msra.mxu0 %v3774_v46  ;;  %v3576_v45 = vcombine.low %v825_v26, %v829_v27  ;;  %v3578_v46 = vcombine.low %v826_v28, %v830_v31  ;;  %v881_v26 = vld [vmem:[#allocation10 + $0x310] sm:$0xff]  ;;  %v882_v28 = vld [vmem:[#allocation10 + $0x318] sm:$0xff] }
 0x286   :  { %2434 = vmatprep.subr.bf16.mxu1 %v3781_v47  ;;  %2520 = vmatprep.subr.bf16.mxu0 %v3783_v48  ;;  %v3585_v47 = vcombine.high %v833_v37, %v837_v40  ;;  %v3587_v48 = vcombine.high %v834_v41, %v838_v42  ;;  %v885_v27 = vld [vmem:[#allocation10 + $0x330] sm:$0xff]  ;;  %v886_v31 = vld [vmem:[#allocation10 + $0x338] sm:$0xff] }
 0x289   :  { %2435 = vmatpush1.bf16.msra.mxu1 %v3780_v53  ;;  %2521 = vmatpush1.bf16.msra.mxu0 %v3782_v54  ;;  %v3584_v53 = vcombine.low %v833_v37, %v837_v40  ;;  %v3586_v54 = vcombine.low %v834_v41, %v838_v42  ;;  %v889_v37 = vld [vmem:[#allocation10 + $0x350] sm:$0xff]  ;;  %v890_v41 = vld [vmem:[#allocation10 + $0x358] sm:$0xff] }
 0x28a   :  { %2533 = vmatprep.subr.bf16.mxu1 %v3537_v55  ;;  %2619 = vmatprep.subr.bf16.mxu0 %v3539_v58  ;;  %v3593_v55 = vcombine.high %v841_v49, %v845_v50  ;;  %v3595_v58 = vcombine.high %v842_v51, %v846_v52  ;;  %v893_v40 = vld [vmem:[#allocation10 + $0x370] sm:$0xff]  ;;  %v894_v42 = vld [vmem:[#allocation10 + $0x378] sm:$0xff] }
 0x28c   :  { %2437 = vmatmul.mubr.bf16.vlgmr.msra.gmra.mrb[4].mxu1 %v4527_v39  ;;  %2523 = vmatmul.mubr.bf16.vlgmr.msra.gmra.mrb[8].mxu0 %v4527_v39 }
 0x28d   :  { %2534 = vmatpush1.bf16.msra.mxu1 %v3536_v56  ;;  %2565 = vmatprep.mubr.bf16.mxu1 %v4529_v43  ;;  %v3592_v56 = vcombine.low %v841_v49, %v845_v50  ;;  %v897_v49 = vld [vmem:[#allocation10 + $0x390] sm:$0xff] }
 0x28e   :  { %2620 = vmatpush1.bf16.msra.mxu0 %v3538_v57  ;;  %2651 = vmatprep.mubr.bf16.mxu0 %v4529_v43  ;;  %v818_v43 = vld [vmem:[#allocation10 + $0x118] sm:$0xff]  ;;  %v3594_v57 = vcombine.low %v842_v51, %v846_v52  ;;  %v901_v50 = vld [vmem:[#allocation10 + $0x3b0] sm:$0xff] }
 0x28f   :  { %2535 = vmatprep.subr.bf16.mxu1 %v3545_v1  ;;  %2621 = vmatprep.subr.bf16.mxu0 %v3547_v2  ;;  %v3571_v25 = vcombine.high %v818_v43, %v822_v21  ;;  %v3570_v34 = vcombine.low %v818_v43, %v822_v21  ;;  %v3601_v1 = vcombine.high %v849_v60, %v853_v62  ;;  %v874_v43 = vld [vmem:[#allocation10 + $0x2d8] sm:$0xff] }
 0x290   :  { %v3603_v2 = vcombine.high %v850_v63, %v854_v0  ;;  %v878_v21 = vld [vmem:[#allocation10 + $0x2f8] sm:$0xff] }
 0x291   :  { %2536 = vmatpush1.bf16.msra.mxu1 %v3544_v7  ;;  %v3600_v7 = vcombine.low %v849_v60, %v853_v62  ;;  %v898_v51 = vld [vmem:[#allocation10 + $0x398] sm:$0xff]  ;;  %v905_v60 = vld [vmem:[#allocation10 + $0x3d0] sm:$0xff] }
 0x292   :  { %2622 = vmatpush1.bf16.msra.mxu0 %v3546_v8  ;;  %2537 = vmatprep.subr.bf16.mxu1 %v3553_v9  ;;  %v3602_v8 = vcombine.low %v850_v63, %v854_v0  ;;  %v3609_v9 = vcombine.high %v857_v3, %v861_v4  ;;  %v902_v52 = vld [vmem:[#allocation10 + $0x3b8] sm:$0xff]  ;;  %v909_v62 = vld [vmem:[#allocation10 + $0x3f0] sm:$0xff] }
 0x293   :  { %2623 = vmatprep.subr.bf16.mxu0 %v3555_v10  ;;  %v3611_v10 = vcombine.high %v858_v5, %v862_v6  ;;  %v906_v63 = vld [vmem:[#allocation10 + $0x3d8] sm:$0xff] }
 0x294   :  { %v910_v0 = vld [vmem:[#allocation10 + $0x3f8] sm:$0xff] }
 0x295   :  { %2538 = vmatpush1.bf16.msra.mxu1 %v3552_v15  ;;  %v3608_v15 = vcombine.low %v857_v3, %v861_v4  ;;  %v913_v3 = vld [vmem:[#allocation10 + $0x410] sm:$0xff] }
 0x296   :  { %2624 = vmatpush1.bf16.msra.mxu0 %v3554_v16  ;;  %2539 = vmatprep.subr.bf16.mxu1 %v3561_v17  ;;  %v3610_v16 = vcombine.low %v858_v5, %v862_v6  ;;  %v3617_v17 = vcombine.high %v865_v11, %v869_v12  ;;  %v917_v4 = vld [vmem:[#allocation10 + $0x430] sm:$0xff]  ;;  %v914_v5 = vld [vmem:[#allocation10 + $0x418] sm:$0xff] }
 0x297   :  { %2625 = vmatprep.subr.bf16.mxu0 %v3563_v18  ;;  %v3619_v18 = vcombine.high %v866_v13, %v870_v14  ;;  %v918_v6 = vld [vmem:[#allocation10 + $0x438] sm:$0xff] }
 0x299   :  { %2540 = vmatpush1.bf16.msra.mxu1 %v3560_v22  ;;  %v3616_v22 = vcombine.low %v865_v11, %v869_v12  ;;  %v921_v11 = vld [vmem:[#allocation10 + $0x450] sm:$0xff] }
 0x29a   :  { %2626 = vmatpush1.bf16.msra.mxu0 %v3562_v23  ;;  %2541 = vmatprep.subr.bf16.mxu1 %v3569_v24  ;;  %v3618_v23 = vcombine.low %v866_v13, %v870_v14  ;;  %v3625_v24 = vcombine.high %v873_v19, %v877_v20  ;;  %v925_v12 = vld [vmem:[#allocation10 + $0x470] sm:$0xff]  ;;  %v3664_v13 = vcombine.low %v913_v3, %v917_v4  ;;  %v922_v14 = vld [vmem:[#allocation10 + $0x458] sm:$0xff] }
 0x29b   :  { %2627 = vmatprep.subr.bf16.mxu0 %v3571_v25  ;;  %v3627_v25 = vcombine.high %v874_v43, %v878_v21 }
 0x29d   :  { %2542 = vmatpush1.bf16.msra.mxu1 %v3568_v33  ;;  %v3624_v33 = vcombine.low %v873_v19, %v877_v20  ;;  %v933_v19 = vld [vmem:[#allocation10 + $0x4b0] sm:$0xff] }
 0x29e   :  { %2628 = vmatpush1.bf16.msra.mxu0 %v3570_v34  ;;  %2543 = vmatprep.subr.bf16.mxu1 %v3577_v35  ;;  %v3626_v34 = vcombine.low %v874_v43, %v878_v21  ;;  %v3633_v35 = vcombine.high %v881_v26, %v885_v27  ;;  %v930_v43 = vld [vmem:[#allocation10 + $0x498] sm:$0xff] }
 0x29f   :  { %2629 = vmatprep.subr.bf16.mxu0 %v3579_v36  ;;  %v3635_v36 = vcombine.high %v882_v28, %v886_v31  ;;  %v934_v21 = vld [vmem:[#allocation10 + $0x4b8] sm:$0xff] }
 0x2a1   :  { %2544 = vmatpush1.bf16.msra.mxu1 %v3576_v45  ;;  %v3632_v45 = vcombine.low %v881_v26, %v885_v27  ;;  %v937_v26 = vld [vmem:[#allocation10 + $0x4d0] sm:$0xff] }
 0x2a2   :  { %2630 = vmatpush1.bf16.msra.mxu0 %v3578_v46  ;;  %2545 = vmatprep.subr.bf16.mxu1 %v3585_v47  ;;  %v3634_v46 = vcombine.low %v882_v28, %v886_v31  ;;  %v3641_v47 = vcombine.high %v889_v37, %v893_v40  ;;  %v941_v27 = vld [vmem:[#allocation10 + $0x4f0] sm:$0xff]  ;;  %v938_v28 = vld [vmem:[#allocation10 + $0x4d8] sm:$0xff] }
 0x2a3   :  { %2631 = vmatprep.subr.bf16.mxu0 %v3587_v48  ;;  %v3643_v48 = vcombine.high %v890_v41, %v894_v42  ;;  %v942_v31 = vld [vmem:[#allocation10 + $0x4f8] sm:$0xff] }
 0x2a5   :  { %2546 = vmatpush1.bf16.msra.mxu1 %v3584_v53  ;;  %v3640_v53 = vcombine.low %v889_v37, %v893_v40  ;;  %v949_v37 = vld [vmem:[#allocation10 + $0x530] sm:$0xff]  ;;  %v946_v40 = vld [vmem:[#allocation10 + $0x518] sm:$0xff] }
 0x2a6   :  { %2632 = vmatpush1.bf16.msra.mxu0 %v3586_v54  ;;  %2547 = vmatprep.subr.bf16.mxu1 %v3593_v55  ;;  %v3642_v54 = vcombine.low %v890_v41, %v894_v42  ;;  %v3649_v55 = vcombine.high %v897_v49, %v901_v50  ;;  %v950_v41 = vld [vmem:[#allocation10 + $0x538] sm:$0xff]  ;;  %v3690_v42 = vcombine.low %v938_v28, %v942_v31 }
 0x2a7   :  { %2633 = vmatprep.subr.bf16.mxu0 %v3595_v58  ;;  %v3651_v58 = vcombine.high %v898_v51, %v902_v52 }
 0x2a9   :  { %2548 = vmatpush1.bf16.msra.mxu1 %v3592_v56  ;;  %v3648_v56 = vcombine.low %v897_v49, %v901_v50  ;;  %v954_v49 = vld [vmem:[#allocation10 + $0x558] sm:$0xff] }
 0x2aa   :  { %2634 = vmatpush1.bf16.msra.mxu0 %v3594_v57  ;;  %2549 = vmatprep.subr.bf16.mxu1 %v3601_v1  ;;  %v3650_v57 = vcombine.low %v898_v51, %v902_v52  ;;  %v3657_v1 = vcombine.high %v905_v60, %v909_v62  ;;  %v958_v50 = vld [vmem:[#allocation10 + $0x578] sm:$0xff]  ;;  %v3698_v52 = vcombine.low %v946_v40, %v950_v41 }
 0x2ab   :  { %2635 = vmatprep.subr.bf16.mxu0 %v3603_v2  ;;  %v3659_v2 = vcombine.high %v906_v63, %v910_v0 }
 0x2ad   :  { %2550 = vmatpush1.bf16.msra.mxu1 %v3600_v7  ;;  %v3656_v7 = vcombine.low %v905_v60, %v909_v62  ;;  %v962_v60 = vld [vmem:[#allocation10 + $0x598] sm:$0xff] }
 0x2ae   :  { %2636 = vmatpush1.bf16.msra.mxu0 %v3602_v8  ;;  %2551 = vmatprep.subr.bf16.mxu1 %v3609_v9  ;;  %v3658_v8 = vcombine.low %v906_v63, %v910_v0  ;;  %v3665_v9 = vcombine.high %v913_v3, %v917_v4  ;;  %v966_v62 = vld [vmem:[#allocation10 + $0x5b8] sm:$0xff]  ;;  %v3706_v0 = vcombine.low %v954_v49, %v958_v50 }
 0x2af   :  { %2637 = vmatprep.subr.bf16.mxu0 %v3611_v10  ;;  %v3667_v10 = vcombine.high %v914_v5, %v918_v6  ;;  %v970_v3 = vld [vmem:[#allocation10 + $0x5d8] sm:$0xff] }
 0x2b0   :  { %v974_v4 = vld [vmem:[#allocation10 + $0x5f8] sm:$0xff] }
 0x2b1   :  { %2552 = vmatpush1.bf16.msra.mxu1 %v3608_v15  ;;  %v926_v15 = vld [vmem:[#allocation10 + $0x478] sm:$0xff] }
 0x2b2   :  { %2638 = vmatpush1.bf16.msra.mxu0 %v3610_v16  ;;  %2553 = vmatprep.subr.bf16.mxu1 %v3617_v17  ;;  %v3666_v16 = vcombine.low %v914_v5, %v918_v6  ;;  %v3673_v17 = vcombine.high %v921_v11, %v925_v12  ;;  %v3675_v20 = vcombine.high %v922_v14, %v926_v15 }
 0x2b3   :  { %2639 = vmatprep.subr.bf16.mxu0 %v3619_v18  ;;  %v929_v18 = vld [vmem:[#allocation10 + $0x490] sm:$0xff]  ;;  %v3714_v6 = vcombine.low %v962_v60, %v966_v62 }
 0x2b5   :  { %2554 = vmatpush1.bf16.msra.mxu1 %v3616_v22  ;;  %v3672_v22 = vcombine.low %v921_v11, %v925_v12  ;;  %v978_v11 = vld [vmem:[#allocation10 + $0x618] sm:$0xff] }
 0x2b6   :  { %2640 = vmatpush1.bf16.msra.mxu0 %v3618_v23  ;;  %2555 = vmatprep.subr.bf16.mxu1 %v3625_v24  ;;  %v3674_v23 = vcombine.low %v922_v14, %v926_v15  ;;  %v3681_v24 = vcombine.high %v929_v18, %v933_v19  ;;  %v982_v12 = vld [vmem:[#allocation10 + $0x638] sm:$0xff]  ;;  %v3722_v14 = vcombine.low %v970_v3, %v974_v4 }
 0x2b7   :  { %2641 = vmatprep.subr.bf16.mxu0 %v3627_v25  ;;  %v3683_v25 = vcombine.high %v930_v43, %v934_v21 }
 0x2b9   :  { %2556 = vmatpush1.bf16.msra.mxu1 %v3624_v33  ;;  %v3680_v33 = vcombine.low %v929_v18, %v933_v19  ;;  %v989_v18 = vld [vmem:[#allocation10 + $0x670] sm:$0xff]  ;;  %v986_v19 = vld [vmem:[#allocation10 + $0x658] sm:$0xff] }
 0x2ba   :  { %2642 = vmatpush1.bf16.msra.mxu0 %v3626_v34  ;;  %2557 = vmatprep.subr.bf16.mxu1 %v3633_v35  ;;  %v3689_v34 = vcombine.high %v937_v26, %v941_v27  ;;  %v3691_v35 = vcombine.high %v938_v28, %v942_v31 }
 0x2bb   :  { %2643 = vmatprep.subr.bf16.mxu0 %v3635_v36  ;;  %v945_v36 = vld [vmem:[#allocation10 + $0x510] sm:$0xff] }
 0x2bc   :  { %v3696_v51 = vcombine.low %v945_v36, %v949_v37 }
 0x2bd   :  { %2558 = vmatpush1.bf16.msra.mxu1 %v3632_v45  ;;  %v3697_v45 = vcombine.high %v945_v36, %v949_v37  ;;  %v1002_v36 = vld [vmem:[#allocation10 + $0x6d8] sm:$0xff] }
 0x2be   :  { %2644 = vmatpush1.bf16.msra.mxu0 %v3634_v46  ;;  %2559 = vmatprep.subr.bf16.mxu1 %v3641_v47  ;;  %v3699_v46 = vcombine.high %v946_v40, %v950_v41  ;;  %v953_v47 = vld [vmem:[#allocation10 + $0x550] sm:$0xff]  ;;  %v1006_v37 = vld [vmem:[#allocation10 + $0x6f8] sm:$0xff] }
 0x2bf   :  { %2645 = vmatprep.subr.bf16.mxu0 %v3643_v48  ;;  %v957_v48 = vld [vmem:[#allocation10 + $0x570] sm:$0xff] }
 0x2c0   :  { %v3704_v63 = vcombine.low %v953_v47, %v957_v48 }
 0x2c1   :  { %2560 = vmatpush1.bf16.msra.mxu1 %v3640_v53  ;;  %v3705_v53 = vcombine.high %v953_v47, %v957_v48  ;;  %v1010_v47 = vld [vmem:[#allocation10 + $0x718] sm:$0xff] }
 0x2c2   :  { %2646 = vmatpush1.bf16.msra.mxu0 %v3642_v54  ;;  %2561 = vmatprep.subr.bf16.mxu1 %v3649_v55  ;;  %v3707_v54 = vcombine.high %v954_v49, %v958_v50  ;;  %v961_v55 = vld [vmem:[#allocation10 + $0x590] sm:$0xff]  ;;  %v1014_v48 = vld [vmem:[#allocation10 + $0x738] sm:$0xff]  ;;  %v3754_v50 = vcombine.low %v1002_v36, %v1006_v37 }
 0x2c3   :  { %2647 = vmatprep.subr.bf16.mxu0 %v3651_v58  ;;  %v965_v58 = vld [vmem:[#allocation10 + $0x5b0] sm:$0xff] }
 0x2c4   :  { %v3712_v5 = vcombine.low %v961_v55, %v965_v58 }
 0x2c5   :  { %2562 = vmatpush1.bf16.msra.mxu1 %v3648_v56  ;;  %v3713_v56 = vcombine.high %v961_v55, %v965_v58  ;;  %v1018_v55 = vld [vmem:[#allocation10 + $0x758] sm:$0xff] }
 0x2c6   :  { %2648 = vmatpush1.bf16.msra.mxu0 %v3650_v57  ;;  %2563 = vmatprep.subr.bf16.mxu1 %v3657_v1  ;;  %v3715_v57 = vcombine.high %v962_v60, %v966_v62  ;;  %v969_v1 = vld [vmem:[#allocation10 + $0x5d0] sm:$0xff]  ;;  %v1022_v58 = vld [vmem:[#allocation10 + $0x778] sm:$0xff]  ;;  %v3762_v62 = vcombine.low %v1010_v47, %v1014_v48 }
 0x2c7   :  { %2649 = vmatprep.subr.bf16.mxu0 %v3659_v2  ;;  %v973_v2 = vld [vmem:[#allocation10 + $0x5f0] sm:$0xff] }
 0x2c9   :  { %2564 = vmatpush1.bf16.msra.mxu1 %v3656_v7  ;;  %v3721_v7 = vcombine.high %v969_v1, %v973_v2 }
 0x2ca   :  { %2650 = vmatpush1.bf16.msra.mxu0 %v3658_v8  ;;  %2576 = vmatprep.subr.bf16.mxu1 %v3665_v9  ;;  %v3723_v8 = vcombine.high %v970_v3, %v974_v4  ;;  %v977_v9 = vld [vmem:[#allocation10 + $0x610] sm:$0xff]  ;;  %v3770_v4 = vcombine.low %v1018_v55, %v1022_v58 }
 0x2cb   :  { %2662 = vmatprep.subr.bf16.mxu0 %v3667_v10  ;;  %v981_v10 = vld [vmem:[#allocation10 + $0x630] sm:$0xff] }
 0x2cc   :  { %2566 = vmatmul.mubr.bf16.vlgmr.msra.gmra.mrb[8].mxu1 %v4525_v38  ;;  %v3729_v15 = vcombine.high %v977_v9, %v981_v10 }
 0x2cd   :  { %2652 = vmatmul.mubr.bf16.vlgmr.msra.gmra.mrb[12].mxu0 %v4525_v38  ;;  %2577 = vmatpush1.bf16.msra.mxu1 %v3664_v13  ;;  %v3682_v38 = vcombine.low %v930_v43, %v934_v21  ;;  %v3720_v13 = vcombine.low %v969_v1, %v973_v2  ;;  %v3728_v43 = vcombine.low %v977_v9, %v981_v10  ;;  %v1026_v1 = vld [vmem:[#allocation10 + $0x798] sm:$0xff] }
 0x2ce   :  { %2608 = vmatprep.mubr.bf16.mxu1 %v4531_v44  ;;  %2663 = vmatpush1.bf16.msra.mxu0 %v3666_v16  ;;  %v3731_v16 = vcombine.high %v978_v11, %v982_v12  ;;  %v3730_v21 = vcombine.low %v978_v11, %v982_v12  ;;  %v1030_v2 = vld [vmem:[#allocation10 + $0x7b8] sm:$0xff] }
 0x2cf   :  { %2694 = vmatprep.mubr.bf16.mxu0 %v4531_v44  ;;  %2578 = vmatprep.subr.bf16.mxu1 %v3673_v17  ;;  %v3688_v44 = vcombine.low %v937_v26, %v941_v27  ;;  %v985_v17 = vld [vmem:[#allocation10 + $0x650] sm:$0xff]  ;;  %v994_v26 = vld [vmem:[#allocation10 + $0x698] sm:$0xff]  ;;  %v3778_v12 = vcombine.low %v1026_v1, %v1030_v2 }
 0x2d0   :  { %2664 = vmatprep.subr.bf16.mxu0 %v3675_v20  ;;  %v990_v20 = vld [vmem:[#allocation10 + $0x678] sm:$0xff]  ;;  %v3736_v28 = vcombine.low %v985_v17, %v989_v18 }
 0x2d1   :  { %2579 = vmatpush1.bf16.msra.mxu1 %v3672_v22  ;;  %v3737_v22 = vcombine.high %v985_v17, %v989_v18  ;;  %v998_v27 = vld [vmem:[#allocation10 + $0x6b8] sm:$0xff]  ;;  %v3738_v31 = vcombine.low %v986_v19, %v990_v20  ;;  %v4105_v17 = vld [vmem:[#allocation11 + $0x40] sm:$0xff]  }
 0x2d2   :  { %2665 = vmatpush1.bf16.msra.mxu0 %v3674_v23  ;;  %2580 = vmatprep.subr.bf16.mxu1 %v3681_v24  ;;  %v3739_v23 = vcombine.high %v986_v19, %v990_v20  ;;  %v993_v24 = vld [vmem:[#allocation10 + $0x690] sm:$0xff]  ;;  %v3746_v41 = vcombine.low %v994_v26, %v998_v27  ;;  %v1034_v9 = vld [vmem:[#allocation10 + $0x7d8] sm:$0xff]  ;;  %v4106_v18 = vld [vmem:[#allocation11 + $0xc0] sm:$0xff]  }
 0x2d3   :  { %2666 = vmatprep.subr.bf16.mxu0 %v3683_v25  ;;  %v997_v25 = vld [vmem:[#allocation10 + $0x6b0] sm:$0xff]  ;;  %v1038_v10 = vld [vmem:[#allocation10 + $0x7f8] sm:$0xff]  ;;  %v4107_v19 = vld [vmem:[#allocation11] sm:$0xff]  }
 0x2d4   :  { %v3744_v40 = vcombine.low %v993_v24, %v997_v25  ;;  %v4108_v20 = vld [vmem:[#allocation11 + $0x80] sm:$0xff]  }
 0x2d5   :  { %2581 = vmatpush1.bf16.msra.mxu1 %v3680_v33  ;;  %v3745_v33 = vcombine.high %v993_v24, %v997_v25  ;;  %v4113_v24 = vld [vmem:[#allocation11 + $0x50] sm:$0xff]  }
 0x2d6   :  { %2667 = vmatpush1.bf16.msra.mxu0 %v3682_v38  ;;  %2582 = vmatprep.subr.bf16.mxu1 %v3689_v34  ;;  %v3747_v38 = vcombine.high %v994_v26, %v998_v27  ;;  %v1001_v34 = vld [vmem:[#allocation10 + $0x6d0] sm:$0xff] }
 0x2d7   :  { %2668 = vmatprep.subr.bf16.mxu0 %v3691_v35  ;;  %v1005_v35 = vld [vmem:[#allocation10 + $0x6f0] sm:$0xff] }
 0x2d8   :  { %v3752_v49 = vcombine.low %v1001_v34, %v1005_v35  ;;  %v4114_v25 = vld [vmem:[#allocation11 + $0xd0] sm:$0xff]  }
 0x2d9   :  { %2583 = vmatpush1.bf16.msra.mxu1 %v3688_v44  ;;  %v3753_v44 = vcombine.high %v1001_v34, %v1005_v35  ;;  %v4115_v26 = vld [vmem:[#allocation11 + $0x10] sm:$0xff]   ;;  %v4122_v34 = vld [vmem:[#allocation11 + $0xe0] sm:$0xff]  }
 0x2da   :  { %2669 = vmatpush1.bf16.msra.mxu0 %v3690_v42  ;;  %2584 = vmatprep.subr.bf16.mxu1 %v3697_v45  ;;  %v3755_v42 = vcombine.high %v1002_v36, %v1006_v37  ;;  %v1009_v45 = vld [vmem:[#allocation10 + $0x710] sm:$0xff]  ;;  %v4123_v35 = vld [vmem:[#allocation11 + $0x20] sm:$0xff]   ;;  %v4125_v37 = vld [vmem:[#allocation11 + $0x68] sm:$0xff]  }
 0x2db   :  { %2670 = vmatprep.subr.bf16.mxu0 %v3699_v46  ;;  %v1013_v46 = vld [vmem:[#allocation10 + $0x730] sm:$0xff]  ;;  %v4124_v36 = vld [vmem:[#allocation11 + $0xa0] sm:$0xff]  }
 0x2dc   :  { %v3760_v60 = vcombine.low %v1009_v45, %v1013_v46  ;;  %v4116_v27 = vld [vmem:[#allocation11 + $0x90] sm:$0xff]  }
 0x2dd   :  { %2585 = vmatpush1.bf16.msra.mxu1 %v3696_v51  ;;  %v3761_v51 = vcombine.high %v1009_v45, %v1013_v46  ;;  %v4130_v45 = vld [vmem:[#allocation11 + $0xf0] sm:$0xff]  }
 0x2de   :  { %2671 = vmatpush1.bf16.msra.mxu0 %v3698_v52  ;;  %2586 = vmatprep.subr.bf16.mxu1 %v3705_v53  ;;  %v3763_v52 = vcombine.high %v1010_v47, %v1014_v48  ;;  %v1017_v53 = vld [vmem:[#allocation10 + $0x750] sm:$0xff]  ;;  %v4133_v48 = vld [vmem:[#allocation11 + $0x78] sm:$0xff]  }
 0x2df   :  { %2672 = vmatprep.subr.bf16.mxu0 %v3707_v54  ;;  %v1021_v54 = vld [vmem:[#allocation10 + $0x770] sm:$0xff] }
 0x2e0   :  { %v3768_v3 = vcombine.low %v1017_v53, %v1021_v54  ;;  %v4131_v46 = vld [vmem:[#allocation11 + $0x30] sm:$0xff]  }
 0x2e1   :  { %2587 = vmatpush1.bf16.msra.mxu1 %v3704_v63  ;;  %v3769_v63 = vcombine.high %v1017_v53, %v1021_v54  ;;  %v4132_v47 = vld [vmem:[#allocation11 + $0xb0] sm:$0xff]   ;;  %v4138_v53 = vld [vmem:[#allocation11 + $0x1c0] sm:$0xff]  }
 0x2e2   :  { %2673 = vmatpush1.bf16.msra.mxu0 %v3706_v0  ;;  %2588 = vmatprep.subr.bf16.mxu1 %v3713_v56  ;;  %v3771_v0 = vcombine.high %v1018_v55, %v1022_v58  ;;  %v1025_v56 = vld [vmem:[#allocation10 + $0x790] sm:$0xff]  ;;  %v4552_v54 = vld [vmem:[%s4596_s6] sm:$0xff] }
 0x2e3   :  { %2674 = vmatprep.subr.bf16.mxu0 %v3715_v57  ;;  %v1029_v57 = vld [vmem:[#allocation10 + $0x7b0] sm:$0xff]  ;;  %v1044_v55 = vrot.slane %v4552_v54, %v4491_v30  ;;  %v1052_v58 = vrot.slane %v4552_v54, %v347_v59 }
 0x2e4   :  { %v3776_v11 = vcombine.low %v1025_v56, %v1029_v57 }
 0x2e5   :  { %2589 = vmatpush1.bf16.msra.mxu1 %v3712_v5  ;;  %v3777_v5 = vcombine.high %v1025_v56, %v1029_v57 }
 0x2e6   :  { %2675 = vmatpush1.bf16.msra.mxu0 %v3714_v6  ;;  %2590 = vmatprep.subr.bf16.mxu1 %v3721_v7  ;;  %v3779_v6 = vcombine.high %v1026_v1, %v1030_v2  ;;  %v1033_v7 = vld [vmem:[#allocation10 + $0x7d0] sm:$0xff] }
 0x2e7   :  { %2676 = vmatprep.subr.bf16.mxu0 %v3723_v8  ;;  %v1037_v8 = vld [vmem:[#allocation10 + $0x7f0] sm:$0xff] }
 0x2e9   :  { %2591 = vmatpush1.bf16.msra.mxu1 %v3720_v13  ;;  %v3785_v13 = vcombine.high %v1033_v7, %v1037_v8 }
 0x2ea   :  { %2677 = vmatpush1.bf16.msra.mxu0 %v3722_v14  ;;  %2592 = vmatprep.subr.bf16.mxu1 %v3729_v15  ;;  %v3787_v14 = vcombine.high %v1034_v9, %v1038_v10  ;;  %v3784_v15 = vcombine.low %v1033_v7, %v1037_v8 }
 0x2eb   :  { %2678 = vmatprep.subr.bf16.mxu0 %v3731_v16  ;;  %v3786_v16 = vcombine.low %v1034_v9, %v1038_v10 }
 0x2ed   :  { %2593 = vmatpush1.bf16.msra.mxu1 %v3728_v43  ;;  %v4109_v43 = vld [vmem:[#allocation11 + $0x48] sm:$0xff]  }
 0x2ee   :  { %2679 = vmatpush1.bf16.msra.mxu0 %v3730_v21  ;;  %2594 = vmatprep.subr.bf16.mxu1 %v3737_v22  ;;  %v4110_v21 = vld [vmem:[#allocation11 + $0xc8] sm:$0xff]  }
 0x2ef   :  { %2680 = vmatprep.subr.bf16.mxu0 %v3739_v23  ;;  %v4111_v22 = vld [vmem:[#allocation11 + $0x8] sm:$0xff]  }
 0x2f0   :  { %v4112_v23 = vld [vmem:[#allocation11 + $0x88] sm:$0xff]  }
 0x2f1   :  { %2595 = vmatpush1.bf16.msra.mxu1 %v3736_v28  ;;  %v4117_v28 = vld [vmem:[#allocation11 + $0x58] sm:$0xff]  }
 0x2f2   :  { %2681 = vmatpush1.bf16.msra.mxu0 %v3738_v31  ;;  %2596 = vmatprep.subr.bf16.mxu1 %v3745_v33  ;;  %v4118_v31 = vld [vmem:[#allocation11 + $0xd8] sm:$0xff]  }
 0x2f3   :  { %2682 = vmatprep.subr.bf16.mxu0 %v3747_v38  ;;  %v4119_v33 = vld [vmem:[#allocation11 + $0x18] sm:$0xff]   ;;  %v4121_v38 = vld [vmem:[#allocation11 + $0x60] sm:$0xff]  }
 0x2f5   :  { %2597 = vmatpush1.bf16.msra.mxu1 %v3744_v40  ;;  %v4126_v40 = vld [vmem:[#allocation11 + $0xe8] sm:$0xff]  }
 0x2f6   :  { %2683 = vmatpush1.bf16.msra.mxu0 %v3746_v41  ;;  %2598 = vmatprep.subr.bf16.mxu1 %v3753_v44  ;;  %v4127_v41 = vld [vmem:[#allocation11 + $0x28] sm:$0xff]  }
 0x2f7   :  { %2684 = vmatprep.subr.bf16.mxu0 %v3755_v42  ;;  %v4128_v44 = vld [vmem:[#allocation11 + $0xa8] sm:$0xff]   ;;  %v4129_v42 = vld [vmem:[#allocation11 + $0x70] sm:$0xff]  }
 0x2f9   :  { %2599 = vmatpush1.bf16.msra.mxu1 %v3752_v49  ;;  %v4134_v49 = vld [vmem:[#allocation11 + $0xf8] sm:$0xff]  }
 0x2fa   :  { %2685 = vmatpush1.bf16.msra.mxu0 %v3754_v50  ;;  %2600 = vmatprep.subr.bf16.mxu1 %v3761_v51  ;;  %v4135_v50 = vld [vmem:[#allocation11 + $0x38] sm:$0xff]  }
 0x2fb   :  { %2686 = vmatprep.subr.bf16.mxu0 %v3763_v52  ;;  %v4136_v51 = vld [vmem:[#allocation11 + $0xb8] sm:$0xff]   ;;  %v4137_v52 = vld [vmem:[#allocation11 + $0x140] sm:$0xff]  }
 0x2fd   :  { %2601 = vmatpush1.bf16.msra.mxu1 %v3760_v60  ;;  %v1048_v60 = vrot.slane %v4552_v54, %v4497_v32 }
 0x2fe   :  { %2687 = vmatpush1.bf16.msra.mxu0 %v3762_v62  ;;  %2602 = vmatprep.subr.bf16.mxu1 %v3769_v63  ;;  %v1056_v62 = vrot.slane %v4552_v54, %v351_v61 }
 0x2ff   :  { %2688 = vmatprep.subr.bf16.mxu0 %v3771_v0 }
 0x301   :  { %2603 = vmatpush1.bf16.msra.mxu1 %v3768_v3 }
 0x302   :  { %2689 = vmatpush1.bf16.msra.mxu0 %v3770_v4  ;;  %2604 = vmatprep.subr.bf16.mxu1 %v3777_v5 }
 0x303   :  { %2690 = vmatprep.subr.bf16.mxu0 %v3779_v6 }
 0x305   :  { %2605 = vmatpush1.bf16.msra.mxu1 %v3776_v11 }
 0x306   :  { %2691 = vmatpush1.bf16.msra.mxu0 %v3778_v12  ;;  %2606 = vmatprep.subr.bf16.mxu1 %v3785_v13 }
 0x307   :  { %2692 = vmatprep.subr.bf16.mxu0 %v3787_v14 }
 0x309   :  { %2607 = vmatpush1.bf16.msra.mxu1 %v3784_v15 }
 0x30a   :  { %2693 = vmatpush1.bf16.msra.mxu0 %v3786_v16  ;;  %3853 = vmatprep.subr.bf16.mxu1 %v4105_v17 }
 0x30b   :  { %3875 = vmatprep.subr.bf16.mxu0 %v4106_v18 }
 0x30c   :  { %2609 = vmatmul.mubr.bf16.vlgmr.msra.gmra.mrb[8].mxu1 %v4527_v39 }
 0x30d   :  { %2695 = vmatmul.mubr.bf16.vlgmr.msra.gmra.mrb[12].mxu0 %v4527_v39  ;;  %3854 = vmatpush3.bf16.msra.mxu1 %v4107_v19  ;;  %v4120_v39 = vld [vmem:[#allocation11 + $0x98] sm:$0xff]  }
 0x30e   :  { %3876 = vmatpush3.bf16.msra.mxu0 %v4108_v20  ;;  %3855 = vmatprep.subr.bf16.mxu1 %v4109_v43 }
 0x30f   :  { %3877 = vmatprep.subr.bf16.mxu0 %v4110_v21 }
 0x311   :  { %3856 = vmatpush3.bf16.msra.mxu1 %v4111_v22 }
 0x312   :  { %3878 = vmatpush3.bf16.msra.mxu0 %v4112_v23  ;;  %3857 = vmatprep.subr.bf16.mxu1 %v4113_v24 }
 0x313   :  { %3879 = vmatprep.subr.bf16.mxu0 %v4114_v25 }
 0x315   :  { %3858 = vmatpush3.bf16.msra.mxu1 %v4115_v26 }
 0x316   :  { %3880 = vmatpush3.bf16.msra.mxu0 %v4116_v27  ;;  %3859 = vmatprep.subr.bf16.mxu1 %v4117_v28  ;;  %v4139_v28 = vld [vmem:[#allocation11 + $0x100] sm:$0xff]  }
 0x317   :  { %3881 = vmatprep.subr.bf16.mxu0 %v4118_v31  ;;  %v4140_v31 = vld [vmem:[#allocation11 + $0x180] sm:$0xff]  }
 0x319   :  { %3860 = vmatpush3.bf16.msra.mxu1 %v4119_v33  ;;  %v4141_v33 = vld [vmem:[#allocation11 + $0x148] sm:$0xff]  }
 0x31a   :  { %3882 = vmatpush3.bf16.msra.mxu0 %v4120_v39  ;;  %3861 = vmatprep.subr.bf16.mxu1 %v4121_v38  ;;  %v4142_v39 = vld [vmem:[#allocation11 + $0x1c8] sm:$0xff]  }
 0x31b   :  { %3883 = vmatprep.subr.bf16.mxu0 %v4122_v34  ;;  %v4143_v38 = vld [vmem:[#allocation11 + $0x108] sm:$0xff]  }
 0x31c   :  { %v4144_v34 = vld [vmem:[#allocation11 + $0x188] sm:$0xff]  }
 0x31d   :  { %3862 = vmatpush3.bf16.msra.mxu1 %v4123_v35  ;;  %v4145_v35 = vld [vmem:[#allocation11 + $0x150] sm:$0xff]  }
 0x31e   :  { %3884 = vmatpush3.bf16.msra.mxu0 %v4124_v36  ;;  %3863 = vmatprep.subr.bf16.mxu1 %v4125_v37  ;;  %v4146_v36 = vld [vmem:[#allocation11 + $0x1d0] sm:$0xff]  }
 0x31f   :  { %3885 = vmatprep.subr.bf16.mxu0 %v4126_v40  ;;  %v4147_v37 = vld [vmem:[#allocation11 + $0x110] sm:$0xff]  }
 0x320   :  { %v4148_v40 = vld [vmem:[#allocation11 + $0x190] sm:$0xff]  }
 0x321   :  { %3864 = vmatpush3.bf16.msra.mxu1 %v4127_v41  ;;  %v4149_v41 = vld [vmem:[#allocation11 + $0x158] sm:$0xff]  }
 0x322   :  { %3886 = vmatpush3.bf16.msra.mxu0 %v4128_v44  ;;  %3865 = vmatprep.subr.bf16.mxu1 %v4129_v42  ;;  %v4150_v44 = vld [vmem:[#allocation11 + $0x1d8] sm:$0xff]  }
 0x323   :  { %3887 = vmatprep.subr.bf16.mxu0 %v4130_v45  ;;  %v4151_v42 = vld [vmem:[#allocation11 + $0x118] sm:$0xff]  }
 0x324   :  { %v4152_v45 = vld [vmem:[#allocation11 + $0x198] sm:$0xff]  }
 0x325   :  { %3866 = vmatpush3.bf16.msra.mxu1 %v4131_v46  ;;  %v4153_v46 = vld [vmem:[#allocation11 + $0x160] sm:$0xff]  }
 0x326   :  { %3888 = vmatpush3.bf16.msra.mxu0 %v4132_v47  ;;  %3867 = vmatprep.subr.bf16.mxu1 %v4133_v48  ;;  %v4154_v47 = vld [vmem:[#allocation11 + $0x1e0] sm:$0xff]  }
 0x327   :  { %3889 = vmatprep.subr.bf16.mxu0 %v4134_v49  ;;  %v4155_v48 = vld [vmem:[#allocation11 + $0x120] sm:$0xff]  }
 0x328   :  { %v4156_v49 = vld [vmem:[#allocation11 + $0x1a0] sm:$0xff]  }
 0x329   :  { %3868 = vmatpush3.bf16.msra.mxu1 %v4135_v50  ;;  %v4157_v50 = vld [vmem:[#allocation11 + $0x168] sm:$0xff]  }
 0x32a   :  { %3890 = vmatpush3.bf16.msra.mxu0 %v4136_v51  ;;  %3897 = vmatprep.subr.bf16.mxu1 %v4137_v52  ;;  %v4158_v51 = vld [vmem:[#allocation11 + $0x1e8] sm:$0xff]  }
 0x32b   :  { %3919 = vmatprep.subr.bf16.mxu0 %v4138_v53  ;;  %v4159_v52 = vld [vmem:[#allocation11 + $0x128] sm:$0xff]  }
 0x32c   :  { %v4160_v53 = vld [vmem:[#allocation11 + $0x1a8] sm:$0xff]  }
 0x35f   :  { %v2438_v63 = vpop.f32.mrb[4].mxu1  ;;  %v2524_v0 = vpop.f32.mrb[8].mxu0 }
 0x360   :  { %v3941_v56 = vadd.f32 %v2438_v63, %v1044_v55  ;;  %v3945_v57 = vadd.f32 %v2524_v0, %v1052_v58  ;;  %v2440_v1 = vpop.f32.mrb[5].mxu1  ;;  %v2526_v2 = vpop.f32.mrb[9].mxu0  ;;  %v4165_v63 = vld [vmem:[#allocation11 + $0x178] sm:$0xff]  }
 0x361   :  { %v3942_v3 = vadd.f32 %v2440_v1, %v1048_v60  ;;  %v3946_v4 = vadd.f32 %v2526_v2, %v1056_v62  ;;  %v2442_v30 = vpop.f32.mrb[6].mxu1  ;;  %v2528_v5 = vpop.f32.mrb[10].mxu0  ;;  %v4166_v0 = vld [vmem:[#allocation11 + $0x1f8] sm:$0xff]   ;;  %v1059_v1 = vsub.s32 4, %v4488_v29  ;;  %v1067_v2 = vsub.s32 6, %v4488_v29 }
 0x362   :  { %v2705_v6 = vmul.f32 0.2, %v3941_v56  ;;  %v2707_v7 = vmul.f32 0.2, %v3945_v57  ;;  %v3943_v59 = vadd.f32 %v2442_v30, %v1044_v55  ;;  %v3947_v8 = vadd.f32 %v2528_v5, %v1052_v58  ;;  %v2444_v9 = vpop.f32.mrb[7].mxu1  ;;  %v2530_v32 = vpop.f32.mrb[11].mxu0 }
 0x363   :  { %v2706_v10 = vmul.f32 0.2, %v3942_v3  ;;  %v2708_v11 = vmul.f32 0.2, %v3946_v4  ;;  %v3944_v12 = vadd.f32 %v2444_v9, %v1048_v60  ;;  %v3948_v61 = vadd.f32 %v2530_v32, %v1056_v62  ;;  %v4161_v55 = vld [vmem:[#allocation11 + $0x170] sm:$0xff]  }
 0x364   :  { %v2713_v13 = vmul.f32 0.2, %v3943_v59  ;;  %v2715_v14 = vmul.f32 0.2, %v3947_v8  ;;  %v2721_v17 = vmax.f32 %v3941_v56, %v2705_v6  ;;  %v2723_v18 = vmax.f32 %v3945_v57, %v2707_v7  ;;  %v4162_v58 = vld [vmem:[#allocation11 + $0x1f0] sm:$0xff]   ;;  %v4167_v56 = vld [vmem:[#allocation11 + $0x138] sm:$0xff]  }
 0x365   :  { %v2714_v15 = vmul.f32 0.2, %v3944_v12  ;;  %v2716_v16 = vmul.f32 0.2, %v3948_v61  ;;  %v2722_v43 = vmax.f32 %v3942_v3, %v2706_v10  ;;  %v2724_v21 = vmax.f32 %v3946_v4, %v2708_v11  ;;  %v4163_v60 = vld [vmem:[#allocation11 + $0x130] sm:$0xff]   ;;  %v4168_v57 = vld [vmem:[#allocation11 + $0x1b8] sm:$0xff]  }
 0x366   :  { %v2729_v19 = vmax.f32 %v3943_v59, %v2713_v13  ;;  %v2731_v20 = vmax.f32 %v3947_v8, %v2715_v14  ;;  %v4164_v62 = vld [vmem:[#allocation11 + $0x1b0] sm:$0xff]   ;;  %v1063_v3 = vsub.s32 5, %v4488_v29  ;;  %v1071_v4 = vsub.s32 7, %v4488_v29 }
 0x367   :  { %v2730_v22 = vmax.f32 %v3944_v12, %v2714_v15  ;;  %v2732_v23 = vmax.f32 %v3948_v61, %v2716_v16  ;;  %v1060_v30 = vrot.slane %v4552_v54, %v1059_v1  ;;  %v1068_v5 = vrot.slane %v4552_v54, %v1067_v2 }
 0x368   :  { %v2737_v24 = vpack.c.bf16 %v2729_v19, %v2721_v17  ;;  %v2739_v25 = vpack.c.bf16 %v2731_v20, %v2723_v18  ;;  %v1064_v6 = vrot.slane %v4552_v54, %v1063_v3  ;;  %v1072_v7 = vrot.slane %v4552_v54, %v1071_v4 }
 0x369   :  { %v2738_v26 = vpack.c.bf16 %v2730_v22, %v2722_v43  ;;  %v2740_v27 = vpack.c.bf16 %v2732_v23, %v2724_v21 }
 0x36b   :  { %3296 = vmatprep.mubr.bf16.mxu1 %v2738_v26  ;;  %3337 = vmatprep.mubr.bf16.mxu0 %v2740_v27 }
 0x36c   :  { %3297 = vmatmul.mubr.bf16.vlgmr.msra.gmra.mrb[12].mxu1 %v2737_v24  ;;  %3338 = vmatmul.mubr.bf16.vlgmr.msra.gmra.mrb[16].mxu0 %v2739_v25 }
 0x36d   :  { %3898 = vmatpush3.bf16.msra.mxu1 %v4139_v28  ;;  %3920 = vmatpush3.bf16.msra.mxu0 %v4140_v31 }
 0x36e   :  { %3899 = vmatprep.subr.bf16.mxu1 %v4141_v33  ;;  %3921 = vmatprep.subr.bf16.mxu0 %v4142_v39 }
 0x371   :  { %3900 = vmatpush3.bf16.msra.mxu1 %v4143_v38  ;;  %3922 = vmatpush3.bf16.msra.mxu0 %v4144_v34 }
 0x372   :  { %3901 = vmatprep.subr.bf16.mxu1 %v4145_v35  ;;  %3923 = vmatprep.subr.bf16.mxu0 %v4146_v36 }
 0x375   :  { %3902 = vmatpush3.bf16.msra.mxu1 %v4147_v37  ;;  %3924 = vmatpush3.bf16.msra.mxu0 %v4148_v40 }
 0x376   :  { %3903 = vmatprep.subr.bf16.mxu1 %v4149_v41  ;;  %3925 = vmatprep.subr.bf16.mxu0 %v4150_v44 }
 0x379   :  { %3904 = vmatpush3.bf16.msra.mxu1 %v4151_v42  ;;  %3926 = vmatpush3.bf16.msra.mxu0 %v4152_v45  ;;  %v3788_v42 = vld [vmem:[%s4598_s8] ss:$0 sm:$0xff]  ;;  %s4352_s8 = smov [#allocation13]  }
 0x37a   :  { %3905 = vmatprep.subr.bf16.mxu1 %v4153_v46  ;;  %3927 = vmatprep.subr.bf16.mxu0 %v4154_v47  ;;  %s3437_s12 = sshll.u32 %s4352_s8, 4  ;;  %s3438_s12 = int_to_ptr.vmem [resolvable:$true] %s3437_s12 }
 0x37b   :  { %s4305_s27 = scalar_lea.vmem %s3438_s12, 256  ;;  %p4310_p7 = scmp.lt.s32.totalorder %s3438_s12, %s3438_s12 }
 0x37c   :  { %p4306_p6 = scmp.ne.s32.totalorder %s3438_s12, %s4305_s27  ;;  %p4311_p8 = scmp.lt.s32.totalorder %s4305_s27, %s4305_s27 }
 0x37d   :  { %3906 = vmatpush3.bf16.msra.mxu1 %v4155_v48  ;;  %3928 = vmatpush3.bf16.msra.mxu0 %v4156_v49 }
 0x37e   :  { %3907 = vmatprep.subr.bf16.mxu1 %v4157_v50  ;;  %3929 = vmatprep.subr.bf16.mxu0 %v4158_v51  ;;  %p4312_p9 = por %p4311_p8, %p4310_p7 }
 0x380   :  { %p4313_p10 = pnand %p4312_p9, %p4306_p6 }
 0x381   :  { %3908 = vmatpush3.bf16.msra.mxu1 %v4159_v52  ;;  %3930 = vmatpush3.bf16.msra.mxu0 %v4160_v53 }
 0x382   :  { %3909 = vmatprep.subr.bf16.mxu1 %v4161_v55  ;;  %3931 = vmatprep.subr.bf16.mxu0 %v4162_v58 }
 0x385   :  { %3910 = vmatpush3.bf16.msra.mxu1 %v4163_v60  ;;  %3932 = vmatpush3.bf16.msra.mxu0 %v4164_v62 }
 0x386   :  { %3911 = vmatprep.subr.bf16.mxu1 %v4165_v63  ;;  %3933 = vmatprep.subr.bf16.mxu0 %v4166_v0 }
 0x389   :  { %3912 = vmatpush3.bf16.msra.mxu1 %v4167_v56  ;;  %3934 = vmatpush3.bf16.msra.mxu0 %v4168_v57 }
 0x3df   :  { %v2610_v59 = vpop.f32.mrb[8].mxu1 }
 0x3e0   :  { %v3949_v8 = vadd.f32 %v2610_v59, %v1060_v30  ;;  %v2696_v9 = vpop.f32.mrb[12].mxu0  ;;  %v2612_v32 = vpop.f32.mrb[9].mxu1 }
 0x3e1   :  { %v3953_v10 = vadd.f32 %v2696_v9, %v1068_v5  ;;  %v3950_v11 = vadd.f32 %v2612_v32, %v1064_v6  ;;  %v2698_v12 = vpop.f32.mrb[13].mxu0  ;;  %v2614_v61 = vpop.f32.mrb[10].mxu1 }
 0x3e2   :  { %v2709_v13 = vmul.f32 0.2, %v3949_v8  ;;  %v3954_v14 = vadd.f32 %v2698_v12, %v1072_v7  ;;  %v3951_v15 = vadd.f32 %v2614_v61, %v1060_v30  ;;  %v2700_v29 = vpop.f32.mrb[14].mxu0  ;;  %v2616_v16 = vpop.f32.mrb[11].mxu1 }
 0x3e3   :  { %v2711_v17 = vmul.f32 0.2, %v3953_v10  ;;  %v2710_v18 = vmul.f32 0.2, %v3950_v11  ;;  %v3955_v19 = vadd.f32 %v2700_v29, %v1068_v5  ;;  %v3952_v20 = vadd.f32 %v2616_v16, %v1064_v6  ;;  %v2702_v43 = vpop.f32.mrb[15].mxu0 }
 0x3e4   :  { %v2712_v21 = vmul.f32 0.2, %v3954_v14  ;;  %v2717_v54 = vmul.f32 0.2, %v3951_v15  ;;  %v3956_v22 = vadd.f32 %v2702_v43, %v1072_v7  ;;  %v2725_v25 = vmax.f32 %v3949_v8, %v2709_v13 }
 0x3e5   :  { %v2719_v23 = vmul.f32 0.2, %v3955_v19  ;;  %v2718_v24 = vmul.f32 0.2, %v3952_v20  ;;  %v2727_v28 = vmax.f32 %v3953_v10, %v2711_v17  ;;  %v2726_v31 = vmax.f32 %v3950_v11, %v2710_v18 }
 0x3e6   :  { %v2733_v26 = vmax.f32 %v3951_v15, %v2717_v54  ;;  %v2720_v27 = vmul.f32 0.2, %v3956_v22  ;;  %v2728_v38 = vmax.f32 %v3954_v14, %v2712_v21 }
 0x3e7   :  { %v2735_v33 = vmax.f32 %v3955_v19, %v2719_v23  ;;  %v2734_v39 = vmax.f32 %v3952_v20, %v2718_v24 }
 0x3e8   :  { %v2741_v34 = vpack.c.bf16 %v2733_v26, %v2725_v25  ;;  %v2736_v35 = vmax.f32 %v3956_v22, %v2720_v27 }
 0x3e9   :  { %v2743_v36 = vpack.c.bf16 %v2735_v33, %v2727_v28  ;;  %v2742_v37 = vpack.c.bf16 %v2734_v39, %v2726_v31 }
 0x3ea   :  { %v2744_v40 = vpack.c.bf16 %v2736_v35, %v2728_v38 }
 0x3eb   :  { %3378 = vmatprep.mubr.bf16.mxu1 %v2742_v37 }
 0x3ec   :  { %3419 = vmatprep.mubr.bf16.mxu0 %v2744_v40  ;;  %3379 = vmatmul.mubr.bf16.vlgmr.msra.gmra.mrb[16].mxu1 %v2741_v34 }
 0x3ed   :  { %3420 = vmatmul.mubr.bf16.vlgmr.msra.gmra.mrb[20].mxu0 %v2743_v36 }
 0x43f   :  { %v3869_v41 = vpop.f32.mrb[12].mxu1  ;;  %v3891_v44 = vpop.f32.mrb[16].mxu0 }
 0x440   :  { %v3870_v45 = vpop.f32.mrb[13].mxu1  ;;  %v3892_v46 = vpop.f32.mrb[17].mxu0 }
 0x441   :  { %v3871_v47 = vadd.f32 %v3870_v45, %v3869_v41  ;;  %v3893_v48 = vadd.f32 %v3892_v46, %v3891_v44  ;;  %v3872_v49 = vpop.f32.mrb[14].mxu1  ;;  %v3894_v50 = vpop.f32.mrb[18].mxu0 }
 0x442   :  { %v3873_v51 = vpop.f32.mrb[15].mxu1  ;;  %v3895_v52 = vpop.f32.mrb[19].mxu0 }
 0x443   :  { %v3299_v53 = vadd.f32 %v3871_v47, %v3788_v42  ;;  %v3874_v55 = vadd.f32 %v3873_v51, %v3872_v49  ;;  %v3896_v58 = vadd.f32 %v3895_v52, %v3894_v50 }
 0x445   :  { %v3340_v60 = vadd.f32 %v3893_v48, %v3299_v53  ;;  %v3302_v62 = vadd.f32 %v3874_v55, %v3788_v42 }
 0x447   :  { %v3343_v63 = vadd.f32 %v3896_v58, %v3302_v62 }
 0x4bf   :  { %v3913_v0 = vpop.f32.mrb[16].mxu1 }
 0x4c0   :  { %v3935_v56 = vpop.f32.mrb[20].mxu0  ;;  %v3914_v57 = vpop.f32.mrb[17].mxu1 }
 0x4c1   :  { %v3915_v1 = vadd.f32 %v3914_v57, %v3913_v0  ;;  %v3936_v2 = vpop.f32.mrb[21].mxu0  ;;  %v3916_v3 = vpop.f32.mrb[18].mxu1 }
 0x4c2   :  { %v3937_v4 = vadd.f32 %v3936_v2, %v3935_v56  ;;  %v3938_v30 = vpop.f32.mrb[22].mxu0  ;;  %v3917_v5 = vpop.f32.mrb[19].mxu1 }
 0x4c3   :  { %v3381_v6 = vadd.f32 %v3915_v1, %v3340_v60  ;;  %v3918_v7 = vadd.f32 %v3917_v5, %v3916_v3  ;;  %v3939_v59 = vpop.f32.mrb[23].mxu0 }
 0x4c4   :  { %v3940_v8 = vadd.f32 %v3939_v59, %v3938_v30 }
 0x4c5   :  { %v3422_v9 = vadd.f32 %v3937_v4, %v3381_v6  ;;  %v3384_v32 = vadd.f32 %v3918_v7, %v3343_v63 }
 0x4c7   :  { %4169 = vtanh.f32 %v3422_v9  ;;  %v3425_v10 = vadd.f32 %v3940_v8, %v3384_v32 }
 0x4c9   :  { %4171 = vtanh.f32 %v3425_v10 }
 0x4d1   :  { %v4170_v11 = vpop.eup %4169 }
 0x4d2   :  { %3430 = vst [vmem:[#allocation13] sm:$0xff] %v4170_v11 }
 0x4d3   :  { %v4172_v12 = vpop.eup %4171 }
 0x4d4   :  { %3431 = vst [vmem:[#allocation13 + $0x8] sm:$0xff] %v4172_v12 }
 0x4d5   :  { %4316 = shalt.err (!%p4313_p10)
}
 0x4d6   :  { %s4317_s17 = scalar_lea.hbm %s4599_s9, 256 }
 0x4d7   :  { %p4318_p11 = scmp.ne.s32.totalorder %s4599_s9, %s4317_s17  ;;  %p4321_p12 = scmp.lt.u32.totalorder %s4317_s17, %s4599_s9 }
 0x4d9   :  { %p4323_p13 = pnand %p4321_p12, %p4318_p11 }
 0x4db   :  { %4326 = shalt.err (!%p4323_p13)
}
 0x4dc   :  { %3443 = dma.vmem_to_hbm [thread:$0]  %s3438_s12, 256, %s4599_s9, [#allocation4], %s4339_s21, %s4339_s21, %s4340_s22  }
 0x4dd   :  { %4335 = dma.done.wait [#allocation4], 256  }
 0x4de   :  { %4336 = vsyncadd [#allocation4], 4294967040 }
 0x4df   :  { %3447 = vsyncpa [#allocation3], 1 }
 0x4e0   :  { %3448 = vsyncpa [#allocation6], 1 }
 0x4e1   :  { %3449 = vsyncpa [#allocation9], 1 }
 0x4e2   :  { %3450 = vsyncpa [#allocation12], 1 }
 0x4e3   :  { %3451 = vsyncpa [#allocation4], 1 }

</bundles_post_ra>
